<compile_context>
chip_gen: v7x
topology: tpu7x:2x2x1
jax: 0.10.0
libtpu: 0.0.40
codegen_flags: <defaults>
</compile_context>

<pallas_src>
import functools

import jax
import jax.numpy as jnp
from jax.experimental import pallas as pl
from jax.experimental.pallas import tpu as pltpu


def _triangle_attention_kernel(x_ref, bias_ref, wqkvg_ref, bg_ref, wo_ref, bo_ref,
                               out_ref, *, n_head, d_key):
    E = n_head * d_key
    dk = d_key

    x = x_ref[0]                        # (TI, L, D)  bf16 (cast in wrapper)
    w = wqkvg_ref[...]                  # (D, 4E)     bf16, scale folded into q block

    # One wide MXU matmul producing q | k | v | gate for the whole row tile.
    qkvg = jnp.einsum('rjd,de->rje', x, w,
                      preferred_element_type=jnp.float32)      # (TI, L, 4E) f32

    bg = bg_ref[...]                    # (1, E) f32
    bo = bo_ref[...]                    # (1, D) f32

    y_acc = None
    for h in range(n_head):             # static unroll over heads
        lo = h * dk
        q_h = qkvg[:, :, 0 * E + lo:0 * E + lo + dk].astype(jnp.bfloat16)
        k_h = qkvg[:, :, 1 * E + lo:1 * E + lo + dk].astype(jnp.bfloat16)
        v_h = qkvg[:, :, 2 * E + lo:2 * E + lo + dk].astype(jnp.bfloat16)
        g_h = jax.nn.sigmoid(qkvg[:, :, 3 * E + lo:3 * E + lo + dk]
                             + bg[:, lo:lo + dk])               # (TI, L, dk) f32

        # Row-batched logits for the tile: (TI, Lq, Lk); pair bias indexes (q, k)
        # and broadcasts over the attention-row axis.
        s = jnp.einsum('rqd,rkd->rqk', q_h, k_h,
                       preferred_element_type=jnp.float32)
        s = s + bias_ref[0, h][None, :, :]

        m = jnp.max(s, axis=-1, keepdims=True)
        e = jnp.exp(s - m)
        denom = jnp.sum(e, axis=-1, keepdims=True)
        attn = e * pl.reciprocal(denom, approx=True)            # EUP reciprocal

        o_h = jnp.einsum('rqk,rkd->rqd', attn.astype(jnp.bfloat16), v_h,
                         preferred_element_type=jnp.float32)    # (TI, L, dk) f32

        contrib = jnp.einsum('rqd,de->rqe',
                             (g_h * o_h).astype(jnp.bfloat16), wo_ref[h],
                             preferred_element_type=jnp.float32)  # (TI, L, D)
        y_acc = contrib if y_acc is None else y_acc + contrib

    out_ref[0] = (y_acc + bo).astype(out_ref.dtype)


def _choose_row_tile(L, D, n_head, d_key, budget_bytes=40 * 1024 * 1024):
    """Largest row tile whose per-step working set fits a cross-generation VMEM
    budget (conservative for v7x's 64 MiB/TC; v5e/v6e have 128 MiB)."""
    E = n_head * d_key
    candidates = [t for t in (512, 256, 128, 64, 32, 16, 8) if t <= L and L % t == 0]
    if not candidates:
        return L
    for ti in candidates:
        bias_b = 2 * n_head * L * L * 4           # resident bias block (x2 buffers)
        io_b = 2 * ti * L * D * (2 + 4)           # x (bf16) + out (f32), double-buffered
        qkvg_b = ti * L * 4 * E * 4               # fused projection result (f32)
        attn_b = 3 * ti * L * L * 4               # logits / exp / attn live per head
        if bias_b + io_b + qkvg_b + attn_b <= budget_bytes:
            return ti
    return candidates[-1]


def triangle_attention(x, bias, params, *, n_head, d_key, row_tile=None,
                       vmem_limit_bytes=48 * 1024 * 1024):
    B, L, L2, D = x.shape
    assert L == L2, "pair tensor must be square"
    E = n_head * d_key
    assert bias.shape == (B, 1, n_head, L, L)

    # ---- hoisted out of the kernel (small XLA ops) --------------------------
    # The pair-bias projection indexes the (q, k) pair axes (not the attention
    # row), so it must see the FULL x; computing it here avoids re-doing an
    # L^2*D*H matmul (and a full-x DMA) for every row tile.
    proj = jnp.einsum('bqkd,dh->bhqk', x.astype(jnp.float32), params['wp'])
    bias_total = bias[:, 0].astype(jnp.float32) + proj           # (B, H, L, L)

    scale = jnp.float32(d_key) ** -0.5                           # folded into Wq
    w_qkvg = jnp.concatenate(
        [params['wq'] * scale, params['wk'], params['wv'], params['wg']],
        axis=1).astype(jnp.bfloat16)                             # (D, 4E)
    wo_h = params['wo'].reshape(n_head, d_key, D).astype(jnp.bfloat16)
    bg = params['bg'].astype(jnp.float32)                        # (1, E)
    bo = params['bo'].astype(jnp.float32)                        # (1, D)
    x_bf = x.astype(jnp.bfloat16)

    if row_tile is None:
        row_tile = _choose_row_tile(L, D, n_head, d_key)
    assert L % row_tile == 0
    grid = (B, L // row_tile)

    kernel = functools.partial(_triangle_attention_kernel,
                               n_head=n_head, d_key=d_key)

    grid_spec = pltpu.PrefetchScalarGridSpec(
        num_scalar_prefetch=0,
        grid=grid,
        in_specs=[
            pl.BlockSpec((1, row_tile, L, D), lambda b, i: (b, i, 0, 0)),   # x rows
            pl.BlockSpec((1, n_head, L, L), lambda b, i: (b, 0, 0, 0)),     # bias (resident across i)
            pl.BlockSpec((D, 4 * E), lambda b, i: (0, 0)),                  # fused W_{q|k|v|g}
            pl.BlockSpec((1, E), lambda b, i: (0, 0)),                      # gate bias
            pl.BlockSpec((n_head, d_key, D), lambda b, i: (0, 0, 0)),       # per-head W_out
            pl.BlockSpec((1, D), lambda b, i: (0, 0)),                      # out bias
        ],
        out_specs=pl.BlockSpec((1, row_tile, L, D), lambda b, i: (b, i, 0, 0)),
    )
    return pl.pallas_call(
        kernel,
        out_shape=jax.ShapeDtypeStruct((B, L, L, D), jnp.float32),
        grid_spec=grid_spec,
        compiler_params=pltpu.CompilerParams(
            dimension_semantics=("parallel", "parallel"),
            vmem_limit_bytes=vmem_limit_bytes),
    )(x_bf, bias_total, w_qkvg, bg, wo_h, bo)


def triangle_attention_ref(x, bias, p, *, n_head, d_key, mxu_dtype=jnp.float32):
    """Pure-JAX reference. `mxu_dtype=bfloat16` mirrors the kernel's MXU-operand
    precision (f32 accumulation, f32 elementwise) for a tight comparison."""
    B, L, _, D = x.shape
    E = n_head * d_key
    f32 = jnp.float32

    def mm(eq, a, b):
        return jnp.einsum(eq, a.astype(mxu_dtype), b.astype(mxu_dtype),
                          preferred_element_type=f32)

    proj = jnp.einsum('bqkd,dh->bhqk', x.astype(f32), p['wp'])     # (B,H,L,L)
    btot = bias[:, 0].astype(f32) + proj
    scale = f32(d_key) ** -0.5

    q = mm('bijd,de->bije', x, p['wq'] * scale).reshape(B, L, L, n_head, d_key)
    k = mm('bijd,de->bije', x, p['wk']).reshape(B, L, L, n_head, d_key)
    v = mm('bijd,de->bije', x, p['wv']).reshape(B, L, L, n_head, d_key)
    g = jax.nn.sigmoid(mm('bijd,de->bije', x, p['wg']) + p['bg'][0].astype(f32))

    logits = mm('biqhd,bikhd->bihqk', q, k) + btot[:, None]        # (B,I,H,Lq,Lk)
    attn = jax.nn.softmax(logits, axis=-1)
    o = mm('bihqk,bikhd->biqhd', attn, v).reshape(B, L, L, E)
    return mm('bije,ed->bijd', g * o, p['wo']) + p['bo'][0].astype(f32)


if __name__ == "__main__":
    B, L, D, H, dk = 2, 16, 32, 4, 16       # batch, pair size, d_model, n_head, d_key
    E = H * dk
    key = jax.random.PRNGKey(0)
    ks = jax.random.split(key, 10)

    def init(k, shape, fan_in):
        return jax.random.normal(k, shape, jnp.float32) / jnp.sqrt(jnp.float32(fan_in))

    params = dict(
        wp=init(ks[0], (D, H), D),
        wq=init(ks[1], (D, E), D),
        wk=init(ks[2], (D, E), D),
        wv=init(ks[3], (D, E), D),
        wg=init(ks[4], (D, E), D),
        bg=0.1 * jax.random.normal(ks[5], (1, E), jnp.float32),
        wo=init(ks[6], (E, D), E),
        bo=0.1 * jax.random.normal(ks[7], (1, D), jnp.float32),
    )
    x = jax.random.normal(ks[8], (B, L, L, D), jnp.float32)
    bias = 0.1 * jax.random.normal(ks[9], (B, 1, H, L, L), jnp.float32)

    # row_tile=8 -> grid=(2, 2): exercises the row tiling + resident bias block.
    out = triangle_attention(x, bias, params, n_head=H, d_key=dk, row_tile=8)
    out = jax.block_until_ready(out)

    # Reference with matching bf16 MXU-operand precision (kernel also uses an
    # approximate reciprocal in the softmax, hence the 2e-2 tolerance).
    ref = triangle_attention_ref(x, bias, params, n_head=H, d_key=dk,
                                 mxu_dtype=jnp.bfloat16)
    assert out.shape == (B, L, L, D) and out.dtype == jnp.float32
    max_err = float(jnp.max(jnp.abs(out - ref)))
    assert jnp.allclose(out, ref, atol=2e-2, rtol=2e-2), max_err
    print("KERNEL_OK")
</pallas_src>

<mosaic_0001>
module attributes {stable_mosaic.version = 11 : i64} {
  func.func @_triangle_attention_kernel(%arg0: i32, %arg1: i32, %arg2: memref<1x8x16x32xbf16, #tpu.memory_space<vmem>>, %arg3: memref<1x4x16x16xf32, #tpu.memory_space<vmem>>, %arg4: memref<32x256xbf16, #tpu.memory_space<vmem>>, %arg5: memref<1x64xf32, #tpu.memory_space<vmem>>, %arg6: memref<4x16x32xbf16, #tpu.memory_space<vmem>>, %arg7: memref<1x32xf32, #tpu.memory_space<vmem>>, %arg8: memref<1x8x16x32xf32, #tpu.memory_space<vmem>>) attributes {dimension_semantics = [#tpu.dimension_semantics<parallel>, #tpu.dimension_semantics<parallel>], iteration_bounds = array<i64: 2, 2>, scalar_prefetch = 0 : i64, scratch_operands = 0 : i64, tpu.core_type = #tpu.core_type<tc>, window_params = [{transform_indices = @transform_0, window_bounds = array<i64: 1, 8, 16, 32>}, {transform_indices = @transform_1, window_bounds = array<i64: 1, 4, 16, 16>}, {pipeline_mode = #tpu.pipeline_mode<synchronous>, transform_indices = @transform_2, window_bounds = array<i64: 32, 256>}, {pipeline_mode = #tpu.pipeline_mode<synchronous>, transform_indices = @transform_3, window_bounds = array<i64: 1, 64>}, {pipeline_mode = #tpu.pipeline_mode<synchronous>, transform_indices = @transform_4, window_bounds = array<i64: 4, 16, 32>}, {pipeline_mode = #tpu.pipeline_mode<synchronous>, transform_indices = @transform_5, window_bounds = array<i64: 1, 32>}, {transform_indices = @transform_6, window_bounds = array<i64: 1, 8, 16, 32>}]} {
    %c0 = arith.constant 0 : index
    %c0_0 = arith.constant 0 : index
    %c0_1 = arith.constant 0 : index
    %c0_2 = arith.constant 0 : index
    %0 = vector.load %arg2[%c0, %c0_0, %c0_1, %c0_2] : memref<1x8x16x32xbf16, #tpu.memory_space<vmem>>, vector<1x8x16x32xbf16>
    %1 = vector.shape_cast %0 : vector<1x8x16x32xbf16> to vector<8x16x32xbf16>
    %c0_3 = arith.constant 0 : index
    %c0_4 = arith.constant 0 : index
    %2 = vector.load %arg4[%c0_3, %c0_4] : memref<32x256xbf16, #tpu.memory_space<vmem>>, vector<32x256xbf16>
    "tpu.trace_start"() <{level = 10 : i32, message = "rjd,de->rje"}> : () -> ()
    %cst = arith.constant dense<0.000000e+00> : vector<8x16x256xf32>
    %3 = tpu.matmul %1, %2, %cst {dimension_numbers = #tpu.dot_dimension_numbers<[2], [0], [0, 1], [1], [0, 0, 0, 1, 1, 1], [], []>} : vector<8x16x32xbf16>, vector<32x256xbf16>, vector<8x16x256xf32> -> vector<8x16x256xf32>
    "tpu.trace_stop"() : () -> ()
    %c0_5 = arith.constant 0 : index
    %c0_6 = arith.constant 0 : index
    %4 = vector.load %arg5[%c0_5, %c0_6] : memref<1x64xf32, #tpu.memory_space<vmem>>, vector<1x64xf32>
    %c0_7 = arith.constant 0 : index
    %c0_8 = arith.constant 0 : index
    %5 = vector.load %arg7[%c0_7, %c0_8] : memref<1x32xf32, #tpu.memory_space<vmem>>, vector<1x32xf32>
    %6 = vector.extract_strided_slice %3 {offsets = [0, 0, 0], sizes = [8, 16, 16], strides = [1, 1, 1]} : vector<8x16x256xf32> to vector<8x16x16xf32>
    %7 = arith.truncf %6 : vector<8x16x16xf32> to vector<8x16x16xbf16>
    %8 = vector.extract_strided_slice %3 {offsets = [0, 0, 64], sizes = [8, 16, 16], strides = [1, 1, 1]} : vector<8x16x256xf32> to vector<8x16x16xf32>
    %9 = arith.truncf %8 : vector<8x16x16xf32> to vector<8x16x16xbf16>
    %10 = vector.extract_strided_slice %3 {offsets = [0, 0, 128], sizes = [8, 16, 16], strides = [1, 1, 1]} : vector<8x16x256xf32> to vector<8x16x16xf32>
    %11 = arith.truncf %10 : vector<8x16x16xf32> to vector<8x16x16xbf16>
    %12 = vector.extract_strided_slice %3 {offsets = [0, 0, 192], sizes = [8, 16, 16], strides = [1, 1, 1]} : vector<8x16x256xf32> to vector<8x16x16xf32>
    %13 = vector.extract_strided_slice %4 {offsets = [0, 0], sizes = [1, 16], strides = [1, 1]} : vector<1x64xf32> to vector<1x16xf32>
    %14 = vector.shape_cast %13 : vector<1x16xf32> to vector<1x1x16xf32>
    %15 = vector.broadcast %14 : vector<1x1x16xf32> to vector<8x16x16xf32>
    %16 = arith.addf %12, %15 : vector<8x16x16xf32>
    %17 = arith.negf %16 : vector<8x16x16xf32>
    %18 = math.exp %17 : vector<8x16x16xf32>
    %cst_9 = arith.constant 1.000000e+00 : f32
    %19 = vector.broadcast %cst_9 : f32 to vector<8x16x16xf32>
    %20 = arith.addf %19, %18 : vector<8x16x16xf32>
    %21 = arith.divf %19, %20 : vector<8x16x16xf32>
    "tpu.trace_start"() <{level = 10 : i32, message = "rqd,rkd->rqk"}> : () -> ()
    %cst_10 = arith.constant dense<0.000000e+00> : vector<8x16x16xf32>
    %22 = tpu.matmul %7, %9, %cst_10 {dimension_numbers = #tpu.dot_dimension_numbers<[2], [2], [1], [1], [0, 0, 0, 1, 1, 1], [0], [0]>} : vector<8x16x16xbf16>, vector<8x16x16xbf16>, vector<8x16x16xf32> -> vector<8x16x16xf32>
    "tpu.trace_stop"() : () -> ()
    %c0_11 = arith.constant 0 : index
    %c0_12 = arith.constant 0 : index
    %c0_13 = arith.constant 0 : index
    %c0_14 = arith.constant 0 : index
    %23 = vector.load %arg3[%c0_11, %c0_12, %c0_13, %c0_14] : memref<1x4x16x16xf32, #tpu.memory_space<vmem>>, vector<1x1x16x16xf32>
    %24 = vector.shape_cast %23 : vector<1x1x16x16xf32> to vector<16x16xf32>
    %25 = vector.shape_cast %24 : vector<16x16xf32> to vector<1x16x16xf32>
    %26 = vector.broadcast %25 : vector<1x16x16xf32> to vector<8x16x16xf32>
    %27 = arith.addf %22, %26 : vector<8x16x16xf32>
    %cst_15 = arith.constant dense<0xFF800000> : vector<8x16xf32>
    %28 = vector.multi_reduction <maximumf>, %27, %cst_15 [2] : vector<8x16x16xf32> to vector<8x16xf32>
    %29 = vector.shape_cast %28 : vector<8x16xf32> to vector<8x16x1xf32>
    %30 = vector.broadcast %29 : vector<8x16x1xf32> to vector<8x16x16xf32>
    %31 = arith.subf %27, %30 : vector<8x16x16xf32>
    %32 = math.exp %31 : vector<8x16x16xf32>
    %cst_16 = arith.constant dense<0.000000e+00> : vector<8x16xf32>
    %33 = vector.multi_reduction <add>, %32, %cst_16 [2] : vector<8x16x16xf32> to vector<8x16xf32>
    %34 = vector.shape_cast %33 : vector<8x16xf32> to vector<8x16x1xf32>
    %35 = tpu.reciprocal %34 {approx = true} : vector<8x16x1xf32> -> vector<8x16x1xf32>
    %36 = vector.broadcast %35 : vector<8x16x1xf32> to vector<8x16x16xf32>
    %37 = arith.mulf %32, %36 : vector<8x16x16xf32>
    %38 = arith.truncf %37 : vector<8x16x16xf32> to vector<8x16x16xbf16>
    "tpu.trace_start"() <{level = 10 : i32, message = "rqk,rkd->rqd"}> : () -> ()
    %cst_17 = arith.constant dense<0.000000e+00> : vector<8x16x16xf32>
    %39 = tpu.matmul %38, %11, %cst_17 {dimension_numbers = #tpu.dot_dimension_numbers<[2], [1], [1], [2], [0, 0, 0, 1, 1, 2], [0], [0]>} : vector<8x16x16xbf16>, vector<8x16x16xbf16>, vector<8x16x16xf32> -> vector<8x16x16xf32>
    "tpu.trace_stop"() : () -> ()
    %40 = arith.mulf %21, %39 : vector<8x16x16xf32>
    %41 = arith.truncf %40 : vector<8x16x16xf32> to vector<8x16x16xbf16>
    %c0_18 = arith.constant 0 : index
    %c0_19 = arith.constant 0 : index
    %c0_20 = arith.constant 0 : index
    %42 = vector.load %arg6[%c0_18, %c0_19, %c0_20] : memref<4x16x32xbf16, #tpu.memory_space<vmem>>, vector<1x16x32xbf16>
    %43 = vector.shape_cast %42 : vector<1x16x32xbf16> to vector<16x32xbf16>
    "tpu.trace_start"() <{level = 10 : i32, message = "rqd,de->rqe"}> : () -> ()
    %cst_21 = arith.constant dense<0.000000e+00> : vector<8x16x32xf32>
    %44 = tpu.matmul %41, %43, %cst_21 {dimension_numbers = #tpu.dot_dimension_numbers<[2], [0], [0, 1], [1], [0, 0, 0, 1, 1, 1], [], []>} : vector<8x16x16xbf16>, vector<16x32xbf16>, vector<8x16x32xf32> -> vector<8x16x32xf32>
    "tpu.trace_stop"() : () -> ()
    %45 = vector.extract_strided_slice %3 {offsets = [0, 0, 16], sizes = [8, 16, 16], strides = [1, 1, 1]} : vector<8x16x256xf32> to vector<8x16x16xf32>
    %46 = arith.truncf %45 : vector<8x16x16xf32> to vector<8x16x16xbf16>
    %47 = vector.extract_strided_slice %3 {offsets = [0, 0, 80], sizes = [8, 16, 16], strides = [1, 1, 1]} : vector<8x16x256xf32> to vector<8x16x16xf32>
    %48 = arith.truncf %47 : vector<8x16x16xf32> to vector<8x16x16xbf16>
    %49 = vector.extract_strided_slice %3 {offsets = [0, 0, 144], sizes = [8, 16, 16], strides = [1, 1, 1]} : vector<8x16x256xf32> to vector<8x16x16xf32>
    %50 = arith.truncf %49 : vector<8x16x16xf32> to vector<8x16x16xbf16>
    %51 = vector.extract_strided_slice %3 {offsets = [0, 0, 208], sizes = [8, 16, 16], strides = [1, 1, 1]} : vector<8x16x256xf32> to vector<8x16x16xf32>
    %52 = vector.extract_strided_slice %4 {offsets = [0, 16], sizes = [1, 16], strides = [1, 1]} : vector<1x64xf32> to vector<1x16xf32>
    %53 = vector.shape_cast %52 : vector<1x16xf32> to vector<1x1x16xf32>
    %54 = vector.broadcast %53 : vector<1x1x16xf32> to vector<8x16x16xf32>
    %55 = arith.addf %51, %54 : vector<8x16x16xf32>
    %56 = arith.negf %55 : vector<8x16x16xf32>
    %57 = math.exp %56 : vector<8x16x16xf32>
    %cst_22 = arith.constant 1.000000e+00 : f32
    %58 = vector.broadcast %cst_22 : f32 to vector<8x16x16xf32>
    %59 = arith.addf %58, %57 : vector<8x16x16xf32>
    %60 = arith.divf %58, %59 : vector<8x16x16xf32>
    "tpu.trace_start"() <{level = 10 : i32, message = "rqd,rkd->rqk"}> : () -> ()
    %cst_23 = arith.constant dense<0.000000e+00> : vector<8x16x16xf32>
    %61 = tpu.matmul %46, %48, %cst_23 {dimension_numbers = #tpu.dot_dimension_numbers<[2], [2], [1], [1], [0, 0, 0, 1, 1, 1], [0], [0]>} : vector<8x16x16xbf16>, vector<8x16x16xbf16>, vector<8x16x16xf32> -> vector<8x16x16xf32>
    "tpu.trace_stop"() : () -> ()
    %c0_24 = arith.constant 0 : index
    %c1 = arith.constant 1 : index
    %c0_25 = arith.constant 0 : index
    %c0_26 = arith.constant 0 : index
    %62 = vector.load %arg3[%c0_24, %c1, %c0_25, %c0_26] : memref<1x4x16x16xf32, #tpu.memory_space<vmem>>, vector<1x1x16x16xf32>
    %63 = vector.shape_cast %62 : vector<1x1x16x16xf32> to vector<16x16xf32>
    %64 = vector.shape_cast %63 : vector<16x16xf32> to vector<1x16x16xf32>
    %65 = vector.broadcast %64 : vector<1x16x16xf32> to vector<8x16x16xf32>
    %66 = arith.addf %61, %65 : vector<8x16x16xf32>
    %cst_27 = arith.constant dense<0xFF800000> : vector<8x16xf32>
    %67 = vector.multi_reduction <maximumf>, %66, %cst_27 [2] : vector<8x16x16xf32> to vector<8x16xf32>
    %68 = vector.shape_cast %67 : vector<8x16xf32> to vector<8x16x1xf32>
    %69 = vector.broadcast %68 : vector<8x16x1xf32> to vector<8x16x16xf32>
    %70 = arith.subf %66, %69 : vector<8x16x16xf32>
    %71 = math.exp %70 : vector<8x16x16xf32>
    %cst_28 = arith.constant dense<0.000000e+00> : vector<8x16xf32>
    %72 = vector.multi_reduction <add>, %71, %cst_28 [2] : vector<8x16x16xf32> to vector<8x16xf32>
    %73 = vector.shape_cast %72 : vector<8x16xf32> to vector<8x16x1xf32>
    %74 = tpu.reciprocal %73 {approx = true} : vector<8x16x1xf32> -> vector<8x16x1xf32>
    %75 = vector.broadcast %74 : vector<8x16x1xf32> to vector<8x16x16xf32>
    %76 = arith.mulf %71, %75 : vector<8x16x16xf32>
    %77 = arith.truncf %76 : vector<8x16x16xf32> to vector<8x16x16xbf16>
    "tpu.trace_start"() <{level = 10 : i32, message = "rqk,rkd->rqd"}> : () -> ()
    %cst_29 = arith.constant dense<0.000000e+00> : vector<8x16x16xf32>
    %78 = tpu.matmul %77, %50, %cst_29 {dimension_numbers = #tpu.dot_dimension_numbers<[2], [1], [1], [2], [0, 0, 0, 1, 1, 2], [0], [0]>} : vector<8x16x16xbf16>, vector<8x16x16xbf16>, vector<8x16x16xf32> -> vector<8x16x16xf32>
    "tpu.trace_stop"() : () -> ()
    %79 = arith.mulf %60, %78 : vector<8x16x16xf32>
    %80 = arith.truncf %79 : vector<8x16x16xf32> to vector<8x16x16xbf16>
    %c1_30 = arith.constant 1 : index
    %c0_31 = arith.constant 0 : index
    %c0_32 = arith.constant 0 : index
    %81 = vector.load %arg6[%c1_30, %c0_31, %c0_32] : memref<4x16x32xbf16, #tpu.memory_space<vmem>>, vector<1x16x32xbf16>
    %82 = vector.shape_cast %81 : vector<1x16x32xbf16> to vector<16x32xbf16>
    "tpu.trace_start"() <{level = 10 : i32, message = "rqd,de->rqe"}> : () -> ()
    %cst_33 = arith.constant dense<0.000000e+00> : vector<8x16x32xf32>
    %83 = tpu.matmul %80, %82, %cst_33 {dimension_numbers = #tpu.dot_dimension_numbers<[2], [0], [0, 1], [1], [0, 0, 0, 1, 1, 1], [], []>} : vector<8x16x16xbf16>, vector<16x32xbf16>, vector<8x16x32xf32> -> vector<8x16x32xf32>
    "tpu.trace_stop"() : () -> ()
    %84 = arith.addf %44, %83 : vector<8x16x32xf32>
    %85 = vector.extract_strided_slice %3 {offsets = [0, 0, 32], sizes = [8, 16, 16], strides = [1, 1, 1]} : vector<8x16x256xf32> to vector<8x16x16xf32>
    %86 = arith.truncf %85 : vector<8x16x16xf32> to vector<8x16x16xbf16>
    %87 = vector.extract_strided_slice %3 {offsets = [0, 0, 96], sizes = [8, 16, 16], strides = [1, 1, 1]} : vector<8x16x256xf32> to vector<8x16x16xf32>
    %88 = arith.truncf %87 : vector<8x16x16xf32> to vector<8x16x16xbf16>
    %89 = vector.extract_strided_slice %3 {offsets = [0, 0, 160], sizes = [8, 16, 16], strides = [1, 1, 1]} : vector<8x16x256xf32> to vector<8x16x16xf32>
    %90 = arith.truncf %89 : vector<8x16x16xf32> to vector<8x16x16xbf16>
    %91 = vector.extract_strided_slice %3 {offsets = [0, 0, 224], sizes = [8, 16, 16], strides = [1, 1, 1]} : vector<8x16x256xf32> to vector<8x16x16xf32>
    %92 = vector.extract_strided_slice %4 {offsets = [0, 32], sizes = [1, 16], strides = [1, 1]} : vector<1x64xf32> to vector<1x16xf32>
    %93 = vector.shape_cast %92 : vector<1x16xf32> to vector<1x1x16xf32>
    %94 = vector.broadcast %93 : vector<1x1x16xf32> to vector<8x16x16xf32>
    %95 = arith.addf %91, %94 : vector<8x16x16xf32>
    %96 = arith.negf %95 : vector<8x16x16xf32>
    %97 = math.exp %96 : vector<8x16x16xf32>
    %cst_34 = arith.constant 1.000000e+00 : f32
    %98 = vector.broadcast %cst_34 : f32 to vector<8x16x16xf32>
    %99 = arith.addf %98, %97 : vector<8x16x16xf32>
    %100 = arith.divf %98, %99 : vector<8x16x16xf32>
    "tpu.trace_start"() <{level = 10 : i32, message = "rqd,rkd->rqk"}> : () -> ()
    %cst_35 = arith.constant dense<0.000000e+00> : vector<8x16x16xf32>
    %101 = tpu.matmul %86, %88, %cst_35 {dimension_numbers = #tpu.dot_dimension_numbers<[2], [2], [1], [1], [0, 0, 0, 1, 1, 1], [0], [0]>} : vector<8x16x16xbf16>, vector<8x16x16xbf16>, vector<8x16x16xf32> -> vector<8x16x16xf32>
    "tpu.trace_stop"() : () -> ()
    %c0_36 = arith.constant 0 : index
    %c2 = arith.constant 2 : index
    %c0_37 = arith.constant 0 : index
    %c0_38 = arith.constant 0 : index
    %102 = vector.load %arg3[%c0_36, %c2, %c0_37, %c0_38] : memref<1x4x16x16xf32, #tpu.memory_space<vmem>>, vector<1x1x16x16xf32>
    %103 = vector.shape_cast %102 : vector<1x1x16x16xf32> to vector<16x16xf32>
    %104 = vector.shape_cast %103 : vector<16x16xf32> to vector<1x16x16xf32>
    %105 = vector.broadcast %104 : vector<1x16x16xf32> to vector<8x16x16xf32>
    %106 = arith.addf %101, %105 : vector<8x16x16xf32>
    %cst_39 = arith.constant dense<0xFF800000> : vector<8x16xf32>
    %107 = vector.multi_reduction <maximumf>, %106, %cst_39 [2] : vector<8x16x16xf32> to vector<8x16xf32>
    %108 = vector.shape_cast %107 : vector<8x16xf32> to vector<8x16x1xf32>
    %109 = vector.broadcast %108 : vector<8x16x1xf32> to vector<8x16x16xf32>
    %110 = arith.subf %106, %109 : vector<8x16x16xf32>
    %111 = math.exp %110 : vector<8x16x16xf32>
    %cst_40 = arith.constant dense<0.000000e+00> : vector<8x16xf32>
    %112 = vector.multi_reduction <add>, %111, %cst_40 [2] : vector<8x16x16xf32> to vector<8x16xf32>
    %113 = vector.shape_cast %112 : vector<8x16xf32> to vector<8x16x1xf32>
    %114 = tpu.reciprocal %113 {approx = true} : vector<8x16x1xf32> -> vector<8x16x1xf32>
    %115 = vector.broadcast %114 : vector<8x16x1xf32> to vector<8x16x16xf32>
    %116 = arith.mulf %111, %115 : vector<8x16x16xf32>
    %117 = arith.truncf %116 : vector<8x16x16xf32> to vector<8x16x16xbf16>
    "tpu.trace_start"() <{level = 10 : i32, message = "rqk,rkd->rqd"}> : () -> ()
    %cst_41 = arith.constant dense<0.000000e+00> : vector<8x16x16xf32>
    %118 = tpu.matmul %117, %90, %cst_41 {dimension_numbers = #tpu.dot_dimension_numbers<[2], [1], [1], [2], [0, 0, 0, 1, 1, 2], [0], [0]>} : vector<8x16x16xbf16>, vector<8x16x16xbf16>, vector<8x16x16xf32> -> vector<8x16x16xf32>
    "tpu.trace_stop"() : () -> ()
    %119 = arith.mulf %100, %118 : vector<8x16x16xf32>
    %120 = arith.truncf %119 : vector<8x16x16xf32> to vector<8x16x16xbf16>
    %c2_42 = arith.constant 2 : index
    %c0_43 = arith.constant 0 : index
    %c0_44 = arith.constant 0 : index
    %121 = vector.load %arg6[%c2_42, %c0_43, %c0_44] : memref<4x16x32xbf16, #tpu.memory_space<vmem>>, vector<1x16x32xbf16>
    %122 = vector.shape_cast %121 : vector<1x16x32xbf16> to vector<16x32xbf16>
    "tpu.trace_start"() <{level = 10 : i32, message = "rqd,de->rqe"}> : () -> ()
    %cst_45 = arith.constant dense<0.000000e+00> : vector<8x16x32xf32>
    %123 = tpu.matmul %120, %122, %cst_45 {dimension_numbers = #tpu.dot_dimension_numbers<[2], [0], [0, 1], [1], [0, 0, 0, 1, 1, 1], [], []>} : vector<8x16x16xbf16>, vector<16x32xbf16>, vector<8x16x32xf32> -> vector<8x16x32xf32>
    "tpu.trace_stop"() : () -> ()
    %124 = arith.addf %84, %123 : vector<8x16x32xf32>
    %125 = vector.extract_strided_slice %3 {offsets = [0, 0, 48], sizes = [8, 16, 16], strides = [1, 1, 1]} : vector<8x16x256xf32> to vector<8x16x16xf32>
    %126 = arith.truncf %125 : vector<8x16x16xf32> to vector<8x16x16xbf16>
    %127 = vector.extract_strided_slice %3 {offsets = [0, 0, 112], sizes = [8, 16, 16], strides = [1, 1, 1]} : vector<8x16x256xf32> to vector<8x16x16xf32>
    %128 = arith.truncf %127 : vector<8x16x16xf32> to vector<8x16x16xbf16>
    %129 = vector.extract_strided_slice %3 {offsets = [0, 0, 176], sizes = [8, 16, 16], strides = [1, 1, 1]} : vector<8x16x256xf32> to vector<8x16x16xf32>
    %130 = arith.truncf %129 : vector<8x16x16xf32> to vector<8x16x16xbf16>
    %131 = vector.extract_strided_slice %3 {offsets = [0, 0, 240], sizes = [8, 16, 16], strides = [1, 1, 1]} : vector<8x16x256xf32> to vector<8x16x16xf32>
    %132 = vector.extract_strided_slice %4 {offsets = [0, 48], sizes = [1, 16], strides = [1, 1]} : vector<1x64xf32> to vector<1x16xf32>
    %133 = vector.shape_cast %132 : vector<1x16xf32> to vector<1x1x16xf32>
    %134 = vector.broadcast %133 : vector<1x1x16xf32> to vector<8x16x16xf32>
    %135 = arith.addf %131, %134 : vector<8x16x16xf32>
    %136 = arith.negf %135 : vector<8x16x16xf32>
    %137 = math.exp %136 : vector<8x16x16xf32>
    %cst_46 = arith.constant 1.000000e+00 : f32
    %138 = vector.broadcast %cst_46 : f32 to vector<8x16x16xf32>
    %139 = arith.addf %138, %137 : vector<8x16x16xf32>
    %140 = arith.divf %138, %139 : vector<8x16x16xf32>
    "tpu.trace_start"() <{level = 10 : i32, message = "rqd,rkd->rqk"}> : () -> ()
    %cst_47 = arith.constant dense<0.000000e+00> : vector<8x16x16xf32>
    %141 = tpu.matmul %126, %128, %cst_47 {dimension_numbers = #tpu.dot_dimension_numbers<[2], [2], [1], [1], [0, 0, 0, 1, 1, 1], [0], [0]>} : vector<8x16x16xbf16>, vector<8x16x16xbf16>, vector<8x16x16xf32> -> vector<8x16x16xf32>
    "tpu.trace_stop"() : () -> ()
    %c0_48 = arith.constant 0 : index
    %c3 = arith.constant 3 : index
    %c0_49 = arith.constant 0 : index
    %c0_50 = arith.constant 0 : index
    %142 = vector.load %arg3[%c0_48, %c3, %c0_49, %c0_50] : memref<1x4x16x16xf32, #tpu.memory_space<vmem>>, vector<1x1x16x16xf32>
    %143 = vector.shape_cast %142 : vector<1x1x16x16xf32> to vector<16x16xf32>
    %144 = vector.shape_cast %143 : vector<16x16xf32> to vector<1x16x16xf32>
    %145 = vector.broadcast %144 : vector<1x16x16xf32> to vector<8x16x16xf32>
    %146 = arith.addf %141, %145 : vector<8x16x16xf32>
    %cst_51 = arith.constant dense<0xFF800000> : vector<8x16xf32>
    %147 = vector.multi_reduction <maximumf>, %146, %cst_51 [2] : vector<8x16x16xf32> to vector<8x16xf32>
    %148 = vector.shape_cast %147 : vector<8x16xf32> to vector<8x16x1xf32>
    %149 = vector.broadcast %148 : vector<8x16x1xf32> to vector<8x16x16xf32>
    %150 = arith.subf %146, %149 : vector<8x16x16xf32>
    %151 = math.exp %150 : vector<8x16x16xf32>
    %cst_52 = arith.constant dense<0.000000e+00> : vector<8x16xf32>
    %152 = vector.multi_reduction <add>, %151, %cst_52 [2] : vector<8x16x16xf32> to vector<8x16xf32>
    %153 = vector.shape_cast %152 : vector<8x16xf32> to vector<8x16x1xf32>
    %154 = tpu.reciprocal %153 {approx = true} : vector<8x16x1xf32> -> vector<8x16x1xf32>
    %155 = vector.broadcast %154 : vector<8x16x1xf32> to vector<8x16x16xf32>
    %156 = arith.mulf %151, %155 : vector<8x16x16xf32>
    %157 = arith.truncf %156 : vector<8x16x16xf32> to vector<8x16x16xbf16>
    "tpu.trace_start"() <{level = 10 : i32, message = "rqk,rkd->rqd"}> : () -> ()
    %cst_53 = arith.constant dense<0.000000e+00> : vector<8x16x16xf32>
    %158 = tpu.matmul %157, %130, %cst_53 {dimension_numbers = #tpu.dot_dimension_numbers<[2], [1], [1], [2], [0, 0, 0, 1, 1, 2], [0], [0]>} : vector<8x16x16xbf16>, vector<8x16x16xbf16>, vector<8x16x16xf32> -> vector<8x16x16xf32>
    "tpu.trace_stop"() : () -> ()
    %159 = arith.mulf %140, %158 : vector<8x16x16xf32>
    %160 = arith.truncf %159 : vector<8x16x16xf32> to vector<8x16x16xbf16>
    %c3_54 = arith.constant 3 : index
    %c0_55 = arith.constant 0 : index
    %c0_56 = arith.constant 0 : index
    %161 = vector.load %arg6[%c3_54, %c0_55, %c0_56] : memref<4x16x32xbf16, #tpu.memory_space<vmem>>, vector<1x16x32xbf16>
    %162 = vector.shape_cast %161 : vector<1x16x32xbf16> to vector<16x32xbf16>
    "tpu.trace_start"() <{level = 10 : i32, message = "rqd,de->rqe"}> : () -> ()
    %cst_57 = arith.constant dense<0.000000e+00> : vector<8x16x32xf32>
    %163 = tpu.matmul %160, %162, %cst_57 {dimension_numbers = #tpu.dot_dimension_numbers<[2], [0], [0, 1], [1], [0, 0, 0, 1, 1, 1], [], []>} : vector<8x16x16xbf16>, vector<16x32xbf16>, vector<8x16x32xf32> -> vector<8x16x32xf32>
    "tpu.trace_stop"() : () -> ()
    %164 = arith.addf %124, %163 : vector<8x16x32xf32>
    %165 = vector.shape_cast %5 : vector<1x32xf32> to vector<1x1x32xf32>
    %166 = vector.broadcast %165 : vector<1x1x32xf32> to vector<8x16x32xf32>
    %167 = arith.addf %164, %166 : vector<8x16x32xf32>
    %c0_58 = arith.constant 0 : index
    %c0_59 = arith.constant 0 : index
    %c0_60 = arith.constant 0 : index
    %c0_61 = arith.constant 0 : index
    %168 = vector.load %arg8[%c0_58, %c0_59, %c0_60, %c0_61] : memref<1x8x16x32xf32, #tpu.memory_space<vmem>>, vector<1x8x16x32xf32>
    %169 = vector.shape_cast %168 : vector<1x8x16x32xf32> to vector<8x16x32xf32>
    %170 = vector.shape_cast %167 : vector<8x16x32xf32> to vector<1x8x16x32xf32>
    tpu.vector_store %arg8[%c0_58, %c0_59, %c0_60, %c0_61], %170 {strides = array<i32>} : memref<1x8x16x32xf32, #tpu.memory_space<vmem>>, vector<1x8x16x32xf32>,
    return
  }
  func.func @transform_0(%arg0: i32, %arg1: i32) -> (i32, i32, i32, i32) {
    %c0_i32 = arith.constant 0 : i32
    %c0_i32_0 = arith.constant 0 : i32
    %c0_i32_1 = arith.constant 0 : i32
    return %arg0, %arg1, %c0_i32, %c0_i32_0 : i32, i32, i32, i32
  }
  func.func @transform_1(%arg0: i32, %arg1: i32) -> (i32, i32, i32, i32) {
    %c0_i32 = arith.constant 0 : i32
    %c0_i32_0 = arith.constant 0 : i32
    %c0_i32_1 = arith.constant 0 : i32
    %c0_i32_2 = arith.constant 0 : i32
    return %arg0, %c0_i32, %c0_i32_0, %c0_i32_1 : i32, i32, i32, i32
  }
  func.func @transform_2(%arg0: i32, %arg1: i32) -> (i32, i32) {
    %c0_i32 = arith.constant 0 : i32
    %c0_i32_0 = arith.constant 0 : i32
    %c0_i32_1 = arith.constant 0 : i32
    return %c0_i32, %c0_i32_0 : i32, i32
  }
  func.func @transform_3(%arg0: i32, %arg1: i32) -> (i32, i32) {
    %c0_i32 = arith.constant 0 : i32
    %c0_i32_0 = arith.constant 0 : i32
    %c0_i32_1 = arith.constant 0 : i32
    return %c0_i32, %c0_i32_0 : i32, i32
  }
  func.func @transform_4(%arg0: i32, %arg1: i32) -> (i32, i32, i32) {
    %c0_i32 = arith.constant 0 : i32
    %c0_i32_0 = arith.constant 0 : i32
    %c0_i32_1 = arith.constant 0 : i32
    %c0_i32_2 = arith.constant 0 : i32
    return %c0_i32, %c0_i32_0, %c0_i32_1 : i32, i32, i32
  }
  func.func @transform_5(%arg0: i32, %arg1: i32) -> (i32, i32) {
    %c0_i32 = arith.constant 0 : i32
    %c0_i32_0 = arith.constant 0 : i32
    %c0_i32_1 = arith.constant 0 : i32
    return %c0_i32, %c0_i32_0 : i32, i32
  }
  func.func @transform_6(%arg0: i32, %arg1: i32) -> (i32, i32, i32, i32) {
    %c0_i32 = arith.constant 0 : i32
    %c0_i32_0 = arith.constant 0 : i32
    %c0_i32_1 = arith.constant 0 : i32
    return %arg0, %arg1, %c0_i32, %c0_i32_0 : i32, i32, i32, i32
  }
}

</mosaic_0001>

<bundles_post_ra>
// kernel: tpu_custom_call.1
= control target key start
LH: loop header
LB: loop body
LE: loop exit
PB: predicated region body
PF: predicated region fallthrough
CT: control target
= control target key end

     0   :  { %s9531_s0 = inlined_call_operand.hbm [shape: bf16[2,16,16,32], index: 0, kind: input, shape index: {}]   ;;  %s9532_s1 = inlined_call_operand.hbm [shape: f32[2,4,16,16], index: 1, kind: input, shape index: {}]   ;;  %s9533_s2 = inlined_call_operand.hbm [shape: bf16[32,256], index: 2, kind: input, shape index: {}]   ;;  %s9534_s3 = inlined_call_operand.vmem [shape: f32[1,64], index: 3, kind: input, shape index: {}]   ;;  %s9535_s4 = inlined_call_operand.hbm [shape: bf16[4,16,32], index: 4, kind: input, shape index: {}]   ;;  %s9536_s5 = inlined_call_operand.vmem [shape: f32[1,32], index: 5, kind: input, shape index: {}]   ;;  %s9537_s6 = inlined_call_operand.hbm [shape: f32[2,16,16,32], index: 6, kind: output, shape index: {}]  }
   0x1   :  { %9596 = sst [smem:[#allocation51_spill]] %s9533_s2 }
   0x2   :  { %9597 = sst [smem:[#allocation52_spill]] %s9535_s4 }
   0x3   :  { %9598 = sst [smem:[#allocation53_spill]] %s9537_s6 }
   0x4   :  { %11 = vsyncpa [#allocation3], 0 }
   0x5   :  { %13 = vsyncpa [#allocation3 + $0x1], 0 }
   0x6   :  { %14 = vsyncpa [#allocation6], 0 }
   0x7   :  { %16 = vsyncpa [#allocation6 + $0x1], 0 }
   0x8   :  { %17 = vsyncpa [#allocation9], 0 }
   0x9   :  { %18 = vsyncpa [#allocation4], 0 }
   0xa   :  { %20 = vsyncpa [#allocation4 + $0x1], 0  ;;  %s7399_s21 = smov 0   ;;  %s7401_s22 = smov 0  }
   0xb   :  { %s7403_s23 = smov 0   ;;  %s7405_s24 = smov 0  }
   0xc   :  { %s7407_s25 = smov 0   ;;  %s7409_s26 = smov 0  }
   0xd   :  { %s7411_s27 = smov 0   ;;  %s7413_s28 = smov 0  }
   0xe   :  { %s7415_s29 = smov 0   ;;  %s7417_s30 = smov 0  }
   0xf   :  { %s7419_s7 = smov 0  }
  0x10 LB: > { %9599 = sst [smem:[#allocation16_spill]] %s7313_s24  ;;  %s7453_s8 = sadd.s32 4294967295, %s7341_s7   ;;  %s7341_s7 = sphi %s7419_s7, %s26_s7   ;;  %s7337_s30 = sphi %s7417_s30, %s9712_s30   ;;  %s7333_s29 = sphi %s7415_s29, %s9711_s29   ;;  %s7329_s28 = sphi %s7413_s28, %s9710_s28   ;;  %s7325_s27 = sphi %s7411_s27, %s9709_s27   ;;  %s7321_s26 = sphi %s7409_s26, %s9708_s26   ;;  %s7317_s25 = sphi %s7407_s25, %s9707_s25   ;;  %s7313_s24 = sphi %s7405_s24, %s9706_s24   ;;  %s7309_s23 = sphi %s7403_s23, %s9705_s23   ;;  %s7305_s22 = sphi %s7401_s22, %s9704_s22   ;;  %s7301_s21 = sphi %s7399_s21, %s9703_s21  }
  0x11   : > { %9600 = sst [smem:[#allocation17_spill]] %s7325_s27  ;;  %s5764_s9 = sadd.s32 4294967294, %s7341_s7  }
  0x12   : > { %9601 = sst [smem:[#allocation18_spill]] %s7329_s28  ;;  %p60_p0 = scmp.ne.s32.totalorder %s7317_s25, %s7313_s24 }
  0x13   : > { %p9540_p1 = scmp.eq.s32.totalorder %s7453_s8, 0  ;;  %p86_p2 = scmp.ne.s32.totalorder %s7305_s22, %s7301_s21 }
  0x14   : > { %p202_p5 = scmp.eq.s32.totalorder %s5764_s9, 3  ;;  %p5765_p7 = scmp.ge.s32.totalorder %s7341_s7, 1 }
  0x15   : > { %p7463_p4 = por %p9540_p1, %p60_p0  ;;  %p7469_p6 = por %p86_p2, %p9540_p1 }
  0x16   : > { %p7474_p8 = por %p202_p5, %p60_p0  ;;  %p209_p9 = scmp.lt.s32.totalorder %s7341_s7, 5 }
  0x17   : > { %s9602_s10 = scalar_select %p7463_p4, 1, 0 }
  0x18   : > { %s9603_s11 = scalar_select %p7469_p6, 1, 0 }
  0x19   : > { %s9604_s12 = scalar_select %p7474_p8, 1, 0 }
  0x1a   : > { %p7479_p10 = pnand %p5765_p7, %p209_p9  ;;  %s7343_s14 = smov [#allocation7]  }
  0x1b   : > { %9605 = sst [smem:[#allocation19_spill]] %s9604_s12  ;;  %s221_s15 = sshll.u32 %s7343_s14, 4  ;;  %s222_s15 = int_to_ptr.vmem [resolvable:$true] %s221_s15 }
  0x1c   : > { %s9606_s13 = scalar_select %p7479_p10, 1, 0 }
  0x1d   : > { %p6623_p11 = pneg %p7479_p10  ;;  %s7344_s17 = smov [#allocation8]  }
  0x1e   : > { %s237_s18 = sshll.u32 %s7344_s17, 4  ;;  %s9608_s2 = sld [smem:[#allocation51_spill]]  ;;  %s7491_s18 = int_to_ptr.vmem [resolvable:$true] %s237_s18 }
  0x1f   : > { %p7487_p12 = pnand %p6623_p11, %p9540_p1 }
  0x21   : > { %p7093_p0 = pneg %p7487_p12 }
  0x24   : > { %s7091_s21 = scalar_lea.hbm %s9608_s2, 512 }
  0x25   : > { %p7092_p13 = scmp.ne.s32.totalorder %s9608_s2, %s7091_s21  ;;  %p7098_p7 = scmp.lt.u32.totalorder %s7091_s21, %s9608_s2 }
  0x27   : > { %p7094_p2 = pnand %p7093_p0, %p7092_p13 }
  0x29   : > { %p7095_p5 = pneg %p7094_p2 }
  0x2b   : > { %p7100_p9 = pnand %p7098_p7, %p7095_p5 }
  0x2d   : > { %7103 = shalt.err (!%p7100_p9)
}
  0x2e   : > { %s7104_s17 = scalar_lea.vmem %s222_s15, 512  ;;  %p7112_p8 = scmp.lt.s32.totalorder %s222_s15, %s222_s15 }
  0x2f   : > { %p7105_p11 = scmp.ne.s32.totalorder %s222_s15, %s7104_s17  ;;  %p7113_p6 = scmp.lt.s32.totalorder %s7104_s17, %s7104_s17 }
  0x31   : > { %p7107_p1 = pnand %p7105_p11, %p7093_p0  ;;  %p7114_p4 = por %p7113_p6, %p7112_p8 }
  0x33   : > { %p7108_p3 = pneg %p7107_p1 }
  0x35   : > { %p7115_p10 = pnand %p7114_p4, %p7108_p3 }
  0x37   : > { %7118 = shalt.err (!%p7115_p10)
}
  0x38   : > { %s9545_s19 = smov 128   ;;  %s9546_s20 = smov 8  }
  0x39   : > { %6626 = dma.hbm_to_vmem [thread:$0]  (!%p7487_p12), %s9608_s2, 512, %s222_s15, [#allocation6], %s9545_s19, %s9545_s19, %s9546_s20  }
  0x3a   : > { %s9609_s4 = sld [smem:[#allocation52_spill]] }
  0x40   : > { %s7119_s14 = scalar_lea.hbm %s9609_s4, 512 }
  0x41   : > { %p7120_p1 = scmp.ne.s32.totalorder %s9609_s4, %s7119_s14  ;;  %p7126_p6 = scmp.lt.u32.totalorder %s7119_s14, %s9609_s4 }
  0x43   : > { %p7122_p3 = pnand %p7120_p1, %p7093_p0 }
  0x45   : > { %p7123_p4 = pneg %p7122_p3 }
  0x47   : > { %p7128_p8 = pnand %p7126_p6, %p7123_p4 }
  0x49   : > { %7131 = shalt.err (!%p7128_p8)
}
  0x4a   : > { %s7132_s15 = scalar_lea.vmem %s7491_s18, 512  ;;  %p7140_p5 = scmp.lt.s32.totalorder %s7491_s18, %s7491_s18 }
  0x4b   : > { %p7133_p10 = scmp.ne.s32.totalorder %s7491_s18, %s7132_s15  ;;  %p7141_p7 = scmp.lt.s32.totalorder %s7132_s15, %s7132_s15 }
  0x4d   : > { %p7135_p13 = pnand %p7133_p10, %p7093_p0  ;;  %p7142_p9 = por %p7141_p7, %p7140_p5 }
  0x4f   : > { %p7136_p2 = pneg %p7135_p13 }
  0x51   : > { %p7143_p11 = pnand %p7142_p9, %p7136_p2 }
  0x53   : > { %7146 = shalt.err (!%p7143_p11)
}
  0x54   : > { %s9547_s6 = smov 64   ;;  %s9548_s27 = smov 4  }
  0x55   : > { %6629 = dma.hbm_to_vmem [thread:$0]  (!%p7487_p12), %s9609_s4, 512, %s7491_s18, [#allocation9], %s9547_s6, %s9547_s6, %s9548_s27  }
  0x56   : > { %s35_s12 = sadd.s32 1, %s7333_s29  ;;  %s38_s21 = sadd.s32 1, %s7337_s30 }
  0x57   : > { %p36_p0 = scmp.ge.s32.totalorder %s35_s12, 2  ;;  %s47_s9 = sadd.s32 1, %s7321_s26 }
  0x58   : > { %p54_p1 = scmp.ne.s32.totalorder %s7321_s26, %s7317_s25  ;;  %p9554_p3 = scmp.eq.s32.totalorder %s7341_s7, 0 }
  0x59   : > { %s9714_s12 = smov (%p36_p0, %s35_s12), 0  ;;  %s9716_s21 = smov (!%p36_p0, %s38_s21), %s7337_s30 }
  0x5a   : > { %9610 = sst [smem:[#allocation20_spill]] %s9714_s12  ;;  %s43_s16 = ssub.s32 %s7333_s29, %s9714_s12 }
  0x5b   : > { %p7559_p4 = por %p9554_p3, %p54_p1  ;;  %p40_p12 = scmp.ge.s32.totalorder %s9716_s21, 2 }
  0x5c   : > { %p9612_p6 = scmp.eq.s32.totalorder %s7453_s8, 3  ;;  %p9553_p10 = scmp.lt.s32.totalorder %s7341_s7, 4 }
  0x5d   : > { %s254_s17 = sand.u32 1, %s7321_s26   ;;  %s9718_s21 = smov (%p40_p12, %s9716_s21), 0 }
  0x5e   : > { %p7565_p8 = por %p9612_p6, %p54_p1  ;;  %9615 = sst [smem:[#allocation22_spill]] %s9718_s21 }
  0x5f   : > { %s5769_s15 = sshll.u32 %s254_s17, 6  ;;  %s7575_s28 = ssub.s32 %s7337_s30, %s9718_s21 }
  0x60   : > { %s9613_s18 = scalar_select %p7565_p8, 1, 0 }
  0x61   : > { %s44_s24 = sor.u32 %s43_s16, %s7575_s28  ;;  %s5934_s19 = sshll.u32 %s7333_s29, 4 }
  0x62   : > { %9614 = sst [smem:[#allocation21_spill]] %s9613_s18  ;;  %p45_p2 = scmp.eq.s32.totalorder %s44_s24, 0 }
  0x63   : > { %s5772_s20 = sshll.u32 %s7337_s30, 5  ;;  %s258_s6 = scalar_lea.vmem [#allocation2], %s5769_s15 }
  0x64   : > { %s268_s27 = sshll.u32 %s258_s6, 4  ;;  %s265_s4 = sadd.s32 %s5934_s19, %s5772_s20  ;;  %s7584_s27 = int_to_ptr.vmem [resolvable:$true] %s268_s27 }
  0x65   : > { %s7582_s2 = scalar_select %p45_p2, %s7321_s26, %s47_s9  }
  0x66   : > { %s5773_s12 = sshll.u32 %s265_s4, 6  ;;  %p7590_p5 = pnand %p9553_p10, %p7559_p4 }
  0x67   : > { %s7597_s24 = scalar_lea.hbm %s9531_s0, %s5773_s12  ;;  %s7599_s19 = scalar_lea.sflag [#allocation3], %s254_s17 }
  0x68   : > { %s7147_s4 = scalar_lea.hbm %s7597_s24, 1024  ;;  %p7149_p9 = pneg %p7590_p5 }
  0x69   : > { %p7148_p7 = scmp.ne.s32.totalorder %s7597_s24, %s7147_s4  ;;  %s7152_s9 = scalar_lea.hbm %s9531_s0, 4096 }
  0x6a   : > { %p7153_p1 = scmp.lt.u32.totalorder %s7597_s24, %s9531_s0  ;;  %p7154_p4 = scmp.lt.u32.totalorder %s7152_s9, %s7147_s4 }
  0x6b   : > { %p7150_p11 = pnand %p7149_p9, %p7148_p7  ;;  %p7156_p6 = scmp.lt.u32.totalorder %s7147_s4, %s7597_s24 }
  0x6c   : > { %p7155_p12 = por %p7154_p4, %p7153_p1 }
  0x6d   : > { %p7151_p0 = pneg %p7150_p11 }
  0x6e   : > { %p7157_p2 = por %p7156_p6, %p7155_p12 }
  0x70   : > { %p7158_p10 = pnand %p7157_p2, %p7151_p0 }
  0x72   : > { %7161 = shalt.err (!%p7158_p10)
}
  0x73   : > { %s7162_s18 = scalar_lea.vmem %s7584_s27, 1024  ;;  %s7349_s17 = smov [#allocation2]  }
  0x74   : > { %p7163_p7 = scmp.ne.s32.totalorder %s7584_s27, %s7162_s18  ;;  %s7167_s15 = sshll.u32 %s7349_s17, 4  ;;  %s7168_s15 = int_to_ptr.vmem [resolvable:$false] %s7167_s15 }
  0x75   : > { %s7169_s16 = scalar_lea.vmem %s7168_s15, 2048  ;;  %p7170_p13 = scmp.lt.s32.totalorder %s7584_s27, %s7168_s15 }
  0x76   : > { %p7165_p11 = pnand %p7163_p7, %p7149_p9  ;;  %p7171_p1 = scmp.lt.s32.totalorder %s7169_s16, %s7162_s18 }
  0x78   : > { %p7166_p3 = pneg %p7165_p11  ;;  %p7172_p4 = por %p7171_p1, %p7170_p13 }
  0x7a   : > { %p7173_p12 = pnand %p7172_p4, %p7166_p3 }
  0x7c   : > { %7176 = shalt.err (!%p7173_p12)
}
  0x7d   : > { %s9617_s4 = smov 4   ;;  %s9618_s20 = smov 64  }
  0x7e   : > { %6633 = dma.hbm_to_vmem [thread:$0]  (!%p7590_p5), %s7597_s24, 1024, %s7584_s27, %s7599_s19, %s9618_s20, %s9618_s20, %s9617_s4  }
  0x7f   : > { %s73_s6 = sadd.s32 1, %s7309_s23  ;;  %p80_p3 = scmp.ne.s32.totalorder %s7309_s23, %s7305_s22 }
  0x80   : > { %p9619_p10 = scmp.eq.s32.totalorder %s7575_s28, 0  ;;  %p9620_p13 = scmp.eq.s32.totalorder %s7341_s7, 0 }
  0x81   : > { %s278_s9 = sand.u32 1, %s7341_s7   ;;  %s280_s12 = sand.u32 1, %s7309_s23  }
  0x82   : > { %s7636_s21 = scalar_select %p9619_p10, %s7309_s23, %s73_s6  }
  0x83   : > { %p82_p9 = por %p80_p3, %p9620_p13  ;;  %s5774_s14 = sshll.u32 %s280_s12, 6 }
  0x84   : > { %s5935_s18 = sshll.u32 %s7337_s30, 10  ;;  %s282_s27 = scalar_lea.vmem [#allocation5], %s5774_s14 }
  0x85   : > { %s7646_s16 = scalar_lea.hbm %s9532_s1, %s5935_s18  ;;  %s289_s24 = sshll.u32 %s282_s27, 4  ;;  %s7654_s24 = int_to_ptr.vmem [resolvable:$true] %s289_s24 }
  0x86   : > { %p9621_p5 = scmp.lt.s32.totalorder %s7341_s7, 4  ;;  %s7656_s19 = scalar_lea.sflag [#allocation6], %s278_s9 }
  0x87   : > { %s7177_s4 = scalar_lea.hbm %s7646_s16, 1024  ;;  %s7182_s12 = scalar_lea.hbm %s9532_s1, 2048 }
  0x88   : > { %p7650_p0 = pnand %p9621_p5, %p82_p9  ;;  %p7178_p6 = scmp.ne.s32.totalorder %s7646_s16, %s7177_s4 }
  0x89   : > { %p7183_p1 = scmp.lt.u32.totalorder %s7646_s16, %s9532_s1  ;;  %p7184_p4 = scmp.lt.u32.totalorder %s7182_s12, %s7177_s4 }
  0x8a   : > { %p7179_p2 = pneg %p7650_p0  ;;  %p7186_p3 = scmp.lt.u32.totalorder %s7177_s4, %s7646_s16 }
  0x8b   : > { %p7185_p12 = por %p7184_p4, %p7183_p1 }
  0x8c   : > { %p7180_p7 = pnand %p7179_p2, %p7178_p6 }
  0x8d   : > { %p7187_p10 = por %p7186_p3, %p7185_p12 }
  0x8e   : > { %p7181_p11 = pneg %p7180_p7 }
  0x90   : > { %p7188_p13 = pnand %p7187_p10, %p7181_p11 }
  0x92   : > { %7191 = shalt.err (!%p7188_p13)
}
  0x93   : > { %s7192_s9 = scalar_lea.vmem %s7654_s24, 1024  ;;  %s7350_s17 = smov [#allocation5]  }
  0x94   : > { %p7193_p9 = scmp.ne.s32.totalorder %s7654_s24, %s7192_s9  ;;  %s7197_s15 = sshll.u32 %s7350_s17, 4  ;;  %s7198_s15 = int_to_ptr.vmem [resolvable:$false] %s7197_s15 }
  0x95   : > { %s7199_s27 = scalar_lea.vmem %s7198_s15, 2048  ;;  %p7200_p7 = scmp.lt.s32.totalorder %s7654_s24, %s7198_s15 }
  0x96   : > { %p7195_p5 = pnand %p7193_p9, %p7179_p2  ;;  %p7201_p1 = scmp.lt.s32.totalorder %s7199_s27, %s7192_s9 }
  0x98   : > { %p7196_p6 = pneg %p7195_p5  ;;  %p7202_p4 = por %p7201_p1, %p7200_p7 }
  0x9a   : > { %p7203_p12 = pnand %p7202_p4, %p7196_p6 }
  0x9c   : > { %7206 = shalt.err (!%p7203_p12)
}
  0x9d   : > { %s9623_s4 = smov 8   ;;  %s9624_s20 = smov 128  }
  0x9e   : > { %6636 = dma.hbm_to_vmem [thread:$0]  (!%p7650_p0), %s7646_s16, 1024, %s7654_s24, %s7656_s19, %s9624_s20, %s9624_s20, %s9623_s4  }
  0x9f   : > { %p9625_p2 = scmp.ne.s32.totalorder %s9606_s13, 0 }
  0xa1   : > { %301 = sbr.rel (%p9625_p2) target bundleno = 4266 (0x10aa), region = 44 }
  0xa8   : > { %s7690_s6 = sand.u32 1, %s7317_s25   ;;  %p9626_p11 = scmp.ne.s32.totalorder %s9602_s10, 0 }
  0xa9   : > { %s5778_s12 = sshll.u32 %s7690_s6, 6  ;;  %s304_s14 = scalar_lea.sflag [#allocation3], %s7690_s6 }
  0xaa   : > { %s7694_s18 = scalar_lea.vmem [#allocation2], %s5778_s12 }
  0xab   : > { %7280 = dma.done.wait (%p9626_p11), %s304_s14, 1024  }
  0xac   : > { %7282 = vsyncadd (%p9626_p11), %s304_s14, 4294966272  ;;  %s312_s13 = sand.u32 1, %s7453_s8   ;;  %s314_s16 = sand.u32 1, %s7305_s22  }
  0xad   : > { %s5779_s24 = sshll.u32 %s314_s16, 6  ;;  %s313_s28 = scalar_lea.sflag [#allocation6], %s312_s13 }
  0xae   : > { %s7702_s19 = scalar_lea.vmem [#allocation5], %s5779_s24  ;;  %p9627_p0 = scmp.ne.s32.totalorder %s9603_s11, 0 }
  0xb0   : > { %7284 = dma.done.wait (%p9627_p0), %s313_s28, 1024  }
  0xb1   : > { %7286 = vsyncadd (%p9627_p0), %s313_s28, 4294966272  ;;  %p9628_p3 = scmp.eq.s32.totalorder %s7453_s8, 0 }
  0xb3   : > { %7288 = dma.done.wait (%p9628_p3), [#allocation6], 512   ;;  %p9629_p10 = pmov %p9628_p3 }
  0xb4   : > { %p9630_p13 = pmov %p9628_p3 }
  0xb5   : > { %7290 = vsyncadd (%p9629_p10), [#allocation6], 4294966784 }
  0xb6   : > { %7292 = dma.done.wait (%p9630_p13), [#allocation9], 512   ;;  %p9631_p9 = pmov %p9628_p3 }
  0xb7   : > { %v7351_v0 = vmov 0   ;;  %v6753_v1 = vld [vmem:[#allocation7 + $0x4] ss:$8 sps:$4 sm:$0xff]   ;;  %v6755_v2 = vld [vmem:[#allocation7] ss:$8 sps:$4 sm:$0xff]   ;;  %vm441_vm0 = vcmask 261120  }
  0xb8   : > { %7294 = vsyncadd (%p9631_p9), [#allocation9], 4294966784  ;;  %498 = vmatprep.mubr.bf16.mxu0 %v7351_v0  ;;  %558 = vmatprep.mubr.bf16.mxu1 %v7351_v0  ;;  %v6756_v3 = vld [vmem:[#allocation7 + $0x14] ss:$8 sps:$4 sm:$0xff]   ;;  %v6758_v4 = vld [vmem:[#allocation7 + $0x10] ss:$8 sps:$4 sm:$0xff]  }
  0xb9   : > { %466 = vmatprep.subr.bf16.mxu0 %v6753_v1  ;;  %6557 = vmatprep.subr.bf16.mxu1 %v6753_v1  ;;  %v6759_v5 = vld [vmem:[%s7694_s18] sm:$0xff]   ;;  %v6764_v6 = vld [vmem:[%s7694_s18 + $0x30] sm:$0xff]   ;;  %v6760_v7 = vld [vmem:[%s7694_s18 + $0x8] sm:$0xff]   ;;  %v9555_v13 = vmov 0.0   ;;  %vm7353_vm1 = vmmov 0   ;;  %s7354_s8 = smov 64  }
  0xba   : > { %467 = vmatpush1.bf16.msra.mxu0 %v6755_v2  ;;  %6559 = vmatpush1.bf16.msra.mxu1 %v6755_v2  ;;  %v6766_v8 = vld [vmem:[%s7694_s18 + $0x38] sm:$0xff]   ;;  %v6761_v9 = vld [vmem:[%s7694_s18 + $0x10] sm:$0xff]   ;;  %v6763_v11 = vld [vmem:[%s7694_s18 + $0x20] sm:$0xff]   ;;  %s7355_s10 = smov 48   ;;  %vm722_vm2 = vcmask 130048   ;;  %s7356_s11 = smov 112  }
  0xbb   : > { %468 = vmatprep.subr.bf16.mxu0 %v6756_v3  ;;  %6558 = vmatprep.subr.bf16.mxu1 %v6756_v3  ;;  %v6762_v10 = vld [vmem:[%s7694_s18 + $0x18] sm:$0xff]   ;;  %v6765_v12 = vld [vmem:[%s7694_s18 + $0x28] sm:$0xff]   ;;  %s7357_s9 = smov 32   ;;  %s7358_s17 = smov 96  }
  0xbc   : > { %s7359_s4 = smov 80   ;;  %s7360_s20 = smov 16  }
  0xbd   : > { %s5782_s12 = sshll.u32 %s7690_s6, 7  ;;  %s9692_s16 = sld [smem:[#allocation17_spill]] }
  0xbe   : > { %469 = vmatpush1.bf16.msra.mxu0 %v6758_v4  ;;  %6560 = vmatpush1.bf16.msra.mxu1 %v6758_v4  ;;  %s9426_s13 = scalar_lea.vmem [#allocation10], %s5782_s12  ;;  %s9693_s24 = sld [smem:[#allocation18_spill]] }
  0xbf   : > { %6149 = vmatprep.subr.bf16.mxu0 %v9555_v13  ;;  %6101 = vmatprep.subr.bf16.mxu1 %v9555_v13  ;;  %s9695_s27 = sld [smem:[#allocation53_spill]]  ;;  %s5615_s12 = scalar_lea.sflag [#allocation4], %s7690_s6 }
  0xc0   : > { %s7361_s18 = smov [#allocation10]  }
  0xc1   : > { %5795 = vmatmul.mubr.msk.bf16.vlgmr.msra.gmra.mrb[0].mxu0 %vm441_vm0, %v6759_v5  ;;  %5801 = vmatmul.mubr.msk.bf16.vlgmr.msra.gmra.mrb[0].mxu1 %vm441_vm0, %v6764_v6 }
  0xc2   : > { %508 = vmatprep.mubr.bf16.mxu0 %v7351_v0  ;;  %568 = vmatprep.mubr.bf16.mxu1 %v7351_v0 }
  0xc3   : > { %s5936_s28 = sshll.u32 %s9692_s16, 4  ;;  %s7211_s16 = sshll.u32 %s7361_s18, 4  ;;  %s7212_s16 = int_to_ptr.vmem [resolvable:$false] %s7211_s16 }
  0xc9   : > { %5796 = vmatmul.mubr.msk.bf16.gmra.mrb[4].mxu0 %vm441_vm0, %v6760_v7  ;;  %5802 = vmatmul.mubr.msk.bf16.gmra.mrb[4].mxu1 %vm441_vm0, %v6766_v8 }
  0xca   : > { %518 = vmatprep.mubr.bf16.mxu0 %v7351_v0  ;;  %6103 = vmatprep.mubr.msk.bf16.mxu1 %vm7353_vm1, %v9555_v13 }
  0xd1   : > { %5797 = vmatmul.mubr.msk.bf16.gmra.mrb[8].mxu0 %vm441_vm0, %v6761_v9 }
  0xd2   : > { %528 = vmatprep.mubr.bf16.mxu0 %v7351_v0 }
  0xd9   : > { %5798 = vmatmul.mubr.msk.bf16.gmra.mrb[12].mxu0 %vm441_vm0, %v6762_v10 }
  0xda   : > { %538 = vmatprep.mubr.bf16.mxu0 %v7351_v0 }
  0xe1   : > { %5799 = vmatmul.mubr.msk.bf16.gmra.mrb[16].mxu0 %vm441_vm0, %v6763_v11 }
  0xe2   : > { %548 = vmatprep.mubr.bf16.mxu0 %v7351_v0 }
  0xe9   : > { %5800 = vmatmul.mubr.msk.bf16.gmra.mrb[20].mxu0 %vm441_vm0, %v6765_v12 }
  0xea   : > { %6151 = vmatprep.mubr.msk.bf16.mxu0 %vm7353_vm1, %v9555_v13 }
 0x194   : > { %v500_v14 = vpop.f32.mrb[0].mxu0  ;;  %v560_v15 = vpop.f32.mrb[0].mxu1 }
 0x195   : > { %v7738_v16 = vpop.f32.mrb[1].mxu0  ;;  %v7740_v17 = vpop.f32.mrb[1].mxu1 }
 0x196   : > { %9632 = vst [vmem:[#allocation23_spill] sm:$0xff] %v7740_v17  ;;  %v504_v18 = vpop.f32.mrb[2].mxu0  ;;  %v564_v19 = vpop.f32.mrb[2].mxu1 }
 0x197   : > { %v7742_v20 = vpack.c.bf16 %v504_v18, %v500_v14  ;;  %v7744_v21 = vpop.f32.mrb[3].mxu0  ;;  %v7746_v22 = vpack.c.bf16 %v564_v19, %v560_v15  ;;  %v7748_v23 = vpop.f32.mrb[3].mxu1  ;;  %v7889_v15 = vld [vmem:[%s7702_s19] sm:$0xff]  ;;  %v7892_v19 = vld [vmem:[%s7702_s19 + $0x8] sm:$0xff] }
 0x198   : > { %9634 = vst [vmem:[#allocation25_spill] sm:$0xff] %v7744_v21  ;;  %9636 = vst [vmem:[#allocation27_spill] sm:$0xff] %v7748_v23  ;;  %v7752_v24 = vpack.c.bf16 %v7744_v21, %v7738_v16  ;;  %v7756_v25 = vpack.c.bf16 %v7748_v23, %v7740_v17 }
 0x199   : > { %9633 = vst [vmem:[#allocation24_spill] sm:$0xff] %v7742_v20  ;;  %9635 = vst [vmem:[#allocation26_spill] sm:$0xff] %v7746_v22  ;;  %720 = vrot.lane.b32.xlu0 %v7742_v20, %s7354_s8 }
 0x19a   : > { %9637 = vst [vmem:[#allocation28_spill] sm:$0xff] %v7752_v24  ;;  %6150 = vmatpush3.bf16.msra.mxu0 %v7752_v24 }
 0x19b   : > { %6161 = vmatprep.subr.bf16.mxu0 %v9555_v13 }
 0x19c   : > { %v510_v26 = vpop.f32.mrb[4].mxu0  ;;  %v570_v27 = vpop.f32.mrb[4].mxu1 }
 0x19d   : > { %v7762_v28 = vpop.f32.mrb[5].mxu0  ;;  %v7764_v29 = vpop.f32.mrb[5].mxu1 }
 0x19e   : > { %9638 = vst [vmem:[#allocation29_spill] sm:$0xff] %v7764_v29  ;;  %v514_v30 = vpop.f32.mrb[6].mxu0  ;;  %v574_v31 = vpop.f32.mrb[6].mxu1 }
 0x19f   : > { %v7766_v32 = vpack.c.bf16 %v514_v30, %v510_v26  ;;  %v7768_v33 = vpop.f32.mrb[7].mxu0  ;;  %v7770_v34 = vpack.c.bf16 %v574_v31, %v570_v27  ;;  %v7772_v35 = vpop.f32.mrb[7].mxu1 }
 0x1a0   : > { %9640 = vst [vmem:[#allocation31_spill] sm:$0xff] %v7768_v33  ;;  %9642 = vst [vmem:[#allocation33_spill] sm:$0xff] %v7772_v35  ;;  %v7776_v36 = vpack.c.bf16 %v7768_v33, %v7762_v28  ;;  %v7780_v37 = vpack.c.bf16 %v7772_v35, %v7764_v29 }
 0x1a1   : > { %9639 = vst [vmem:[#allocation30_spill] sm:$0xff] %v7766_v32  ;;  %9641 = vst [vmem:[#allocation32_spill] sm:$0xff] %v7770_v34  ;;  %771 = vrot.lane.b32.xlu0 %v7766_v32, %s7354_s8 }
 0x1a2   : > { %9643 = vst [vmem:[#allocation34_spill] sm:$0xff] %v7776_v36  ;;  %9644 = vst [vmem:[#allocation35_spill] sm:$0xff] %v7780_v37 }
 0x1a4   : > { %v520_v38 = vpop.f32.mrb[8].mxu0 }
 0x1a5   : > { %v7784_v39 = vpop.f32.mrb[9].mxu0 }
 0x1a6   : > { %9645 = vst [vmem:[#allocation36_spill] sm:$0xff] %v7784_v39  ;;  %v524_v40 = vpop.f32.mrb[10].mxu0 }
 0x1a7   : > { %v7786_v41 = vpack.c.bf16 %v524_v40, %v520_v38  ;;  %v7788_v42 = vpop.f32.mrb[11].mxu0 }
 0x1a8   : > { %9646 = vst [vmem:[#allocation37_spill] sm:$0xff] %v7788_v42  ;;  %v7792_v43 = vpack.c.bf16 %v7788_v42, %v7784_v39 }
 0x1a9   : > { %821 = vrot.lane.b32.xlu1 %v7786_v41, %s7354_s8 }
 0x1aa   : > { %9647 = vst [vmem:[#allocation38_spill] sm:$0xff] %v7792_v43 }
 0x1ac   : > { %v530_v44 = vpop.f32.mrb[12].mxu0 }
 0x1ad   : > { %v7796_v45 = vpop.f32.mrb[13].mxu0 }
 0x1ae   : > { %9648 = vst [vmem:[#allocation39_spill] sm:$0xff] %v7796_v45  ;;  %v534_v46 = vpop.f32.mrb[14].mxu0 }
 0x1af   : > { %v7798_v47 = vpack.c.bf16 %v534_v46, %v530_v44  ;;  %v7800_v48 = vpop.f32.mrb[15].mxu0 }
 0x1b0   : > { %9650 = vst [vmem:[#allocation41_spill] sm:$0xff] %v7800_v48  ;;  %v7804_v49 = vpack.c.bf16 %v7800_v48, %v7796_v45 }
 0x1b1   : > { %9649 = vst [vmem:[#allocation40_spill] sm:$0xff] %v7798_v47  ;;  %871 = vrot.lane.b32.xlu1 %v7798_v47, %s7354_s8 }
 0x1b2   : > { %9651 = vst [vmem:[#allocation42_spill] sm:$0xff] %v7804_v49 }
 0x1b4   : > { %v540_v50 = vpop.f32.mrb[16].mxu0 }
 0x1b5   : > { %v7808_v51 = vpop.f32.mrb[17].mxu0 }
 0x1b6   : > { %9652 = vst [vmem:[#allocation43_spill] sm:$0xff] %v7808_v51  ;;  %v544_v52 = vpop.f32.mrb[18].mxu0 }
 0x1b7   : > { %v7810_v53 = vpack.c.bf16 %v544_v52, %v540_v50  ;;  %v7812_v54 = vpop.f32.mrb[19].mxu0 }
 0x1b8   : > { %9654 = vst [vmem:[#allocation45_spill] sm:$0xff] %v7812_v54  ;;  %v7816_v55 = vpack.c.bf16 %v7812_v54, %v7808_v51 }
 0x1b9   : > { %9653 = vst [vmem:[#allocation44_spill] sm:$0xff] %v7810_v53  ;;  %921 = vrot.lane.b32.xlu0 %v7810_v53, %s7354_s8 }
 0x1ba   : > { %9655 = vst [vmem:[#allocation46_spill] sm:$0xff] %v7816_v55 }
 0x1bc   : > { %v550_v56 = vpop.f32.mrb[20].mxu0 }
 0x1bd   : > { %v7820_v57 = vpop.f32.mrb[21].mxu0  ;;  %1021 = vrot.lane.b32.xlu0 %v7746_v22, %s7354_s8 }
 0x1be   : > { %9656 = vst [vmem:[#allocation47_spill] sm:$0xff] %v7820_v57  ;;  %v554_v58 = vpop.f32.mrb[22].mxu0 }
 0x1bf   : > { %v7824_v59 = vpack.c.bf16 %v554_v58, %v550_v56  ;;  %v7826_v60 = vpop.f32.mrb[23].mxu0 }
 0x1c0   : > { %9658 = vst [vmem:[#allocation49_spill] sm:$0xff] %v7826_v60  ;;  %v7830_v61 = vpack.c.bf16 %v7826_v60, %v7820_v57 }
 0x1c1   : > { %9657 = vst [vmem:[#allocation48_spill] sm:$0xff] %v7824_v59  ;;  %971 = vrot.lane.b32.xlu1 %v7824_v59, %s7354_s8 }
 0x1c2   : > { %9659 = vst [vmem:[#allocation50_spill] sm:$0xff] %v7830_v61 }
 0x1c5   : > { %1071 = vrot.lane.b32.xlu1 %v7770_v34, %s7354_s8 }
 0x1c9   : > { %1802 = vrot.lane.b32.xlu1 %v7766_v32, %s7355_s10 }
 0x20b   : > { %v721_v62 = vpop.permute.xlu0 %720 }
 0x20c   : > { %v727_v63 = vsel %vm722_vm2, %v721_v62, 0 }
 0x20d   : > { %6102 = vmatpush3.bf16.xpose.msra.mxu1 %v727_v63 }
 0x20e   : > { %6107 = vmatprep.subr.bf16.mxu1 %v9555_v13 }
 0x213   : > { %v772_v0 = vpop.permute.xlu0 %771 }
 0x214   : > { %v777_v1 = vsel %vm722_vm2, %v772_v0, 0  ;;  %6104 = vmatmul.mubr.msk.bf16.vlgmr.msra.gmra.mrb[8].mxu1 %vm722_vm2, %v7742_v20 }
 0x215   : > { %6108 = vmatpush3.bf16.xpose.msra.mxu1 %v777_v1  ;;  %6109 = vmatprep.mubr.msk.bf16.mxu1 %vm7353_vm1, %v9555_v13 }
 0x216   : > { %6113 = vmatprep.subr.bf16.mxu1 %v9555_v13 }
 0x21b   : > { %v822_v2 = vpop.permute.xlu1 %821 }
 0x21c   : > { %v827_v3 = vsel %vm722_vm2, %v822_v2, 0  ;;  %6110 = vmatmul.mubr.msk.bf16.vlgmr.msra.gmra.mrb[12].mxu1 %vm722_vm2, %v7766_v32 }
 0x21d   : > { %6114 = vmatpush3.bf16.xpose.msra.mxu1 %v827_v3  ;;  %6115 = vmatprep.mubr.msk.bf16.mxu1 %vm7353_vm1, %v9555_v13 }
 0x21e   : > { %6119 = vmatprep.subr.bf16.mxu1 %v9555_v13 }
 0x223   : > { %v872_v4 = vpop.permute.xlu1 %871 }
 0x224   : > { %v877_v5 = vsel %vm722_vm2, %v872_v4, 0  ;;  %6116 = vmatmul.mubr.msk.bf16.vlgmr.msra.gmra.mrb[16].mxu1 %vm722_vm2, %v7786_v41 }
 0x225   : > { %6120 = vmatpush3.bf16.xpose.msra.mxu1 %v877_v5  ;;  %6121 = vmatprep.mubr.msk.bf16.mxu1 %vm7353_vm1, %v9555_v13 }
 0x226   : > { %6125 = vmatprep.subr.bf16.mxu1 %v9555_v13 }
 0x22b   : > { %v922_v6 = vpop.permute.xlu0 %921 }
 0x22c   : > { %v927_v7 = vsel %vm722_vm2, %v922_v6, 0  ;;  %6122 = vmatmul.mubr.msk.bf16.vlgmr.msra.gmra.mrb[20].mxu1 %vm722_vm2, %v7798_v47 }
 0x22d   : > { %6126 = vmatpush3.bf16.xpose.msra.mxu1 %v927_v7  ;;  %6127 = vmatprep.mubr.msk.bf16.mxu1 %vm7353_vm1, %v9555_v13 }
 0x22e   : > { %6131 = vmatprep.subr.bf16.mxu1 %v9555_v13 }
 0x22f   : > { %v1022_v10 = vpop.permute.xlu0 %1021 }
 0x230   : > { %v1027_v11 = vsel %vm722_vm2, %v1022_v10, 0 }
 0x233   : > { %v972_v8 = vpop.permute.xlu1 %971 }
 0x234   : > { %v977_v9 = vsel %vm722_vm2, %v972_v8, 0  ;;  %6128 = vmatmul.mubr.msk.bf16.vlgmr.msra.gmra.mrb[24].mxu1 %vm722_vm2, %v7810_v53 }
 0x235   : > { %6132 = vmatpush3.bf16.xpose.msra.mxu1 %v977_v9  ;;  %6133 = vmatprep.mubr.msk.bf16.mxu1 %vm7353_vm1, %v9555_v13 }
 0x236   : > { %6137 = vmatprep.subr.bf16.mxu1 %v9555_v13 }
 0x237   : > { %v1072_v12 = vpop.permute.xlu1 %1071 }
 0x238   : > { %v1077_v14 = vsel %vm722_vm2, %v1072_v12, 0 }
 0x23c   : > { %6134 = vmatmul.mubr.msk.bf16.vlgmr.msra.gmra.mrb[28].mxu1 %vm722_vm2, %v7824_v59 }
 0x23d   : > { %6138 = vmatpush3.bf16.xpose.msra.mxu1 %v1027_v11  ;;  %6139 = vmatprep.mubr.msk.bf16.mxu1 %vm7353_vm1, %v9555_v13 }
 0x23e   : > { %6143 = vmatprep.subr.bf16.mxu1 %v9555_v13 }
 0x244   : > { %6140 = vmatmul.mubr.msk.bf16.vlgmr.msra.gmra.mrb[32].mxu1 %vm722_vm2, %v7746_v22 }
 0x245   : > { %6144 = vmatpush3.bf16.xpose.msra.mxu1 %v1077_v14  ;;  %6145 = vmatprep.mubr.msk.bf16.mxu1 %vm7353_vm1, %v9555_v13 }
 0x246   : > { %6155 = vmatprep.subr.bf16.mxu1 %v9555_v13 }
 0x24c   : > { %6146 = vmatmul.mubr.msk.bf16.vlgmr.msra.gmra.mrb[36].mxu1 %vm722_vm2, %v7770_v34 }
 0x24d   : > { %6156 = vmatpush3.bf16.msra.mxu1 %v7776_v36  ;;  %6157 = vmatprep.mubr.msk.bf16.mxu1 %vm7353_vm1, %v9555_v13 }
 0x24e   : > { %6167 = vmatprep.subr.bf16.mxu1 %v9555_v13 }
 0x2e7   : > { %v763_v18 = vpop.f32.mrb[8].mxu1 }
 0x2e8   : > { %v7895_v26 = vadd.f32 %v763_v18, %v7889_v15  ;;  %v6105_v27 = vpop.f32.mrb[9].mxu1 }
 0x2e9   : > { %v766_v30 = vpop.f32.mrb[10].mxu1 }
 0x2ea   : > { %v7898_v31 = vadd.f32 %v766_v30, %v7892_v19  ;;  %v6106_v38 = vpop.f32.mrb[11].mxu1  ;;  %v1120_v40 = vsel %vm722_vm2, %v7895_v26, -inf }
 0x2eb   : > { %1121 = vmax.xlane.f32.xlu1 %v1120_v40 }
 0x2ec   : > { %v1123_v44 = vsel %vm722_vm2, %v7898_v31, -inf }
 0x2ed   : > { %1124 = vmax.xlane.f32.xlu0 %v1123_v44 }
 0x2ef   : > { %v813_v46 = vpop.f32.mrb[12].mxu1 }
 0x2f0   : > { %v7905_v50 = vadd.f32 %v813_v46, %v7889_v15  ;;  %v6111_v52 = vpop.f32.mrb[13].mxu1 }
 0x2f1   : > { %v816_v56 = vpop.f32.mrb[14].mxu1 }
 0x2f2   : > { %v7908_v58 = vadd.f32 %v816_v56, %v7892_v19  ;;  %v6112_v62 = vpop.f32.mrb[15].mxu1  ;;  %v1126_v63 = vsel %vm722_vm2, %v7905_v50, -inf }
 0x2f3   : > { %1127 = vmax.xlane.f32.xlu0 %v1126_v63 }
 0x2f4   : > { %v1129_v0 = vsel %vm722_vm2, %v7908_v58, -inf }
 0x2f5   : > { %1130 = vmax.xlane.f32.xlu1 %v1129_v0 }
 0x2f7   : > { %v863_v1 = vpop.f32.mrb[16].mxu1 }
 0x2f8   : > { %v7915_v2 = vadd.f32 %v863_v1, %v7889_v15  ;;  %v6117_v3 = vpop.f32.mrb[17].mxu1 }
 0x2f9   : > { %v866_v4 = vpop.f32.mrb[18].mxu1 }
 0x2fa   : > { %v7918_v5 = vadd.f32 %v866_v4, %v7892_v19  ;;  %v6118_v6 = vpop.f32.mrb[19].mxu1  ;;  %v1132_v7 = vsel %vm722_vm2, %v7915_v2, -inf }
 0x2fb   : > { %1133 = vmax.xlane.f32.xlu1 %v1132_v7 }
 0x2fc   : > { %v1135_v8 = vsel %vm722_vm2, %v7918_v5, -inf }
 0x2fd   : > { %1136 = vmax.xlane.f32.xlu0 %v1135_v8 }
 0x2ff   : > { %v913_v9 = vpop.f32.mrb[20].mxu1 }
 0x300   : > { %v7925_v10 = vadd.f32 %v913_v9, %v7889_v15  ;;  %v6123_v11 = vpop.f32.mrb[21].mxu1 }
 0x301   : > { %v916_v12 = vpop.f32.mrb[22].mxu1 }
 0x302   : > { %v7928_v14 = vadd.f32 %v916_v12, %v7892_v19  ;;  %v6124_v18 = vpop.f32.mrb[23].mxu1  ;;  %v1138_v27 = vsel %vm722_vm2, %v7925_v10, -inf }
 0x303   : > { %1139 = vmax.xlane.f32.xlu0 %v1138_v27 }
 0x304   : > { %v1141_v30 = vsel %vm722_vm2, %v7928_v14, -inf }
 0x307   : > { %1142 = vmax.xlane.f32.xlu0 %v1141_v30  ;;  %v963_v38 = vpop.f32.mrb[24].mxu1 }
 0x308   : > { %v7935_v40 = vadd.f32 %v963_v38, %v7889_v15  ;;  %v6129_v44 = vpop.f32.mrb[25].mxu1 }
 0x309   : > { %v966_v46 = vpop.f32.mrb[26].mxu1 }
 0x30a   : > { %v7938_v52 = vadd.f32 %v966_v46, %v7892_v19  ;;  %v6130_v56 = vpop.f32.mrb[27].mxu1  ;;  %v1144_v62 = vsel %vm722_vm2, %v7935_v40, -inf }
 0x30b   : > { %1145 = vmax.xlane.f32.xlu1 %v1144_v62 }
 0x30c   : > { %v1147_v63 = vsel %vm722_vm2, %v7938_v52, -inf }
 0x30d   : > { %1148 = vmax.xlane.f32.xlu0 %v1147_v63 }
 0x30f   : > { %v1013_v0 = vpop.f32.mrb[28].mxu1 }
 0x310   : > { %v7945_v1 = vadd.f32 %v1013_v0, %v7889_v15  ;;  %v6135_v3 = vpop.f32.mrb[29].mxu1 }
 0x311   : > { %v1016_v4 = vpop.f32.mrb[30].mxu1 }
 0x312   : > { %v7948_v6 = vadd.f32 %v1016_v4, %v7892_v19  ;;  %v6136_v7 = vpop.f32.mrb[31].mxu1  ;;  %v1150_v8 = vsel %vm722_vm2, %v7945_v1, -inf }
 0x313   : > { %1151 = vmax.xlane.f32.xlu1 %v1150_v8 }
 0x314   : > { %v1153_v9 = vsel %vm722_vm2, %v7948_v6, -inf }
 0x315   : > { %1154 = vmax.xlane.f32.xlu0 %v1153_v9 }
 0x317   : > { %v1063_v11 = vpop.f32.mrb[32].mxu1 }
 0x318   : > { %v7955_v12 = vadd.f32 %v1063_v11, %v7889_v15  ;;  %v6141_v18 = vpop.f32.mrb[33].mxu1 }
 0x319   : > { %v1066_v27 = vpop.f32.mrb[34].mxu1 }
 0x31a   : > { %v7958_v30 = vadd.f32 %v1066_v27, %v7892_v19  ;;  %v6142_v38 = vpop.f32.mrb[35].mxu1  ;;  %v1156_v44 = vsel %vm722_vm2, %v7955_v12, -inf }
 0x31b   : > { %1157 = vmax.xlane.f32.xlu1 %v1156_v44 }
 0x31c   : > { %v1159_v46 = vsel %vm722_vm2, %v7958_v30, -inf }
 0x31d   : > { %1160 = vmax.xlane.f32.xlu0 %v1159_v46 }
 0x31f   : > { %v1113_v56 = vpop.f32.mrb[36].mxu1 }
 0x320   : > { %v7965_v62 = vadd.f32 %v1113_v56, %v7889_v15  ;;  %v6147_v63 = vpop.f32.mrb[37].mxu1  ;;  %v7980_v15 = vpop.permute.xlu1 %1802 }
 0x321   : > { %v1116_v0 = vpop.f32.mrb[38].mxu1 }
 0x322   : > { %v7968_v3 = vadd.f32 %v1116_v0, %v7892_v19  ;;  %v6148_v4 = vpop.f32.mrb[39].mxu1  ;;  %v1162_v7 = vsel %vm722_vm2, %v7965_v62, -inf }
 0x323   : > { %1163 = vmax.xlane.f32.xlu1 %v1162_v7 }
 0x324   : > { %v1165_v8 = vsel %vm722_vm2, %v7968_v3, -inf }
 0x325   : > { %1166 = vmax.xlane.f32.xlu0 %v1165_v8 }
 0x334   : > { %1904 = vrot.lane.b32.xlu1 %v7798_v47, %s7355_s10 }
 0x338   : > { %1902 = vrot.lane.b32.xlu1 %v7798_v47, %s7356_s11 }
 0x33b   : > { %1800 = vrot.lane.b32.xlu0 %v7766_v32, %s7356_s11 }
 0x378   : > { %v1122_v19 = vpop.xlane.xlu1 %1121 }
 0x379   : > { %v1168_v9 = vsub.f32 %v7895_v26, %v1122_v19 }
 0x37a   : > { %v1125_v11 = vpop.xlane.xlu0 %1124 }
 0x37b   : > { %v1184_v18 = vmul.f32 1.442695, %v1168_v9  ;;  %v1169_v27 = vsub.f32 %v7898_v31, %v1125_v11 }
 0x37d   : > { %6771 = vpow2.f32 %v1184_v18  ;;  %v1186_v38 = vmul.f32 1.442695, %v1169_v27 }
 0x37f   : > { %6773 = vpow2.f32 %v1186_v38 }
 0x380   : > { %v1128_v44 = vpop.xlane.xlu0 %1127 }
 0x381   : > { %v1170_v46 = vsub.f32 %v7905_v50, %v1128_v44 }
 0x382   : > { %v1131_v56 = vpop.xlane.xlu1 %1130 }
 0x383   : > { %v1188_v63 = vmul.f32 1.442695, %v1170_v46  ;;  %v1171_v0 = vsub.f32 %v7908_v58, %v1131_v56 }
 0x385   : > { %6775 = vpow2.f32 %v1188_v63  ;;  %v1190_v4 = vmul.f32 1.442695, %v1171_v0 }
 0x387   : > { %v7986_v7 = vpop.eup %6771  ;;  %6777 = vpow2.f32 %v1190_v4 }
 0x388   : > { %v1134_v26 = vpop.xlane.xlu1 %1133  ;;  %v1216_v8 = vsel %vm722_vm2, %v7986_v7, 0.0 }
 0x389   : > { %v7990_v31 = vpop.eup %6773  ;;  %v1172_v19 = vsub.f32 %v7915_v2, %v1134_v26  ;;  %1217 = vadd.xlane.f32.xlu0 %v1216_v8 }
 0x38a   : > { %v1137_v9 = vpop.xlane.xlu0 %1136  ;;  %v1219_v58 = vsel %vm722_vm2, %v7990_v31, 0.0 }
 0x38b   : > { %v1192_v50 = vmul.f32 1.442695, %v1172_v19  ;;  %v1173_v11 = vsub.f32 %v7918_v5, %v1137_v9 }
 0x38d   : > { %6779 = vpow2.f32 %v1192_v50  ;;  %v1194_v18 = vmul.f32 1.442695, %v1173_v11  ;;  %1220 = vadd.xlane.f32.xlu0 %v1219_v58 }
 0x38f   : > { %v7996_v27 = vpop.eup %6775  ;;  %6781 = vpow2.f32 %v1194_v18 }
 0x390   : > { %v1140_v38 = vpop.xlane.xlu0 %1139  ;;  %v1222_v44 = vsel %vm722_vm2, %v7996_v27, 0.0 }
 0x391   : > { %v8000_v46 = vpop.eup %6777  ;;  %v1174_v2 = vsub.f32 %v7925_v10, %v1140_v38  ;;  %1223 = vadd.xlane.f32.xlu1 %v1222_v44 }
 0x392   : > { %v1225_v5 = vsel %vm722_vm2, %v8000_v46, 0.0 }
 0x393   : > { %v1196_v56 = vmul.f32 1.442695, %v1174_v2  ;;  %1226 = vadd.xlane.f32.xlu0 %v1225_v5 }
 0x394   : > { %v1143_v63 = vpop.xlane.xlu0 %1142 }
 0x395   : > { %6783 = vpow2.f32 %v1196_v56  ;;  %v1175_v0 = vsub.f32 %v7928_v14, %v1143_v63 }
 0x397   : > { %v8006_v4 = vpop.eup %6779  ;;  %v1198_v26 = vmul.f32 1.442695, %v1175_v0 }
 0x398   : > { %v1228_v8 = vsel %vm722_vm2, %v8006_v4, 0.0  ;;  %v1146_v9 = vpop.xlane.xlu1 %1145 }
 0x399   : > { %v8010_v19 = vpop.eup %6781  ;;  %6785 = vpow2.f32 %v1198_v26  ;;  %1229 = vadd.xlane.f32.xlu1 %v1228_v8  ;;  %v1176_v50 = vsub.f32 %v7935_v40, %v1146_v9 }
 0x39a   : > { %v1231_v10 = vsel %vm722_vm2, %v8010_v19, 0.0  ;;  %v1149_v11 = vpop.xlane.xlu0 %1148 }
 0x39b   : > { %1232 = vadd.xlane.f32.xlu0 %v1231_v10  ;;  %v1200_v44 = vmul.f32 1.442695, %v1176_v50 }
 0x39f   : > { %v8015_v58 = vpop.eup %6783 }
 0x3a0   : > { %v1152_v14 = vpop.xlane.xlu1 %1151  ;;  %v1234_v18 = vsel %vm722_vm2, %v8015_v58, 0.0 }
 0x3a1   : > { %v1178_v38 = vsub.f32 %v7945_v1, %v1152_v14  ;;  %1235 = vadd.xlane.f32.xlu1 %v1234_v18 }
 0x3a2   : > { %v1155_v2 = vpop.xlane.xlu0 %1154 }
 0x3a3   : > { %v8020_v5 = vpop.eup %6785  ;;  %v1204_v56 = vmul.f32 1.442695, %v1178_v38  ;;  %v1179_v63 = vsub.f32 %v7948_v6, %v1155_v2 }
 0x3a4   : > { %v1237_v40 = vsel %vm722_vm2, %v8020_v5, 0.0 }
 0x3a5   : > { %6787 = vpow2.f32 %v1204_v56  ;;  %v1206_v0 = vmul.f32 1.442695, %v1179_v63  ;;  %1238 = vadd.xlane.f32.xlu0 %v1237_v40  ;;  %v1177_v40 = vsub.f32 %v7938_v52, %v1149_v11 }
 0x3a6   : > { %6789 = vpow2.f32 %v1200_v44 }
 0x3a7   : > { %6791 = vpow2.f32 %v1206_v0 }
 0x3a8   : > { %v1158_v26 = vpop.xlane.xlu1 %1157 }
 0x3af   : > { %v8025_v8 = vpop.eup %6787 }
 0x3b0   : > { %v8027_v1 = vpop.eup %6789  ;;  %v1164_v10 = vpop.xlane.xlu1 %1163  ;;  %v1246_v9 = vsel %vm722_vm2, %v8025_v8, 0.0 }
 0x3b1   : > { %v8031_v50 = vpop.eup %6791  ;;  %v1182_v6 = vsub.f32 %v7965_v62, %v1164_v10  ;;  %1247 = vadd.xlane.f32.xlu1 %v1246_v9  ;;  %v1240_v38 = vsel %vm722_vm2, %v8027_v1, 0.0  ;;  %v1161_v62 = vpop.xlane.xlu0 %1160  ;;  %v1202_v10 = vmul.f32 1.442695, %v1177_v40  ;;  %v1180_v9 = vsub.f32 %v7955_v12, %v1158_v26 }
 0x3b2   : > { %v1249_v14 = vsel %vm722_vm2, %v8031_v50, 0.0  ;;  %v1181_v12 = vsub.f32 %v7958_v30, %v1161_v62 }
 0x3b3   : > { %v1212_v18 = vmul.f32 1.442695, %v1182_v6  ;;  %1250 = vadd.xlane.f32.xlu0 %v1249_v14  ;;  %v1208_v14 = vmul.f32 1.442695, %v1180_v9 }
 0x3b4   : > { %v1210_v26 = vmul.f32 1.442695, %v1181_v12 }
 0x3b5   : > { %6793 = vpow2.f32 %v1212_v18  ;;  %1241 = vadd.xlane.f32.xlu1 %v1240_v38  ;;  %v1167_v56 = vpop.xlane.xlu0 %1166 }
 0x3b6   : > { %v1183_v63 = vsub.f32 %v7968_v3, %v1167_v56  ;;  %v8074_v56 = vpop.permute.xlu1 %1904 }
 0x3b8   : > { %v1214_v0 = vmul.f32 1.442695, %v1183_v63 }
 0x3ba   : > { %6795 = vpow2.f32 %v1214_v0  ;;  %v8078_v30 = vpop.permute.xlu1 %1902 }
 0x3bb   : > { %6797 = vpow2.f32 %v1202_v10 }
 0x3bc   : > { %6799 = vpow2.f32 %v1208_v14 }
 0x3bd   : > { %6801 = vpow2.f32 %v1210_v26 }
 0x3bf   : > { %v8038_v44 = vpop.eup %6793 }
 0x3c0   : > { %v1258_v2 = vsel %vm722_vm2, %v8038_v44, 0.0 }
 0x3c1   : > { %1259 = vadd.xlane.f32.xlu1 %v1258_v2  ;;  %v8070_v2 = vpop.permute.xlu0 %1800 }
 0x3c4   : > { %v8049_v6 = vpop.eup %6795 }
 0x3c5   : > { %v1261_v18 = vsel %vm722_vm2, %v8049_v6, 0.0  ;;  %v8053_v38 = vpop.eup %6797 }
 0x3c6   : > { %v1243_v3 = vsel %vm722_vm2, %v8053_v38, 0.0  ;;  %v8057_v52 = vpop.eup %6799 }
 0x3c7   : > { %v1252_v11 = vsel %vm722_vm2, %v8057_v52, 0.0  ;;  %v8082_v40 = vpop.eup %6801 }
 0x3c8   : > { %v1255_v9 = vsel %vm722_vm2, %v8082_v40, 0.0 }
 0x3c9   : > { %2006 = vrot.lane.b32.xlu0 %v7824_v59, %s7355_s10 }
 0x3d2   : > { %2004 = vrot.lane.b32.xlu1 %v7824_v59, %s7356_s11 }
 0x3e8   : > { %1262 = vadd.xlane.f32.xlu0 %v1261_v18 }
 0x3ec   : > { %1244 = vadd.xlane.f32.xlu0 %v1243_v3 }
 0x3f6   : > { %1253 = vadd.xlane.f32.xlu1 %v1252_v11 }
 0x402   : > { %2108 = vrot.lane.b32.xlu0 %v7770_v34, %s7355_s10 }
 0x407   : > { %2106 = vrot.lane.b32.xlu1 %v7770_v34, %s7356_s11 }
 0x40b   : > { %1749 = vrot.lane.b32.xlu1 %v7742_v20, %s7356_s11 }
 0x40f   : > { %1853 = vrot.lane.b32.xlu1 %v7786_v41, %s7355_s10 }
 0x413   : > { %1851 = vrot.lane.b32.xlu1 %v7786_v41, %s7356_s11 }
 0x416   : > { %v1218_v63 = vpop.xlane.xlu0 %1217 }
 0x417   : > { %1953 = vrot.lane.b32.xlu1 %v7810_v53, %s7356_s11  ;;  %6803 = vrcp.f32 %v1218_v63 }
 0x41a   : > { %v1221_v62 = vpop.xlane.xlu0 %1220 }
 0x41b   : > { %6805 = vrcp.f32 %v1221_v62  ;;  %2055 = vrot.lane.b32.xlu1 %v7746_v22, %s7356_s11 }
 0x41e   : > { %v1224_v0 = vpop.xlane.xlu1 %1223 }
 0x41f   : > { %6807 = vrcp.f32 %v1224_v0  ;;  %2390 = vrot.lane.b32.xlu1 %v7776_v36, %s7356_s11 }
 0x420   : > { %v1227_v10 = vpop.xlane.xlu0 %1226 }
 0x421   : > { %6809 = vrcp.f32 %v1227_v10  ;;  %1256 = vadd.xlane.f32.xlu0 %v1255_v9  ;;  %v6804_v14 = vpop.eup %6803 }
 0x422   : > { %v1280_v3 = vmul.f32 %v6804_v14, %v7986_v7 }
 0x423   : > { %2582 = vrot.lane.b32.xlu1 %v7830_v61, %s7356_s11 }
 0x425   : > { %v6806_v18 = vpop.eup %6805 }
 0x426   : > { %v1281_v11 = vmul.f32 %v6806_v18, %v7990_v31  ;;  %v1230_v12 = vpop.xlane.xlu1 %1229 }
 0x427   : > { %6811 = vrcp.f32 %v1230_v12  ;;  %2678 = vrot.lane.b32.xlu1 %v7780_v37, %s7356_s11 }
 0x428   : > { %v1296_v26 = vpack.c.bf16 %v1281_v11, %v1280_v3  ;;  %v1233_v63 = vpop.xlane.xlu0 %1232 }
 0x429   : > { %v6808_v62 = vpop.eup %6807  ;;  %6813 = vrcp.f32 %v1233_v63 }
 0x42a   : > { %6152 = vmatmul.mubr.msk.bf16.vlgmr.msra.gmra.mrb[24].mxu0 %vm722_vm2, %v1296_v26  ;;  %v1282_v7 = vmul.f32 %v6808_v62, %v7996_v27 }
 0x42b   : > { %v6810_v0 = vpop.eup %6809  ;;  %6162 = vmatpush3.bf16.msra.mxu0 %v7792_v43  ;;  %3174 = vrot.lane.b32.xlu1 %v7766_v32, %s7357_s9 }
 0x42c   : > { %v1283_v31 = vmul.f32 %v6810_v0, %v8000_v46  ;;  %6163 = vmatprep.mubr.msk.bf16.mxu0 %vm7353_vm1, %v9555_v13  ;;  %6173 = vmatprep.subr.bf16.mxu0 %v9555_v13 }
 0x42e   : > { %v1236_v10 = vpop.xlane.xlu1 %1235  ;;  %v1297_v9 = vpack.c.bf16 %v1283_v31, %v1282_v7 }
 0x42f   : > { %6815 = vrcp.f32 %v1236_v10 }
 0x430   : > { %6158 = vmatmul.mubr.msk.bf16.vlgmr.msra.gmra.mrb[40].mxu1 %vm722_vm2, %v1297_v9 }
 0x431   : > { %v6812_v14 = vpop.eup %6811  ;;  %6168 = vmatpush3.bf16.msra.mxu1 %v7804_v49  ;;  %6169 = vmatprep.mubr.msk.bf16.mxu1 %vm7353_vm1, %v9555_v13 }
 0x432   : > { %v1239_v18 = vpop.xlane.xlu0 %1238  ;;  %6179 = vmatprep.subr.bf16.mxu1 %v9555_v13  ;;  %v1284_v46 = vmul.f32 %v6812_v14, %v8006_v4 }
 0x433   : > { %v6814_v27 = vpop.eup %6813  ;;  %6817 = vrcp.f32 %v1239_v18 }
 0x434   : > { %v1285_v3 = vmul.f32 %v6814_v27, %v8010_v19 }
 0x436   : > { %v1298_v11 = vpack.c.bf16 %v1285_v3, %v1284_v46 }
 0x437   : > { %1751 = vrot.lane.b32.xlu0 %v7742_v20, %s7355_s10 }
 0x438   : > { %6164 = vmatmul.mubr.msk.bf16.vlgmr.msra.gmra.mrb[28].mxu0 %vm722_vm2, %v1298_v11 }
 0x439   : > { %6174 = vmatpush3.bf16.msra.mxu0 %v7816_v55  ;;  %6175 = vmatprep.mubr.msk.bf16.mxu0 %vm7353_vm1, %v9555_v13  ;;  %v6816_v12 = vpop.eup %6815 }
 0x43a   : > { %6185 = vmatprep.subr.bf16.mxu0 %v9555_v13  ;;  %v1286_v19 = vmul.f32 %v6816_v12, %v8015_v58 }
 0x43b   : > { %1955 = vrot.lane.b32.xlu0 %v7810_v53, %s7355_s10 }
 0x43d   : > { %v6818_v4 = vpop.eup %6817 }
 0x43e   : > { %v1287_v26 = vmul.f32 %v6818_v4, %v8020_v5  ;;  %v1248_v63 = vpop.xlane.xlu1 %1247 }
 0x43f   : > { %6819 = vrcp.f32 %v1248_v63  ;;  %2057 = vrot.lane.b32.xlu0 %v7746_v22, %s7355_s10 }
 0x440   : > { %v1251_v62 = vpop.xlane.xlu0 %1250  ;;  %v1299_v0 = vpack.c.bf16 %v1287_v26, %v1286_v19 }
 0x441   : > { %6821 = vrcp.f32 %v1251_v62  ;;  %v1808_v62 = vsel %vm722_vm2, %v7980_v15, 0 }
 0x442   : > { %6170 = vmatmul.mubr.msk.bf16.vlgmr.msra.gmra.mrb[44].mxu1 %vm722_vm2, %v1299_v0  ;;  %v1242_v9 = vpop.xlane.xlu1 %1241 }
 0x443   : > { %6180 = vmatpush3.bf16.msra.mxu1 %v7830_v61  ;;  %2486 = vrot.lane.b32.xlu0 %v7804_v49, %s7356_s11  ;;  %v5837_v61 = vld [vmem:[%s7702_s19 + $0x18] sm:$0xff] }
 0x444   : > { %6181 = vmatprep.mubr.msk.bf16.mxu1 %vm7353_vm1, %v9555_v13  ;;  %6191 = vmatprep.subr.bf16.mxu1 %v9555_v13  ;;  %v2007_v14 = vpop.permute.xlu0 %2006 }
 0x447   : > { %3123 = vrot.lane.b32.xlu0 %v7742_v20, %s7357_s9 }
 0x449   : > { %v6820_v58 = vpop.eup %6819 }
 0x44a   : > { %v1290_v7 = vmul.f32 %v6820_v58, %v8025_v8 }
 0x44b   : > { %v6822_v5 = vpop.eup %6821  ;;  %3121 = vrot.lane.b32.xlu0 %v7742_v20, %s7358_s17  ;;  %v5836_v20 = vld [vmem:[%s7702_s19 + $0x10] sm:$0xff] }
 0x44c   : > { %v1291_v31 = vmul.f32 %v6822_v5, %v8031_v50 }
 0x44e   : > { %v1301_v10 = vpack.c.bf16 %v1291_v31, %v1290_v7  ;;  %v1260_v18 = vpop.xlane.xlu1 %1259  ;;  %v2012_v7 = vsel %vm722_vm2, %v2007_v14, 0 }
 0x44f   : > { %6823 = vrcp.f32 %v1260_v18 }
 0x450   : > { %6182 = vmatmul.mubr.msk.bf16.vlgmr.msra.gmra.mrb[48].mxu1 %vm722_vm2, %v1301_v10 }
 0x451   : > { %6192 = vmatpush3.bf16.msra.mxu1 %v7780_v37  ;;  %6193 = vmatprep.mubr.msk.bf16.mxu1 %vm7353_vm1, %v9555_v13 }
 0x452   : > { %6203 = vmatprep.subr.bf16.mxu1 %v9555_v13  ;;  %v2005_v46 = vpop.permute.xlu1 %2004 }
 0x459   : > { %v6824_v50 = vpop.eup %6823 }
 0x45a   : > { %v1294_v11 = vmul.f32 %v6824_v50, %v8038_v44 }
 0x475   : > { %v1263_v27 = vpop.xlane.xlu0 %1262 }
 0x476   : > { %6825 = vrcp.f32 %v1263_v27 }
 0x477   : > { %6827 = vrcp.f32 %v1242_v9 }
 0x479   : > { %v1245_v8 = vpop.xlane.xlu0 %1244 }
 0x47a   : > { %6829 = vrcp.f32 %v1245_v8 }
 0x480   : > { %v6826_v3 = vpop.eup %6825 }
 0x481   : > { %v1295_v12 = vmul.f32 %v6826_v3, %v8049_v6  ;;  %v6828_v4 = vpop.eup %6827 }
 0x482   : > { %v1288_v0 = vmul.f32 %v6828_v4, %v8027_v1  ;;  %v1910_v1 = vsel %vm722_vm2, %v8074_v56, 0  ;;  %v2109_v56 = vpop.permute.xlu0 %2108 }
 0x483   : > { %v1254_v19 = vpop.xlane.xlu1 %1253  ;;  %v1303_v26 = vpack.c.bf16 %v1295_v12, %v1294_v11  ;;  %v2114_v31 = vsel %vm722_vm2, %v2109_v56, 0 }
 0x484   : > { %v6830_v63 = vpop.eup %6829  ;;  %6831 = vrcp.f32 %v1254_v19 }
 0x485   : > { %v1289_v58 = vmul.f32 %v6830_v63, %v8053_v38  ;;  %6194 = vmatmul.mubr.msk.bf16.vlgmr.msra.gmra.mrb[52].mxu1 %vm722_vm2, %v1303_v26 }
 0x486   : > { %6204 = vmatpush3.bf16.xpose.msra.mxu1 %v1808_v62  ;;  %6205 = vmatprep.mubr.msk.bf16.mxu1 %vm7353_vm1, %v9555_v13 }
 0x487   : > { %v2107_v44 = vpop.permute.xlu1 %2106  ;;  %v1300_v5 = vpack.c.bf16 %v1289_v58, %v1288_v0  ;;  %6215 = vmatprep.subr.bf16.mxu1 %v9555_v13 }
 0x489   : > { %6176 = vmatmul.mubr.msk.bf16.vlgmr.msra.gmra.mrb[32].mxu0 %vm722_vm2, %v1300_v5 }
 0x48a   : > { %6186 = vmatpush3.bf16.msra.mxu0 %v7756_v25  ;;  %6187 = vmatprep.mubr.msk.bf16.mxu0 %vm7353_vm1, %v9555_v13 }
 0x48b   : > { %v1750_v15 = vpop.permute.xlu1 %1749  ;;  %6197 = vmatprep.subr.bf16.mxu0 %v9555_v13 }
 0x48d   : > { %6206 = vmatmul.mubr.msk.bf16.vlgmr.msra.gmra.mrb[56].mxu1 %vm722_vm2, %v8070_v2 }
 0x48e   : > { %6216 = vmatpush3.bf16.xpose.msra.mxu1 %v1910_v1  ;;  %6217 = vmatprep.mubr.msk.bf16.mxu1 %vm7353_vm1, %v9555_v13  ;;  %v6832_v14 = vpop.eup %6831 }
 0x48f   : > { %v1854_v6 = vpop.permute.xlu1 %1853  ;;  %6227 = vmatprep.subr.bf16.mxu1 %v9555_v13  ;;  %v1292_v27 = vmul.f32 %v6832_v14, %v8057_v52 }
 0x490   : > { %v1859_v11 = vsel %vm722_vm2, %v1854_v6, 0 }
 0x493   : > { %v1852_v38 = vpop.permute.xlu1 %1851 }
 0x495   : > { %6218 = vmatmul.mubr.msk.bf16.vlgmr.msra.gmra.mrb[60].mxu1 %vm722_vm2, %v8078_v30 }
 0x496   : > { %6228 = vmatpush3.bf16.xpose.msra.mxu1 %v2012_v7  ;;  %6229 = vmatprep.mubr.msk.bf16.mxu1 %vm7353_vm1, %v9555_v13 }
 0x497   : > { %6239 = vmatprep.subr.bf16.mxu1 %v9555_v13  ;;  %v1954_v2 = vpop.permute.xlu1 %1953 }
 0x49b   : > { %v2056_v10 = vpop.permute.xlu1 %2055 }
 0x49d   : > { %6230 = vmatmul.mubr.msk.bf16.vlgmr.msra.gmra.mrb[64].mxu1 %vm722_vm2, %v2005_v46 }
 0x49e   : > { %6240 = vmatpush3.bf16.xpose.msra.mxu1 %v2114_v31  ;;  %6241 = vmatprep.mubr.msk.bf16.mxu1 %vm7353_vm1, %v9555_v13 }
 0x49f   : > { %6251 = vmatprep.subr.bf16.mxu1 %v9555_v13  ;;  %v2391_v30 = vpop.permute.xlu1 %2390 }
 0x4a5   : > { %6242 = vmatmul.mubr.msk.bf16.vlgmr.msra.gmra.mrb[68].mxu1 %vm722_vm2, %v2107_v44 }
 0x4a6   : > { %6252 = vmatpush3.bf16.msra.mxu1 %v2391_v30  ;;  %6253 = vmatprep.mubr.msk.bf16.mxu1 %vm7353_vm1, %v9555_v13 }
 0x4a7   : > { %6263 = vmatprep.subr.bf16.mxu1 %v9555_v13 }
 0x4ae   : > { %v1257_v9 = vpop.xlane.xlu0 %1256 }
 0x4af   : > { %6833 = vrcp.f32 %v1257_v9 }
 0x4b2   : > { %v1752_v50 = vpop.permute.xlu0 %1751 }
 0x4b3   : > { %v1757_v3 = vsel %vm722_vm2, %v1752_v50, 0 }
 0x4b6   : > { %v1956_v52 = vpop.permute.xlu0 %1955 }
 0x4b9   : > { %v6834_v18 = vpop.eup %6833 }
 0x4ba   : > { %v1293_v8 = vmul.f32 %v6834_v18, %v8082_v40  ;;  %v1961_v40 = vsel %vm722_vm2, %v1956_v52, 0  ;;  %v2058_v12 = vpop.permute.xlu0 %2057 }
 0x4bb   : > { %v2063_v4 = vsel %vm722_vm2, %v2058_v12, 0 }
 0x4bc   : > { %v1302_v46 = vpack.c.bf16 %v1293_v8, %v1292_v27 }
 0x4be   : > { %6188 = vmatmul.mubr.msk.bf16.vlgmr.msra.gmra.mrb[36].mxu0 %vm722_vm2, %v1302_v46 }
 0x4bf   : > { %6198 = vmatpush3.bf16.xpose.msra.mxu0 %v1757_v3  ;;  %6199 = vmatprep.mubr.msk.bf16.mxu0 %vm7353_vm1, %v9555_v13 }
 0x4c0   : > { %6209 = vmatprep.subr.bf16.mxu0 %v9555_v13 }
 0x4c6   : > { %6200 = vmatmul.mubr.msk.bf16.vlgmr.msra.gmra.mrb[40].mxu0 %vm722_vm2, %v1750_v15 }
 0x4c7   : > { %6210 = vmatpush3.bf16.xpose.msra.mxu0 %v1859_v11  ;;  %6211 = vmatprep.mubr.msk.bf16.mxu0 %vm7353_vm1, %v9555_v13 }
 0x4c8   : > { %6221 = vmatprep.subr.bf16.mxu0 %v9555_v13 }
 0x4ce   : > { %6212 = vmatmul.mubr.msk.bf16.vlgmr.msra.gmra.mrb[44].mxu0 %vm722_vm2, %v1852_v38 }
 0x4cf   : > { %6222 = vmatpush3.bf16.xpose.msra.mxu0 %v1961_v40  ;;  %6223 = vmatprep.mubr.msk.bf16.mxu0 %vm7353_vm1, %v9555_v13 }
 0x4d0   : > { %6233 = vmatprep.subr.bf16.mxu0 %v9555_v13 }
 0x4d6   : > { %6224 = vmatmul.mubr.msk.bf16.vlgmr.msra.gmra.mrb[48].mxu0 %vm722_vm2, %v1954_v2 }
 0x4d7   : > { %6234 = vmatpush3.bf16.xpose.msra.mxu0 %v2063_v4  ;;  %6235 = vmatprep.mubr.msk.bf16.mxu0 %vm7353_vm1, %v9555_v13 }
 0x4d8   : > { %6245 = vmatprep.subr.bf16.mxu0 %v9555_v13 }
 0x4de   : > { %6236 = vmatmul.mubr.msk.bf16.vlgmr.msra.gmra.mrb[52].mxu0 %vm722_vm2, %v2056_v10 }
 0x4df   : > { %6247 = vmatprep.mubr.msk.bf16.mxu0 %vm7353_vm1, %v9555_v13 }
 0x4fd   : > { %v8203_v19 = vpop.f32.mrb[24].mxu0 }
 0x4fe   : > { %v6153_v26 = vpop.f32.mrb[25].mxu0 }
 0x4ff   : > { %v8205_v63 = vpop.f32.mrb[26].mxu0 }
 0x500   : > { %v6154_v62 = vpop.f32.mrb[27].mxu0 }
 0x503   : > { %v8207_v0 = vpop.f32.mrb[40].mxu1 }
 0x504   : > { %v6159_v58 = vpop.f32.mrb[41].mxu1 }
 0x505   : > { %v8209_v44 = vpop.f32.mrb[42].mxu1 }
 0x506   : > { %v6160_v5 = vpop.f32.mrb[43].mxu1 }
 0x50b   : > { %v8211_v15 = vpop.f32.mrb[28].mxu0 }
 0x50c   : > { %v6165_v1 = vpop.f32.mrb[29].mxu0 }
 0x50d   : > { %v8213_v6 = vpop.f32.mrb[30].mxu0 }
 0x50e   : > { %v6166_v38 = vpop.f32.mrb[31].mxu0 }
 0x515   : > { %v8215_v7 = vpop.f32.mrb[44].mxu1 }
 0x516   : > { %v6171_v2 = vpop.f32.mrb[45].mxu1 }
 0x517   : > { %v8217_v56 = vpop.f32.mrb[46].mxu1 }
 0x518   : > { %v6172_v31 = vpop.f32.mrb[47].mxu1 }
 0x523   : > { %v8219_v10 = vpop.f32.mrb[48].mxu1 }
 0x524   : > { %v6183_v30 = vpop.f32.mrb[49].mxu1 }
 0x525   : > { %v8221_v9 = vpop.f32.mrb[50].mxu1 }
 0x526   : > { %v6184_v14 = vpop.f32.mrb[51].mxu1 }
 0x558   : > { %v8223_v18 = vpop.f32.mrb[52].mxu1 }
 0x559   : > { %v6195_v27 = vpop.f32.mrb[53].mxu1 }
 0x55a   : > { %v8225_v8 = vpop.f32.mrb[54].mxu1 }
 0x55b   : > { %v6196_v50 = vpop.f32.mrb[55].mxu1 }
 0x55c   : > { %v8227_v46 = vpop.f32.mrb[32].mxu0 }
 0x55d   : > { %v6177_v3 = vpop.f32.mrb[33].mxu0 }
 0x55e   : > { %v8229_v11 = vpop.f32.mrb[34].mxu0 }
 0x55f   : > { %v6178_v52 = vpop.f32.mrb[35].mxu0 }
 0x560   : > { %v1844_v40 = vpop.f32.mrb[56].mxu1 }
 0x561   : > { %v6207_v12 = vpop.f32.mrb[57].mxu1 }
 0x562   : > { %v1847_v4 = vpop.f32.mrb[58].mxu1 }
 0x563   : > { %v6208_v26 = vpop.f32.mrb[59].mxu1 }
 0x568   : > { %v1946_v62 = vpop.f32.mrb[60].mxu1 }
 0x569   : > { %v6219_v58 = vpop.f32.mrb[61].mxu1  ;;  %v8259_v23 = vadd.f32 %v5836_v20, %v1946_v62 }
 0x56a   : > { %v1949_v5 = vpop.f32.mrb[62].mxu1 }
 0x56b   : > { %v6220_v1 = vpop.f32.mrb[63].mxu1 }
 0x570   : > { %v2048_v38 = vpop.f32.mrb[64].mxu1 }
 0x571   : > { %v6231_v2 = vpop.f32.mrb[65].mxu1  ;;  %v8271_v62 = vadd.f32 %v5836_v20, %v2048_v38 }
 0x572   : > { %v2051_v31 = vpop.f32.mrb[66].mxu1 }
 0x573   : > { %v6232_v30 = vpop.f32.mrb[67].mxu1 }
 0x578   : > { %v2150_v14 = vpop.f32.mrb[68].mxu1 }
 0x579   : > { %v6243_v27 = vpop.f32.mrb[69].mxu1 }
 0x57a   : > { %v8231_v50 = vpop.f32.mrb[70].mxu1 }
 0x57b   : > { %v6244_v3 = vpop.f32.mrb[71].mxu1 }
 0x57c   : > { %v8245_v3 = vadd.f32 %v5836_v20, %v1844_v40 }
 0x591   : > { %v8233_v52 = vpop.f32.mrb[36].mxu0 }
 0x592   : > { %v6189_v12 = vpop.f32.mrb[37].mxu0 }
 0x593   : > { %v8235_v13 = vpop.f32.mrb[38].mxu0 }
 0x594   : > { %v6190_v26 = vpop.f32.mrb[39].mxu0 }
 0x599   : > { %v1793_v58 = vpop.f32.mrb[40].mxu0 }
 0x59a   : > { %v8238_v37 = vadd.f32 %v5836_v20, %v1793_v58  ;;  %v6201_v1 = vpop.f32.mrb[41].mxu0 }
 0x59b   : > { %v1796_v2 = vpop.f32.mrb[42].mxu0  ;;  %v2163_v1 = vsel %vm722_vm2, %v8245_v3, -inf }
 0x59c   : > { %v8241_v49 = vadd.f32 %v5837_v61, %v1796_v2  ;;  %v6202_v30 = vpop.f32.mrb[43].mxu0  ;;  %v2157_v27 = vsel %vm722_vm2, %v8238_v37, -inf }
 0x59d   : > { %2158 = vmax.xlane.f32.xlu1 %v2157_v27  ;;  %v8253_v30 = vadd.f32 %v5837_v61, %v1847_v4  ;;  %v8265_v4 = vadd.f32 %v5837_v61, %v1949_v5 }
 0x59e   : > { %v2160_v12 = vsel %vm722_vm2, %v8241_v49, -inf }
 0x59f   : > { %2161 = vmax.xlane.f32.xlu0 %v2160_v12  ;;  %v2178_v5 = vsel %vm722_vm2, %v8265_v4, -inf }
 0x5a1   : > { %v1895_v26 = vpop.f32.mrb[44].mxu0 }
 0x5a2   : > { %v8249_v36 = vadd.f32 %v5836_v20, %v1895_v26  ;;  %v6213_v58 = vpop.f32.mrb[45].mxu0  ;;  %v2166_v26 = vsel %vm722_vm2, %v8253_v30, -inf }
 0x5a3   : > { %v1898_v2 = vpop.f32.mrb[46].mxu0  ;;  %2164 = vmax.xlane.f32.xlu0 %v2163_v1 }
 0x5a4   : > { %v8255_v35 = vadd.f32 %v5837_v61, %v1898_v2  ;;  %v6214_v27 = vpop.f32.mrb[47].mxu0  ;;  %v2169_v40 = vsel %vm722_vm2, %v8249_v36, -inf }
 0x5a5   : > { %2170 = vmax.xlane.f32.xlu1 %v2169_v40  ;;  %v2175_v27 = vsel %vm722_vm2, %v8259_v23, -inf }
 0x5a6   : > { %v2172_v12 = vsel %vm722_vm2, %v8255_v35, -inf }
 0x5a7   : > { %2173 = vmax.xlane.f32.xlu0 %v2172_v12 }
 0x5a9   : > { %v1997_v58 = vpop.f32.mrb[48].mxu0  ;;  %2167 = vmax.xlane.f32.xlu1 %v2166_v26  ;;  %v2187_v26 = vsel %vm722_vm2, %v8271_v62, -inf }
 0x5aa   : > { %v8267_v1 = vadd.f32 %v5836_v20, %v1997_v58  ;;  %v6225_v2 = vpop.f32.mrb[49].mxu0 }
 0x5ab   : > { %v2000_v40 = vpop.f32.mrb[50].mxu0  ;;  %2176 = vmax.xlane.f32.xlu0 %v2175_v27  ;;  %v8281_v2 = vadd.f32 %v5837_v61, %v2051_v31 }
 0x5ac   : > { %v6226_v29 = vpop.f32.mrb[51].mxu0  ;;  %v2181_v12 = vsel %vm722_vm2, %v8267_v1, -inf  ;;  %v8275_v60 = vadd.f32 %v5837_v61, %v2000_v40  ;;  %v8287_v40 = vadd.f32 %v5836_v20, %v2150_v14  ;;  %v8308_v14 = vpop.permute.xlu1 %2582 }
 0x5ad   : > { %2182 = vmax.xlane.f32.xlu1 %v2181_v12  ;;  %v2190_v31 = vsel %vm722_vm2, %v8281_v2, -inf }
 0x5ae   : > { %v2184_v27 = vsel %vm722_vm2, %v8275_v60, -inf }
 0x5af   : > { %2179 = vmax.xlane.f32.xlu0 %v2178_v5 }
 0x5b1   : > { %v2099_v58 = vpop.f32.mrb[52].mxu0  ;;  %2188 = vmax.xlane.f32.xlu1 %v2187_v26  ;;  %v2199_v26 = vsel %vm722_vm2, %v8287_v40, -inf }
 0x5b2   : > { %v8283_v38 = vadd.f32 %v5836_v20, %v2099_v58  ;;  %v6237_v29 = vpop.f32.mrb[53].mxu0  ;;  %v8298_v58 = vadd.f32 %v5837_v61, %v8231_v50 }
 0x5b3   : > { %v2102_v12 = vpop.f32.mrb[54].mxu0  ;;  %2185 = vmax.xlane.f32.xlu0 %v2184_v27  ;;  %v8310_v29 = vpop.permute.xlu0 %2486 }
 0x5b4   : > { %v6238_v17 = vpop.f32.mrb[55].mxu0  ;;  %v2193_v5 = vsel %vm722_vm2, %v8283_v38, -inf  ;;  %v8291_v54 = vadd.f32 %v5837_v61, %v2102_v12  ;;  %v2202_v20 = vsel %vm722_vm2, %v8298_v58, -inf  ;;  %v8312_v61 = vpop.permute.xlu1 %2678 }
 0x5b5   : > { %2194 = vmax.xlane.f32.xlu1 %v2193_v5 }
 0x5b6   : > { %v2196_v17 = vsel %vm722_vm2, %v8291_v54, -inf }
 0x5b7   : > { %2191 = vmax.xlane.f32.xlu0 %v2190_v31  ;;  %v8314_v50 = vpop.permute.xlu0 %3123 }
 0x5b8   : > { %v8316_v27 = vpop.permute.xlu1 %3174 }
 0x5b9   : > { %2200 = vmax.xlane.f32.xlu1 %v2199_v26 }
 0x5bb   : > { %2197 = vmax.xlane.f32.xlu0 %v2196_v17  ;;  %v8318_v12 = vpop.permute.xlu0 %3121 }
 0x5bf   : > { %2203 = vmax.xlane.f32.xlu0 %v2202_v20 }
 0x5ca   : > { %3225 = vrot.lane.b32.xlu1 %v7786_v41, %s7357_s9 }
 0x5d5   : > { %3172 = vrot.lane.b32.xlu0 %v7766_v32, %s7358_s17 }
 0x62a   : > { %v2159_v5 = vpop.xlane.xlu1 %2158 }
 0x62b   : > { %v2205_v31 = vsub.f32 %v8238_v37, %v2159_v5 }
 0x62c   : > { %v2162_v26 = vpop.xlane.xlu0 %2161 }
 0x62d   : > { %v2221_v17 = vmul.f32 1.442695, %v2205_v31  ;;  %v2206_v20 = vsub.f32 %v8241_v49, %v2162_v26 }
 0x62f   : > { %6835 = vpow2.f32 %v2221_v17  ;;  %v2223_v32 = vmul.f32 1.442695, %v2206_v20 }
 0x630   : > { %v2165_v57 = vpop.xlane.xlu0 %2164 }
 0x631   : > { %6837 = vpow2.f32 %v2223_v32  ;;  %v2207_v48 = vsub.f32 %v8245_v3, %v2165_v57 }
 0x632   : > { %v2171_v51 = vpop.xlane.xlu1 %2170 }
 0x633   : > { %v2225_v39 = vmul.f32 1.442695, %v2207_v48  ;;  %v2209_v45 = vsub.f32 %v8249_v36, %v2171_v51 }
 0x634   : > { %v2174_v33 = vpop.xlane.xlu0 %2173 }
 0x635   : > { %6839 = vpow2.f32 %v2225_v39  ;;  %v2229_v42 = vmul.f32 1.442695, %v2209_v45  ;;  %v2210_v21 = vsub.f32 %v8255_v35, %v2174_v33 }
 0x636   : > { %v2168_v37 = vpop.xlane.xlu1 %2167 }
 0x637   : > { %6841 = vpow2.f32 %v2229_v42  ;;  %v2208_v5 = vsub.f32 %v8253_v30, %v2168_v37  ;;  %v2231_v49 = vmul.f32 1.442695, %v2210_v21 }
 0x638   : > { %v2177_v31 = vpop.xlane.xlu0 %2176 }
 0x639   : > { %v8326_v26 = vpop.eup %6835  ;;  %v2227_v32 = vmul.f32 1.442695, %v2208_v5  ;;  %v2211_v57 = vsub.f32 %v8259_v23, %v2177_v31 }
 0x63a   : > { %v2183_v3 = vpop.xlane.xlu1 %2182  ;;  %v2253_v36 = vsel %vm722_vm2, %v8326_v26, 0.0 }
 0x63b   : > { %v8331_v48 = vpop.eup %6837  ;;  %6843 = vpow2.f32 %v2227_v32  ;;  %v2233_v39 = vmul.f32 1.442695, %v2211_v57  ;;  %v2213_v33 = vsub.f32 %v8267_v1, %v2183_v3  ;;  %2254 = vadd.xlane.f32.xlu1 %v2253_v36 }
 0x63c   : > { %6845 = vpow2.f32 %v2231_v49  ;;  %v2180_v35 = vpop.xlane.xlu0 %2179  ;;  %v2256_v21 = vsel %vm722_vm2, %v8331_v48, 0.0 }
 0x63d   : > { %6847 = vpow2.f32 %v2233_v39  ;;  %v2237_v42 = vmul.f32 1.442695, %v2213_v33  ;;  %v2212_v23 = vsub.f32 %v8265_v4, %v2180_v35  ;;  %2257 = vadd.xlane.f32.xlu0 %v2256_v21 }
 0x63e   : > { %v2189_v45 = vpop.xlane.xlu1 %2188 }
 0x63f   : > { %v8337_v51 = vpop.eup %6839  ;;  %6849 = vpow2.f32 %v2237_v42  ;;  %v2235_v30 = vmul.f32 1.442695, %v2212_v23  ;;  %v2215_v17 = vsub.f32 %v8271_v62, %v2189_v45 }
 0x640   : > { %v2186_v20 = vpop.xlane.xlu0 %2185  ;;  %v2259_v1 = vsel %vm722_vm2, %v8337_v51, 0.0 }
 0x641   : > { %v8342_v37 = vpop.eup %6841  ;;  %6851 = vpow2.f32 %v2235_v30  ;;  %v2241_v5 = vmul.f32 1.442695, %v2215_v17  ;;  %v2214_v49 = vsub.f32 %v8275_v60, %v2186_v20  ;;  %2260 = vadd.xlane.f32.xlu1 %v2259_v1 }
 0x642   : > { %v2195_v4 = vpop.xlane.xlu1 %2194  ;;  %v2265_v57 = vsel %vm722_vm2, %v8342_v37, 0.0 }
 0x643   : > { %6853 = vpow2.f32 %v2241_v5  ;;  %v2239_v31 = vmul.f32 1.442695, %v2214_v49 }
 0x644   : > { %v2192_v32 = vpop.xlane.xlu0 %2191 }
 0x645   : > { %v8347_v3 = vpop.eup %6843  ;;  %6855 = vpow2.f32 %v2239_v31  ;;  %v2216_v62 = vsub.f32 %v8281_v2, %v2192_v32  ;;  %2266 = vadd.xlane.f32.xlu1 %v2265_v57 }
 0x646   : > { %v8350_v36 = vpop.eup %6845  ;;  %v2201_v39 = vpop.xlane.xlu1 %2200  ;;  %v2262_v60 = vsel %vm722_vm2, %v8347_v3, 0.0 }
 0x647   : > { %v8354_v33 = vpop.eup %6847  ;;  %v2243_v35 = vmul.f32 1.442695, %v2216_v62  ;;  %v2219_v21 = vsub.f32 %v8287_v40, %v2201_v39  ;;  %2263 = vadd.xlane.f32.xlu0 %v2262_v60  ;;  %v2268_v30 = vsel %vm722_vm2, %v8350_v36, 0.0 }
 0x648   : > { %v2198_v42 = vpop.xlane.xlu0 %2197  ;;  %v2271_v23 = vsel %vm722_vm2, %v8354_v33, 0.0 }
 0x649   : > { %v8359_v45 = vpop.eup %6849  ;;  %6857 = vpow2.f32 %v2243_v35  ;;  %v2249_v2 = vmul.f32 1.442695, %v2219_v21  ;;  %2272 = vadd.xlane.f32.xlu1 %v2271_v23 }
 0x64a   : > { %v2277_v40 = vsel %vm722_vm2, %v8359_v45, 0.0 }
 0x64b   : > { %v8363_v17 = vpop.eup %6851  ;;  %6859 = vpow2.f32 %v2249_v2  ;;  %2269 = vadd.xlane.f32.xlu0 %v2268_v30  ;;  %v2217_v2 = vsub.f32 %v8283_v38, %v2195_v4 }
 0x64c   : > { %v2204_v20 = vpop.xlane.xlu0 %2203  ;;  %v2274_v49 = vsel %vm722_vm2, %v8363_v17, 0.0 }
 0x64d   : > { %v8367_v1 = vpop.eup %6853  ;;  %v2220_v5 = vsub.f32 %v8298_v58, %v2204_v20  ;;  %2278 = vadd.xlane.f32.xlu1 %v2277_v40  ;;  %v2245_v30 = vmul.f32 1.442695, %v2217_v2  ;;  %v2218_v20 = vsub.f32 %v8291_v54, %v2198_v42  ;;  %v5803_v54 = vld [vmem:[%s9534_s3] ss:$0 sm:$0xff] }
 0x64e   : > { %v2283_v57 = vsel %vm722_vm2, %v8367_v1, 0.0 }
 0x64f   : > { %v8372_v31 = vpop.eup %6855  ;;  %v2251_v32 = vmul.f32 1.442695, %v2220_v5  ;;  %2275 = vadd.xlane.f32.xlu0 %v2274_v49  ;;  %v2247_v40 = vmul.f32 1.442695, %v2218_v20 }
 0x650   : > { %v2280_v62 = vsel %vm722_vm2, %v8372_v31, 0.0  ;;  %v8452_v38 = vpop.permute.xlu0 %3172 }
 0x651   : > { %6861 = vpow2.f32 %v2251_v32  ;;  %2284 = vadd.xlane.f32.xlu1 %v2283_v57 }
 0x652   : > { %6863 = vpow2.f32 %v2245_v30 }
 0x653   : > { %v8378_v39 = vpop.eup %6857  ;;  %2281 = vadd.xlane.f32.xlu0 %v2280_v62  ;;  %6865 = vpow2.f32 %v2247_v40 }
 0x654   : > { %v2286_v35 = vsel %vm722_vm2, %v8378_v39, 0.0 }
 0x655   : > { %v8380_v58 = vpop.eup %6859 }
 0x656   : > { %v2295_v60 = vsel %vm722_vm2, %v8380_v58, 0.0 }
 0x657   : > { %2296 = vadd.xlane.f32.xlu1 %v2295_v60  ;;  %2287 = vadd.xlane.f32.xlu0 %v2286_v35  ;;  %v9660_v35 = vmov 0.0  }
 0x65b   : > { %v8386_v21 = vpop.eup %6861 }
 0x65c   : > { %v2298_v23 = vsel %vm722_vm2, %v8386_v21, 0.0  ;;  %v8396_v5 = vpop.eup %6863 }
 0x65d   : > { %2299 = vadd.xlane.f32.xlu0 %v2298_v23  ;;  %v2289_v49 = vsel %vm722_vm2, %v8396_v5, 0.0  ;;  %v8400_v32 = vpop.eup %6865 }
 0x65e   : > { %v2292_v57 = vsel %vm722_vm2, %v8400_v32, 0.0 }
 0x668   : > { %3276 = vrot.lane.b32.xlu1 %v7798_v47, %s7357_s9 }
 0x673   : > { %3223 = vrot.lane.b32.xlu0 %v7786_v41, %s7358_s17 }
 0x68c   : > { %2290 = vadd.xlane.f32.xlu1 %v2289_v49 }
 0x692   : > { %2293 = vadd.xlane.f32.xlu0 %v2292_v57 }
 0x69d   : > { %3274 = vrot.lane.b32.xlu1 %v7798_v47, %s7358_s17 }
 0x6a1   : > { %3327 = vrot.lane.b32.xlu1 %v7810_v53, %s7357_s9 }
 0x6a5   : > { %3325 = vrot.lane.b32.xlu1 %v7810_v53, %s7358_s17 }
 0x6a8   : > { %2342 = vrot.lane.b32.xlu0 %v7752_v24, %s7356_s11 }
 0x6a9   : > { %2534 = vrot.lane.b32.xlu1 %v7816_v55, %s7356_s11 }
 0x6ac   : > { %2438 = vrot.lane.b32.xlu0 %v7792_v43, %s7356_s11 }
 0x6ad   : > { %3429 = vrot.lane.b32.xlu1 %v7746_v22, %s7357_s9 }
 0x6b0   : > { %3378 = vrot.lane.b32.xlu0 %v7824_v59, %s7357_s9 }
 0x6b1   : > { %3427 = vrot.lane.b32.xlu1 %v7746_v22, %s7358_s17 }
 0x6b4   : > { %3376 = vrot.lane.b32.xlu0 %v7824_v59, %s7358_s17 }
 0x6b5   : > { %3478 = vrot.lane.b32.xlu1 %v7770_v34, %s7358_s17 }
 0x6b8   : > { %2630 = vrot.lane.b32.xlu0 %v7756_v25, %s7356_s11 }
 0x6b9   : > { %1674 = vrot.lane.b32.xlu1 %v8205_v63, %s7354_s8  ;;  %v8444_v63 = vpop.permute.xlu1 %3225 }
 0x6bc   : > { %3480 = vrot.lane.b32.xlu0 %v7770_v34, %s7357_s9 }
 0x6bd   : > { %1676 = vrot.lane.b32.xlu1 %v8207_v0, %s7354_s8 }
 0x6c0   : > { %602 = vrot.lane.b32.xlu0 %v5803_v54, %s7354_s8 }
 0x6c1   : > { %1682 = vrot.lane.b32.xlu1 %v8213_v6, %s7354_s8 }
 0x6c4   : > { %1672 = vrot.lane.b32.xlu0 %v8203_v19, %s7354_s8 }
 0x6c5   : > { %1684 = vrot.lane.b32.xlu1 %v8215_v7, %s7354_s8 }
 0x6c8   : > { %1678 = vrot.lane.b32.xlu0 %v8209_v44, %s7354_s8  ;;  %v8450_v0 = vpop.xlane.xlu1 %2254 }
 0x6c9   : > { %1688 = vrot.lane.b32.xlu1 %v8227_v46, %s7354_s8 }
 0x6ca   : > { %v8458_v6 = vpop.xlane.xlu0 %2257 }
 0x6cc   : > { %1680 = vrot.lane.b32.xlu0 %v8211_v15, %s7354_s8 }
 0x6cd   : > { %1692 = vrot.lane.b32.xlu1 %v8219_v10, %s7354_s8 }
 0x6ce   : > { %v2261_v19 = vpop.xlane.xlu1 %2260 }
 0x6cf   : > { %6867 = vrcp.f32 %v2261_v19 }
 0x6d0   : > { %1686 = vrot.lane.b32.xlu0 %v8217_v56, %s7354_s8 }
 0x6d1   : > { %1696 = vrot.lane.b32.xlu1 %v8233_v52, %s7354_s8 }
 0x6d2   : > { %v8464_v44 = vpop.xlane.xlu1 %2266 }
 0x6d4   : > { %1690 = vrot.lane.b32.xlu0 %v8229_v11, %s7354_s8  ;;  %v2264_v7 = vpop.xlane.xlu0 %2263 }
 0x6d5   : > { %6869 = vrcp.f32 %v2264_v7  ;;  %1700 = vrot.lane.b32.xlu1 %v8223_v18, %s7354_s8 }
 0x6d6   : > { %v2273_v15 = vpop.xlane.xlu1 %2272 }
 0x6d7   : > { %6871 = vrcp.f32 %v2273_v15 }
 0x6d8   : > { %1694 = vrot.lane.b32.xlu0 %v8221_v9, %s7354_s8  ;;  %v8472_v10 = vpop.xlane.xlu0 %2269 }
 0x6d9   : > { %v6868_v52 = vpop.eup %6867 }
 0x6da   : > { %v8474_v56 = vpop.xlane.xlu1 %2278  ;;  %v2319_v4 = vmul.f32 %v6868_v52, %v8337_v51 }
 0x6dc   : > { %1698 = vrot.lane.b32.xlu0 %v8235_v13, %s7354_s8  ;;  %v2276_v46 = vpop.xlane.xlu0 %2275 }
 0x6dd   : > { %6873 = vrcp.f32 %v2276_v46 }
 0x6de   : > { %v2285_v42 = vpop.xlane.xlu1 %2284 }
 0x6df   : > { %v6870_v11 = vpop.eup %6869  ;;  %6875 = vrcp.f32 %v2285_v42 }
 0x6e0   : > { %v2320_v18 = vmul.f32 %v6870_v11, %v8347_v3  ;;  %1702 = vrot.lane.b32.xlu0 %v8225_v8, %s7354_s8  ;;  %v8482_v9 = vpop.xlane.xlu0 %2281 }
 0x6e1   : > { %v6872_v13 = vpop.eup %6871 }
 0x6e2   : > { %v2334_v62 = vpack.c.bf16 %v2320_v18, %v2319_v4  ;;  %v2323_v8 = vmul.f32 %v6872_v13, %v8354_v33 }
 0x6e4   : > { %6254 = vmatmul.mubr.msk.bf16.vlgmr.msra.gmra.mrb[72].mxu1 %vm722_vm2, %v2334_v62  ;;  %v2288_v60 = vpop.xlane.xlu0 %2287  ;;  %v2297_v23 = vpop.xlane.xlu1 %2296 }
 0x6e5   : > { %6264 = vmatpush3.bf16.msra.mxu1 %v8310_v29  ;;  %6265 = vmatprep.mubr.msk.bf16.mxu1 %vm7353_vm1, %v9660_v35  ;;  %6877 = vrcp.f32 %v2288_v60 }
 0x6e6   : > { %6275 = vmatprep.subr.bf16.mxu1 %v9660_v35 }
 0x6e7   : > { %v6874_v51 = vpop.eup %6873 }
 0x6e8   : > { %v2324_v3 = vmul.f32 %v6874_v51, %v8363_v17 }
 0x6e9   : > { %v6876_v29 = vpop.eup %6875 }
 0x6ea   : > { %v2300_v2 = vpop.xlane.xlu0 %2299  ;;  %v2336_v30 = vpack.c.bf16 %v2324_v3, %v2323_v8  ;;  %v2327_v33 = vmul.f32 %v6876_v29, %v8367_v1  ;;  %v3129_v1 = vsel %vm722_vm2, %v8314_v50, 0  ;;  %v3231_v50 = vsel %vm722_vm2, %v8444_v63, 0 }
 0x6eb   : > { %6879 = vrcp.f32 %v2300_v2 }
 0x6ec   : > { %6881 = vrcp.f32 %v2297_v23  ;;  %6266 = vmatmul.mubr.msk.bf16.vlgmr.msra.gmra.mrb[76].mxu1 %vm722_vm2, %v2336_v30 }
 0x6ed   : > { %6276 = vmatpush3.bf16.msra.mxu1 %v8308_v14  ;;  %6277 = vmatprep.mubr.msk.bf16.mxu1 %vm7353_vm1, %v9660_v35  ;;  %6883 = vrcp.f32 %v8458_v6 }
 0x6ee   : > { %6287 = vmatprep.subr.bf16.mxu1 %v9660_v35  ;;  %6885 = vrcp.f32 %v8450_v0 }
 0x6ef   : > { %v6878_v20 = vpop.eup %6877  ;;  %6887 = vrcp.f32 %v8472_v10 }
 0x6f0   : > { %v2328_v17 = vmul.f32 %v6878_v20, %v8378_v39  ;;  %6889 = vrcp.f32 %v8464_v44 }
 0x6f1   : > { %6891 = vrcp.f32 %v8482_v9 }
 0x6f2   : > { %v2338_v40 = vpack.c.bf16 %v2328_v17, %v2327_v33  ;;  %6893 = vrcp.f32 %v8474_v56 }
 0x6f4   : > { %6278 = vmatmul.mubr.msk.bf16.vlgmr.msra.gmra.mrb[80].mxu1 %vm722_vm2, %v2338_v40 }
 0x6f5   : > { %v6880_v49 = vpop.eup %6879  ;;  %6288 = vmatpush3.bf16.msra.mxu1 %v8312_v61  ;;  %6289 = vmatprep.mubr.msk.bf16.mxu1 %vm7353_vm1, %v9660_v35  ;;  %v3180_v61 = vsel %vm722_vm2, %v8316_v27, 0  ;;  %v3277_v27 = vpop.permute.xlu1 %3276 }
 0x6f6   : > { %v6882_v57 = vpop.eup %6881  ;;  %v2332_v14 = vmul.f32 %v6880_v49, %v8386_v21  ;;  %6329 = vmatprep.subr.bf16.mxu1 %v9660_v35  ;;  %v3282_v39 = vsel %vm722_vm2, %v3277_v27, 0  ;;  %v9664_v27 = vld [vmem:[#allocation39_spill] sm:$0xff] }
 0x6f7   : > { %v2331_v54 = vmul.f32 %v6882_v57, %v8380_v58  ;;  %v6884_v63 = vpop.eup %6883 }
 0x6f8   : > { %v2318_v6 = vmul.f32 %v6884_v63, %v8331_v48 }
 0x6f9   : > { %v2340_v19 = vpack.c.bf16 %v2332_v14, %v2331_v54  ;;  %v9661_v14 = vld [vmem:[#allocation25_spill] sm:$0xff] }
 0x6fc   : > { %6290 = vmatmul.mubr.msk.bf16.vlgmr.msra.gmra.mrb[84].mxu1 %vm722_vm2, %v2340_v19  ;;  %v9662_v19 = vld [vmem:[#allocation37_spill] sm:$0xff] }
 0x6fd   : > { %6331 = vmatprep.mubr.msk.bf16.mxu1 %vm7353_vm1, %v9660_v35 }
 0x6fe   : > { %6330 = vmatpush3.bf16.xpose.msra.mxu1 %v3129_v1 }
 0x6ff   : > { %6335 = vmatprep.subr.bf16.mxu1 %v9660_v35 }
 0x705   : > { %6332 = vmatmul.mubr.msk.bf16.vlgmr.msra.gmra.mrb[88].mxu1 %vm722_vm2, %v8318_v12  ;;  %v3224_v12 = vpop.permute.xlu0 %3223 }
 0x706   : > { %6336 = vmatpush3.bf16.xpose.msra.mxu1 %v3180_v61  ;;  %6337 = vmatprep.mubr.msk.bf16.mxu1 %vm7353_vm1, %v9660_v35  ;;  %v9663_v61 = vld [vmem:[#allocation31_spill] sm:$0xff] }
 0x707   : > { %6341 = vmatprep.subr.bf16.mxu1 %v9660_v35 }
 0x70d   : > { %6338 = vmatmul.mubr.msk.bf16.vlgmr.msra.gmra.mrb[92].mxu1 %vm722_vm2, %v8452_v38  ;;  %v6886_v38 = vpop.eup %6885 }
 0x70e   : > { %6342 = vmatpush3.bf16.xpose.msra.mxu1 %v3231_v50  ;;  %6343 = vmatprep.mubr.msk.bf16.mxu1 %vm7353_vm1, %v9660_v35  ;;  %v2317_v46 = vmul.f32 %v6886_v38, %v8326_v26  ;;  %v6888_v11 = vpop.eup %6887 }
 0x70f   : > { %6347 = vmatprep.subr.bf16.mxu1 %v9660_v35  ;;  %v6890_v4 = vpop.eup %6889  ;;  %v2322_v26 = vmul.f32 %v6888_v11, %v8350_v36  ;;  %v9669_v11 = vld [vmem:[#allocation45_spill] sm:$0xff] }
 0x710   : > { %v2333_v52 = vpack.c.bf16 %v2318_v6, %v2317_v46  ;;  %v2321_v18 = vmul.f32 %v6890_v4, %v8342_v37  ;;  %v6892_v60 = vpop.eup %6891 }
 0x711   : > { %v6894_v13 = vpop.eup %6893  ;;  %v2326_v37 = vmul.f32 %v6892_v60, %v8372_v31 }
 0x712   : > { %v2335_v62 = vpack.c.bf16 %v2322_v26, %v2321_v18  ;;  %v2325_v8 = vmul.f32 %v6894_v13, %v8359_v45  ;;  %v9670_v18 = vld [vmem:[#allocation23_spill] sm:$0xff] }
 0x714   : > { %v2337_v2 = vpack.c.bf16 %v2326_v37, %v2325_v8 }
 0x715   : > { %6344 = vmatmul.mubr.msk.bf16.vlgmr.msra.gmra.mrb[96].mxu1 %vm722_vm2, %v3224_v12 }
 0x716   : > { %6348 = vmatpush3.bf16.xpose.msra.mxu1 %v3282_v39  ;;  %6349 = vmatprep.mubr.msk.bf16.mxu1 %vm7353_vm1, %v9660_v35 }
 0x717   : > { %6353 = vmatprep.subr.bf16.mxu1 %v9660_v35 }
 0x719   : > { %v2291_v58 = vpop.xlane.xlu1 %2290 }
 0x71d   : > { %v3275_v21 = vpop.permute.xlu1 %3274 }
 0x71e   : > { %6350 = vmatmul.mubr.msk.bf16.vlgmr.msra.gmra.mrb[100].mxu1 %vm722_vm2, %v3275_v21 }
 0x71f   : > { %v2294_v0 = vpop.xlane.xlu0 %2293  ;;  %6355 = vmatprep.mubr.msk.bf16.mxu1 %vm7353_vm1, %v9660_v35 }
 0x720   : > { %6895 = vrcp.f32 %v2294_v0  ;;  %v9666_v0 = vld [vmem:[#allocation43_spill] sm:$0xff] }
 0x721   : > { %v3328_v7 = vpop.permute.xlu1 %3327  ;;  %6897 = vrcp.f32 %v2291_v58  ;;  %v9665_v58 = vld [vmem:[#allocation36_spill] sm:$0xff] }
 0x722   : > { %v3333_v15 = vsel %vm722_vm2, %v3328_v7, 0  ;;  %v9667_v7 = vld [vmem:[#allocation41_spill] sm:$0xff] }
 0x723   : > { %6354 = vmatpush3.bf16.xpose.msra.mxu1 %v3333_v15  ;;  %v2343_v10 = vpop.permute.xlu0 %2342 }
 0x724   : > { %6246 = vmatpush3.bf16.msra.mxu0 %v2343_v10  ;;  %6359 = vmatprep.subr.bf16.mxu1 %v9660_v35  ;;  %v9668_v10 = vld [vmem:[#allocation47_spill] sm:$0xff] }
 0x725   : > { %v3326_v44 = vpop.permute.xlu1 %3325  ;;  %6257 = vmatprep.subr.bf16.mxu0 %v9660_v35 }
 0x727   : > { %6248 = vmatmul.mubr.msk.bf16.vlgmr.msra.gmra.mrb[56].mxu0 %vm722_vm2, %v2333_v52  ;;  %v2439_v48 = vpop.permute.xlu0 %2438 }
 0x728   : > { %6258 = vmatpush3.bf16.msra.mxu0 %v2439_v48  ;;  %6259 = vmatprep.mubr.msk.bf16.mxu0 %vm7353_vm1, %v9660_v35 }
 0x729   : > { %6269 = vmatprep.subr.bf16.mxu0 %v9660_v35  ;;  %v2535_v9 = vpop.permute.xlu1 %2534 }
 0x72a   : > { %6356 = vmatmul.mubr.msk.bf16.vlgmr.msra.gmra.mrb[104].mxu1 %vm722_vm2, %v3326_v44  ;;  %v6896_v30 = vpop.eup %6895 }
 0x72b   : > { %v3379_v42 = vpop.permute.xlu0 %3378  ;;  %6361 = vmatprep.mubr.msk.bf16.mxu1 %vm7353_vm1, %v9660_v35  ;;  %v6898_v20 = vpop.eup %6897  ;;  %v2330_v45 = vmul.f32 %v6896_v30, %v8400_v32 }
 0x72c   : > { %v3384_v56 = vsel %vm722_vm2, %v3379_v42, 0  ;;  %v2329_v33 = vmul.f32 %v6898_v20, %v8396_v5 }
 0x72d   : > { %6360 = vmatpush3.bf16.xpose.msra.mxu1 %v3384_v56  ;;  %v3430_v51 = vpop.permute.xlu1 %3429  ;;  %v9671_v56 = vld [vmem:[#allocation49_spill] sm:$0xff] }
 0x72e   : > { %6365 = vmatprep.subr.bf16.mxu1 %v9660_v35  ;;  %v3435_v23 = vsel %vm722_vm2, %v3430_v51, 0  ;;  %v2339_v5 = vpack.c.bf16 %v2330_v45, %v2329_v33 }
 0x72f   : > { %6260 = vmatmul.mubr.msk.bf16.vlgmr.msra.gmra.mrb[60].mxu0 %vm722_vm2, %v2335_v62  ;;  %v3377_v36 = vpop.permute.xlu0 %3376 }
 0x730   : > { %6270 = vmatpush3.bf16.msra.mxu0 %v2535_v9  ;;  %6271 = vmatprep.mubr.msk.bf16.mxu0 %vm7353_vm1, %v9660_v35 }
 0x731   : > { %6281 = vmatprep.subr.bf16.mxu0 %v9660_v35  ;;  %v3428_v29 = vpop.permute.xlu1 %3427 }
 0x733   : > { %v2631_v3 = vpop.permute.xlu0 %2630 }
 0x734   : > { %6362 = vmatmul.mubr.msk.bf16.vlgmr.msra.gmra.mrb[108].mxu1 %vm722_vm2, %v3377_v36 }
 0x735   : > { %6366 = vmatpush3.bf16.xpose.msra.mxu1 %v3435_v23  ;;  %6367 = vmatprep.mubr.msk.bf16.mxu1 %vm7353_vm1, %v9660_v35  ;;  %v3479_v1 = vpop.permute.xlu1 %3478 }
 0x736   : > { %6371 = vmatprep.subr.bf16.mxu1 %v9660_v35 }
 0x737   : > { %6272 = vmatmul.mubr.msk.bf16.vlgmr.msra.gmra.mrb[64].mxu0 %vm722_vm2, %v2337_v2  ;;  %v3481_v31 = vpop.permute.xlu0 %3480 }
 0x738   : > { %6282 = vmatpush3.bf16.msra.mxu0 %v2631_v3  ;;  %6283 = vmatprep.mubr.msk.bf16.mxu0 %vm7353_vm1, %v9660_v35  ;;  %v3486_v17 = vsel %vm722_vm2, %v3481_v31, 0 }
 0x739   : > { %v8601_v4 = vpop.permute.xlu1 %1674 }
 0x73b   : > { %v8572_v40 = vpop.permute.xlu0 %602 }
 0x73c   : > { %6368 = vmatmul.mubr.msk.bf16.vlgmr.msra.gmra.mrb[112].mxu1 %vm722_vm2, %v3428_v29  ;;  %v607_v49 = vadd.f32 %v8572_v40, %v7762_v28  ;;  %v605_v57 = vadd.f32 %v8572_v40, %v7738_v16  ;;  %v606_v54 = vadd.f32 %v8572_v40, %v9661_v14  ;;  %v610_v32 = vadd.f32 %v8572_v40, %v9662_v19 }
 0x73d   : > { %6372 = vmatpush3.bf16.xpose.msra.mxu1 %v3486_v17  ;;  %6373 = vmatprep.mubr.msk.bf16.mxu1 %vm7353_vm1, %v9660_v35  ;;  %v608_v50 = vadd.f32 %v8572_v40, %v9663_v61  ;;  %v611_v28 = vadd.f32 %v8572_v40, %v9664_v27  ;;  %v609_v21 = vadd.f32 %v8572_v40, %v9665_v58  ;;  %v1677_v8 = vpop.permute.xlu1 %1676  ;;  %v9672_v27 = vld [vmem:[#allocation29_spill] sm:$0xff] }
 0x73e   : > { %v5806_v12 = vmul.f32 -1.442695, %v607_v49  ;;  %v5804_v16 = vmul.f32 -1.442695, %v605_v57  ;;  %v5805_v39 = vmul.f32 -1.442695, %v606_v54  ;;  %6383 = vmatprep.subr.bf16.mxu1 %v9660_v35  ;;  %v613_v38 = vadd.f32 %v8572_v40, %v9666_v0 }
 0x73f   : > { %6284 = vmatmul.mubr.msk.bf16.vlgmr.msra.gmra.mrb[68].mxu0 %vm722_vm2, %v2339_v5  ;;  %v5809_v63 = vmul.f32 -1.442695, %v610_v32  ;;  %v5807_v6 = vmul.f32 -1.442695, %v608_v50  ;;  %v612_v15 = vadd.f32 %v8572_v40, %v9667_v7  ;;  %v5810_v46 = vmul.f32 -1.442695, %v611_v28  ;;  %v8608_v60 = vpop.permute.xlu0 %1672 }
 0x740   : > { %6899 = vpow2.f32 %v5806_v12  ;;  %v615_v44 = vadd.f32 %v8572_v40, %v9668_v10  ;;  %v5808_v52 = vmul.f32 -1.442695, %v609_v21  ;;  %v614_v48 = vadd.f32 %v8572_v40, %v9669_v11  ;;  %v9674_v0 = vld [vmem:[#allocation33_spill] sm:$0xff] }
 0x741   : > { %6901 = vpow2.f32 %v5804_v16  ;;  %v5812_v26 = vmul.f32 -1.442695, %v613_v38  ;;  %v617_v9 = vadd.f32 %v8572_v40, %v9670_v18  ;;  %v5811_v42 = vmul.f32 -1.442695, %v612_v15  ;;  %v1683_v57 = vpop.permute.xlu1 %1682 }
 0x742   : > { %6903 = vpow2.f32 %v5805_v39  ;;  %v616_v62 = vadd.f32 %v8572_v40, %v9671_v56  ;;  %v5814_v36 = vmul.f32 -1.442695, %v615_v44  ;;  %v5813_v13 = vmul.f32 -1.442695, %v614_v48  ;;  %v9673_v39 = vld [vmem:[#allocation27_spill] sm:$0xff] }
 0x743   : > { %6905 = vpow2.f32 %v5809_v63  ;;  %v5816_v37 = vmul.f32 -1.442695, %v617_v9  ;;  %v1679_v30 = vpop.permute.xlu0 %1678  ;;  %v619_v28 = vadd.f32 %v8572_v40, %v9672_v27  ;;  %v618_v58 = vadd.f32 %v8572_v40, %v9673_v39 }
 0x744   : > { %6907 = vpow2.f32 %v5807_v6  ;;  %6374 = vmatmul.mubr.msk.bf16.vlgmr.msra.gmra.mrb[116].mxu1 %vm722_vm2, %v3479_v1  ;;  %v5815_v51 = vmul.f32 -1.442695, %v616_v62  ;;  %v620_v38 = vadd.f32 %v8572_v40, %v9674_v0 }
 0x745   : > { %6909 = vpow2.f32 %v5810_v46  ;;  %6385 = vmatprep.mubr.msk.bf16.mxu1 %vm7353_vm1, %v9660_v35  ;;  %v1685_v7 = vpop.permute.xlu1 %1684  ;;  %v5818_v10 = vmul.f32 -1.442695, %v619_v28  ;;  %v5817_v48 = vmul.f32 -1.442695, %v618_v58 }
 0x746   : > { %6911 = vpow2.f32 %v5808_v52  ;;  %v5819_v18 = vmul.f32 -1.442695, %v620_v38 }
 0x747   : > { %6913 = vpow2.f32 %v5812_v26  ;;  %v1681_v5 = vpop.permute.xlu0 %1680 }
 0x748   : > { %6915 = vpow2.f32 %v5811_v42 }
 0x749   : > { %6917 = vpow2.f32 %v5814_v36 }
 0x74a   : > { %v6900_v3 = vpop.eup %6899  ;;  %6919 = vpow2.f32 %v5813_v13  ;;  %v1689_v13 = vpop.permute.xlu1 %1688 }
 0x74b   : > { %v6902_v23 = vpop.eup %6901  ;;  %v671_v2 = vadd.f32 1.0, %v6900_v3  ;;  %6921 = vpow2.f32 %v5816_v37  ;;  %v1687_v52 = vpop.permute.xlu0 %1686 }
 0x74c   : > { %v6904_v29 = vpop.eup %6903  ;;  %v669_v31 = vadd.f32 1.0, %v6902_v23  ;;  %6923 = vpow2.f32 %v5815_v51 }
 0x74d   : > { %v6906_v20 = vpop.eup %6905  ;;  %6925 = vrcp.f32 %v671_v2  ;;  %v670_v45 = vadd.f32 1.0, %v6904_v29 }
 0x74e   : > { %v6908_v33 = vpop.eup %6907  ;;  %6927 = vrcp.f32 %v669_v31  ;;  %v674_v17 = vadd.f32 1.0, %v6906_v20 }
 0x74f   : > { %v6910_v49 = vpop.eup %6909  ;;  %6929 = vrcp.f32 %v670_v45  ;;  %v672_v14 = vadd.f32 1.0, %v6908_v33  ;;  %v1691_v23 = vpop.permute.xlu0 %1690 }
 0x750   : > { %v6912_v54 = vpop.eup %6911  ;;  %6931 = vrcp.f32 %v674_v17  ;;  %v675_v19 = vadd.f32 1.0, %v6910_v49 }
 0x751   : > { %v6914_v32 = vpop.eup %6913  ;;  %6933 = vrcp.f32 %v672_v14  ;;  %v673_v1 = vadd.f32 1.0, %v6912_v54 }
 0x752   : > { %v6916_v61 = vpop.eup %6915  ;;  %6935 = vrcp.f32 %v675_v19  ;;  %v677_v50 = vadd.f32 1.0, %v6914_v32 }
 0x753   : > { %v6918_v12 = vpop.eup %6917  ;;  %6937 = vrcp.f32 %v673_v1  ;;  %v676_v16 = vadd.f32 1.0, %v6916_v61 }
 0x754   : > { %v6920_v21 = vpop.eup %6919  ;;  %6939 = vrcp.f32 %v677_v50  ;;  %v679_v63 = vadd.f32 1.0, %v6918_v12 }
 0x755   : > { %v6922_v6 = vpop.eup %6921  ;;  %6941 = vrcp.f32 %v676_v16  ;;  %v678_v15 = vadd.f32 1.0, %v6920_v21 }
 0x756   : > { %v6924_v46 = vpop.eup %6923  ;;  %6943 = vrcp.f32 %v679_v63  ;;  %v681_v33 = vadd.f32 1.0, %v6922_v6 }
 0x757   : > { %v8618_v44 = vpop.eup %6925  ;;  %6945 = vrcp.f32 %v678_v15  ;;  %v680_v11 = vadd.f32 1.0, %v6924_v46 }
 0x758   : > { %v8620_v26 = vpop.eup %6927  ;;  %v1722_v56 = vmul.f32 %v8618_v44, %v1677_v8 }
 0x759   : > { %v8622_v9 = vpop.eup %6929  ;;  %v1720_v40 = vmul.f32 %v8620_v26, %v8608_v60  ;;  %6947 = vrcp.f32 %v680_v11 }
 0x75a   : > { %v8626_v42 = vpop.eup %6931  ;;  %v1721_v62 = vmul.f32 %v8622_v9, %v8601_v4  ;;  %6949 = vpow2.f32 %v5818_v10 }
 0x75b   : > { %v8631_v36 = vpop.eup %6933  ;;  %6951 = vpow2.f32 %v5817_v48  ;;  %v1725_v8 = vmul.f32 %v8626_v42, %v1683_v57  ;;  %v1693_v57 = vpop.permute.xlu1 %1692 }
 0x75c   : > { %v8633_v37 = vpop.eup %6935  ;;  %v1736_v51 = vpack.c.bf16 %v1721_v62, %v1720_v40  ;;  %v1723_v3 = vmul.f32 %v8631_v36, %v1679_v30  ;;  %6953 = vpow2.f32 %v5819_v18  ;;  %v9675_v62 = vld [vmem:[#allocation34_spill] sm:$0xff] }
 0x75d   : > { %v8636_v60 = vpop.eup %6937  ;;  %v1726_v4 = vmul.f32 %v8633_v37, %v1685_v7  ;;  %6955 = vrcp.f32 %v681_v33 }
 0x75e   : > { %v8638_v2 = vpop.eup %6939  ;;  %v1737_v29 = vpack.c.bf16 %v1723_v3, %v1722_v56  ;;  %v1724_v31 = vmul.f32 %v8636_v60, %v1681_v5  ;;  %2975 = vrot.lane.b32.xlu1 %v1736_v51, %s7354_s8  ;;  %v1695_v5 = vpop.permute.xlu0 %1694  ;;  %v9677_v51 = vld [vmem:[#allocation50_spill] sm:$0xff] }
 0x75f   : > { %v8644_v20 = vpop.eup %6941  ;;  %v1728_v49 = vmul.f32 %v8638_v2, %v1689_v13  ;;  %v1697_v0 = vpop.permute.xlu1 %1696  ;;  %v9676_v13 = vld [vmem:[#allocation42_spill] sm:$0xff] }
 0x760   : > { %v8646_v45 = vpop.eup %6943  ;;  %v1727_v30 = vmul.f32 %v8644_v20, %v1687_v52  ;;  %2977 = vrot.lane.b32.xlu0 %v1737_v29, %s7354_s8  ;;  %v1738_v14 = vpack.c.bf16 %v1725_v8, %v1724_v31 }
 0x761   : > { %v8650_v17 = vpop.eup %6945  ;;  %v1730_v19 = vmul.f32 %v8646_v45, %v1693_v57 }
 0x762   : > { %v1739_v54 = vpack.c.bf16 %v1727_v30, %v1726_v4  ;;  %v1729_v32 = vmul.f32 %v8650_v17, %v1691_v23  ;;  %v1699_v63 = vpop.permute.xlu0 %1698 }
 0x763   : > { %v8655_v1 = vpop.eup %6947  ;;  %v1701_v52 = vpop.permute.xlu1 %1700 }
 0x764   : > { %v6950_v61 = vpop.eup %6949  ;;  %v1731_v50 = vmul.f32 %v8655_v1, %v1695_v5  ;;  %2979 = vrot.lane.b32.xlu0 %v1738_v14, %s7354_s8  ;;  %2981 = vrot.lane.b32.xlu1 %v1739_v54, %s7354_s8  ;;  %v1740_v16 = vpack.c.bf16 %v1729_v32, %v1728_v49 }
 0x765   : > { %v6952_v27 = vpop.eup %6951  ;;  %v683_v28 = vadd.f32 1.0, %v6950_v61 }
 0x766   : > { %v6954_v12 = vpop.eup %6953  ;;  %v1741_v39 = vpack.c.bf16 %v1731_v50, %v1730_v19  ;;  %v682_v58 = vadd.f32 1.0, %v6952_v27  ;;  %v1703_v15 = vpop.permute.xlu0 %1702 }
 0x767   : > { %6957 = vrcp.f32 %v683_v28  ;;  %v684_v21 = vadd.f32 1.0, %v6954_v12  ;;  %v8662_v38 = vpop.eup %6955 }
 0x768   : > { %6959 = vrcp.f32 %v682_v58  ;;  %2983 = vrot.lane.b32.xlu0 %v1740_v16, %s7354_s8  ;;  %2985 = vrot.lane.b32.xlu1 %v1741_v39, %s7354_s8  ;;  %v1732_v7 = vmul.f32 %v8662_v38, %v1697_v0 }
 0x769   : > { %6961 = vrcp.f32 %v684_v21 }
 0x771   : > { %v8664_v6 = vpop.eup %6957 }
 0x772   : > { %v8667_v46 = vpop.eup %6959  ;;  %v1734_v48 = vmul.f32 %v8664_v6, %v1701_v52 }
 0x773   : > { %v8669_v10 = vpop.eup %6961  ;;  %v1733_v11 = vmul.f32 %v8667_v46, %v1699_v63 }
 0x774   : > { %v1735_v18 = vmul.f32 %v8669_v10, %v1703_v15 }
 0x775   : > { %v1742_v40 = vpack.c.bf16 %v1733_v11, %v1732_v7 }
 0x776   : > { %v1743_v56 = vpack.c.bf16 %v1735_v18, %v1734_v48 }
 0x777   : > { %2987 = vrot.lane.b32.xlu0 %v1742_v40, %s7354_s8 }
 0x778   : > { %2989 = vrot.lane.b32.xlu1 %v1743_v56, %s7354_s8 }
 0x77b   : > { %3713 = vrot.lane.b32.xlu0 %v7752_v24, %s7358_s17 }
 0x77c   : > { %3760 = vrot.lane.b32.xlu1 %v9675_v62, %s7358_s17 }
 0x77f   : > { %3854 = vrot.lane.b32.xlu0 %v9676_v13, %s7358_s17 }
 0x780   : > { %3807 = vrot.lane.b32.xlu1 %v7792_v43, %s7358_s17 }
 0x783   : > { %3948 = vrot.lane.b32.xlu0 %v9677_v51, %s7358_s17 }
 0x784   : > { %3901 = vrot.lane.b32.xlu1 %v7816_v55, %s7358_s17 }
 0x7b7   : > { %v2430_v3 = vpop.f32.mrb[72].mxu1 }
 0x7b8   : > { %v6255_v23 = vpop.f32.mrb[73].mxu1 }
 0x7b9   : > { %v2433_v8 = vpop.f32.mrb[74].mxu1 }
 0x7ba   : > { %v6256_v29 = vpop.f32.mrb[75].mxu1 }
 0x7bf   : > { %v2526_v4 = vpop.f32.mrb[76].mxu1 }
 0x7c0   : > { %v6267_v31 = vpop.f32.mrb[77].mxu1 }
 0x7c1   : > { %v2529_v30 = vpop.f32.mrb[78].mxu1 }
 0x7c2   : > { %v6268_v33 = vpop.f32.mrb[79].mxu1 }
 0x7c7   : > { %v8688_v49 = vpop.f32.mrb[80].mxu1 }
 0x7c8   : > { %v6279_v57 = vpop.f32.mrb[81].mxu1 }
 0x7c9   : > { %v8690_v14 = vpop.f32.mrb[82].mxu1 }
 0x7ca   : > { %v6280_v54 = vpop.f32.mrb[83].mxu1 }
 0x7cf   : > { %v8692_v19 = vpop.f32.mrb[84].mxu1 }
 0x7d0   : > { %v6291_v32 = vpop.f32.mrb[85].mxu1  ;;  %v8696_v50 = vpop.permute.xlu1 %2975 }
 0x7d1   : > { %v8694_v5 = vpop.f32.mrb[86].mxu1 }
 0x7d2   : > { %v6292_v61 = vpop.f32.mrb[87].mxu1 }
 0x7d6   : > { %v8702_v39 = vpop.permute.xlu1 %2981 }
 0x7d8   : > { %v8698_v27 = vpop.f32.mrb[88].mxu1 }
 0x7d9   : > { %v6333_v28 = vpop.f32.mrb[89].mxu1 }
 0x7da   : > { %v8700_v12 = vpop.f32.mrb[90].mxu1  ;;  %v8708_v0 = vpop.permute.xlu1 %2985 }
 0x7db   : > { %v6334_v16 = vpop.f32.mrb[91].mxu1 }
 0x7e0   : > { %v8704_v58 = vpop.f32.mrb[92].mxu1 }
 0x7e1   : > { %v6339_v21 = vpop.f32.mrb[93].mxu1 }
 0x7e2   : > { %v8706_v63 = vpop.f32.mrb[94].mxu1 }
 0x7e3   : > { %v6340_v7 = vpop.f32.mrb[95].mxu1 }
 0x7e8   : > { %v8710_v15 = vpop.f32.mrb[96].mxu1 }
 0x7e9   : > { %v6345_v11 = vpop.f32.mrb[97].mxu1 }
 0x7ea   : > { %v8712_v52 = vpop.permute.xlu1 %2989  ;;  %v8714_v48 = vpop.f32.mrb[98].mxu1 }
 0x7eb   : > { %v6346_v18 = vpop.f32.mrb[99].mxu1 }
 0x7ee   : > { %v3761_v40 = vpop.permute.xlu1 %3760 }
 0x7ef   : > { %6384 = vmatpush3.bf16.msra.mxu1 %v3761_v40 }
 0x7f0   : > { %6395 = vmatprep.subr.bf16.mxu1 %v9660_v35 }
 0x7f1   : > { %v8717_v56 = vpop.f32.mrb[100].mxu1 }
 0x7f2   : > { %v6351_v23 = vpop.f32.mrb[101].mxu1 }
 0x7f3   : > { %v8719_v29 = vpop.f32.mrb[102].mxu1 }
 0x7f4   : > { %v6352_v31 = vpop.f32.mrb[103].mxu1 }
 0x7fa   : > { %v2382_v33 = vpop.f32.mrb[56].mxu0 }
 0x7fb   : > { %v6249_v57 = vpop.f32.mrb[57].mxu0  ;;  %2741 = vrot.lane.b32.xlu1 %v2382_v33, %s7359_s4 }
 0x7fc   : > { %v2385_v54 = vpop.f32.mrb[58].mxu0 }
 0x7fd   : > { %v6250_v32 = vpop.f32.mrb[59].mxu0  ;;  %2743 = vrot.lane.b32.xlu0 %v2385_v54, %s7359_s4  ;;  %v8723_v61 = vpop.f32.mrb[104].mxu1 }
 0x7fe   : > { %v6357_v28 = vpop.f32.mrb[105].mxu1 }
 0x7ff   : > { %2745 = vrot.lane.b32.xlu1 %v2430_v3, %s7359_s4  ;;  %v3372_v16 = vpop.f32.mrb[106].mxu1 }
 0x800   : > { %v6358_v21 = vpop.f32.mrb[107].mxu1 }
 0x801   : > { %2747 = vrot.lane.b32.xlu0 %v2433_v8, %s7359_s4 }
 0x802   : > { %v2478_v7 = vpop.f32.mrb[60].mxu0 }
 0x803   : > { %v6261_v11 = vpop.f32.mrb[61].mxu0  ;;  %2749 = vrot.lane.b32.xlu1 %v2478_v7, %s7359_s4 }
 0x804   : > { %v2481_v18 = vpop.f32.mrb[62].mxu0 }
 0x805   : > { %v6262_v40 = vpop.f32.mrb[63].mxu0  ;;  %2751 = vrot.lane.b32.xlu0 %v2481_v18, %s7359_s4 }
 0x807   : > { %2753 = vrot.lane.b32.xlu1 %v2526_v4, %s7359_s4  ;;  %v3420_v23 = vpop.f32.mrb[108].mxu1 }
 0x808   : > { %v6363_v31 = vpop.f32.mrb[109].mxu1 }
 0x809   : > { %v3423_v33 = vpop.f32.mrb[110].mxu1 }
 0x80a   : > { %v2574_v57 = vpop.f32.mrb[64].mxu0  ;;  %v6364_v54 = vpop.f32.mrb[111].mxu1 }
 0x80b   : > { %v6273_v3 = vpop.f32.mrb[65].mxu0  ;;  %2757 = vrot.lane.b32.xlu0 %v2574_v57, %s7359_s4 }
 0x80c   : > { %v2577_v32 = vpop.f32.mrb[66].mxu0  ;;  %v5873_v3 = vld [vmem:[%s7702_s19 + $0x28] sm:$0xff] }
 0x80d   : > { %v6274_v8 = vpop.f32.mrb[67].mxu0  ;;  %2759 = vrot.lane.b32.xlu1 %v2577_v32, %s7359_s4  ;;  %v5872_v32 = vld [vmem:[%s7702_s19 + $0x20] sm:$0xff] }
 0x80e   : > { %v8746_v8 = vadd.f32 %v5873_v3, %v8700_v12  ;;  %v8767_v12 = vadd.f32 %v5872_v32, %v8710_v15 }
 0x80f   : > { %2755 = vrot.lane.b32.xlu0 %v2529_v30, %s7359_s4  ;;  %v3471_v28 = vpop.f32.mrb[112].mxu1 }
 0x810   : > { %v6369_v21 = vpop.f32.mrb[113].mxu1 }
 0x811   : > { %2761 = vrot.lane.b32.xlu1 %v8688_v49, %s7359_s4  ;;  %v3474_v4 = vpop.f32.mrb[114].mxu1  ;;  %v8749_v21 = vadd.f32 %v5872_v32, %v8698_v27 }
 0x812   : > { %v2670_v7 = vpop.f32.mrb[68].mxu0  ;;  %v6370_v11 = vpop.f32.mrb[115].mxu1 }
 0x813   : > { %v6285_v18 = vpop.f32.mrb[69].mxu0  ;;  %2765 = vrot.lane.b32.xlu0 %v2670_v7, %s7359_s4  ;;  %v3532_v7 = vsel %vm722_vm2, %v8746_v8, -inf  ;;  %v8762_v11 = vadd.f32 %v5873_v3, %v8714_v48  ;;  %v8777_v48 = vadd.f32 %v5873_v3, %v8719_v29  ;;  %v8792_v29 = vadd.f32 %v5872_v32, %v3420_v23 }
 0x814   : > { %v2673_v40 = vpop.f32.mrb[70].mxu0  ;;  %v8806_v23 = vadd.f32 %v5872_v32, %v3471_v28 }
 0x815   : > { %v6286_v31 = vpop.f32.mrb[71].mxu0  ;;  %2767 = vrot.lane.b32.xlu1 %v2673_v40, %s7359_s4  ;;  %v3544_v18 = vsel %vm722_vm2, %v8762_v11, -inf  ;;  %v3541_v40 = vsel %vm722_vm2, %v8767_v12, -inf }
 0x816   : > { %v8781_v31 = vadd.f32 %v5873_v3, %v3372_v16 }
 0x817   : > { %2763 = vrot.lane.b32.xlu0 %v8690_v14, %s7359_s4  ;;  %v3522_v30 = vpop.f32.mrb[116].mxu1  ;;  %v8752_v14 = vadd.f32 %v5872_v32, %v8704_v58 }
 0x818   : > { %v6375_v57 = vpop.f32.mrb[117].mxu1  ;;  %v3556_v16 = vsel %vm722_vm2, %v8781_v31, -inf }
 0x819   : > { %2769 = vrot.lane.b32.xlu1 %v8692_v19, %s7359_s4  ;;  %v3525_v49 = vpop.f32.mrb[118].mxu1  ;;  %v8757_v19 = vadd.f32 %v5873_v3, %v8706_v63  ;;  %v3535_v27 = vsel %vm722_vm2, %v8752_v14, -inf  ;;  %v8772_v63 = vadd.f32 %v5872_v32, %v8717_v56  ;;  %v8785_v56 = vpop.permute.xlu0 %2977  ;;  %v8788_v57 = vadd.f32 %v5872_v32, %v8723_v61 }
 0x81a   : > { %v6376_v54 = vpop.f32.mrb[119].mxu1  ;;  %v3559_v61 = vsel %vm722_vm2, %v8792_v29, -inf }
 0x81b   : > { %2771 = vrot.lane.b32.xlu0 %v8694_v5, %s7359_s4  ;;  %v3529_v5 = vsel %vm722_vm2, %v8749_v21, -inf  ;;  %v3538_v58 = vsel %vm722_vm2, %v8757_v19, -inf  ;;  %v3547_v15 = vsel %vm722_vm2, %v8772_v63, -inf  ;;  %v3550_v54 = vsel %vm722_vm2, %v8777_v48, -inf }
 0x83a   : > { %3533 = vmax.xlane.f32.xlu0 %v3532_v7  ;;  %v8796_v7 = vadd.f32 %v5873_v3, %v3423_v33 }
 0x83d   : > { %3530 = vmax.xlane.f32.xlu1 %v3529_v5  ;;  %v3553_v5 = vsel %vm722_vm2, %v8788_v57, -inf }
 0x83e   : > { %3536 = vmax.xlane.f32.xlu0 %v3535_v27  ;;  %v8800_v27 = vpop.permute.xlu0 %2979 }
 0x841   : > { %3539 = vmax.xlane.f32.xlu1 %v3538_v58  ;;  %v8802_v58 = vadd.f32 %v5873_v3, %v3474_v4  ;;  %v8816_v4 = vadd.f32 %v5873_v3, %v3525_v49 }
 0x842   : > { %3545 = vmax.xlane.f32.xlu0 %v3544_v18  ;;  %v3562_v18 = vsel %vm722_vm2, %v8796_v7, -inf }
 0x843   : > { %v3568_v33 = vsel %vm722_vm2, %v8802_v58, -inf }
 0x845   : > { %3542 = vmax.xlane.f32.xlu1 %v3541_v40  ;;  %v8810_v40 = vadd.f32 %v5872_v32, %v3522_v30  ;;  %v3574_v30 = vsel %vm722_vm2, %v8816_v4, -inf }
 0x846   : > { %3548 = vmax.xlane.f32.xlu0 %v3547_v15  ;;  %v8814_v15 = vpop.permute.xlu0 %2983 }
 0x847   : > { %v3571_v28 = vsel %vm722_vm2, %v8810_v40, -inf }
 0x849   : > { %3551 = vmax.xlane.f32.xlu1 %v3550_v54  ;;  %v3565_v54 = vsel %vm722_vm2, %v8806_v23, -inf }
 0x84a   : > { %3557 = vmax.xlane.f32.xlu0 %v3556_v16  ;;  %v8824_v32 = vpop.permute.xlu0 %2987 }
 0x84d   : > { %3554 = vmax.xlane.f32.xlu1 %v3553_v5  ;;  %v8828_v5 = vpop.permute.xlu1 %3807 }
 0x84e   : > { %3560 = vmax.xlane.f32.xlu0 %v3559_v61  ;;  %v8826_v16 = vpop.permute.xlu0 %3713 }
 0x851   : > { %3563 = vmax.xlane.f32.xlu1 %v3562_v18  ;;  %v8832_v3 = vpop.permute.xlu1 %3901  ;;  %v6767_v18 = vld [vmem:[#allocation8 + $0x8] sm:$0xff]  }
 0x852   : > { %3569 = vmax.xlane.f32.xlu0 %v3568_v33  ;;  %v8830_v49 = vpop.permute.xlu0 %3854  ;;  %6293 = vmatprep.subr.bf16.mxu0 %v6767_v18 }
 0x853   : > { %6294 = vmatpush3.bf16.msra.mxu0 %v6767_v18 }
 0x855   : > { %3566 = vmax.xlane.f32.xlu1 %v3565_v54 }
 0x856   : > { %3572 = vmax.xlane.f32.xlu0 %v3571_v28  ;;  %v8834_v61 = vpop.permute.xlu0 %3948 }
 0x859   : > { %3575 = vmax.xlane.f32.xlu1 %v3574_v30 }
 0x86d   : > { %v2742_v33 = vpop.permute.xlu1 %2741 }
 0x86e   : > { %v2789_v28 = vmul.f32 %v8620_v26, %v2742_v33 }
 0x86f   : > { %v2744_v54 = vpop.permute.xlu0 %2743 }
 0x870   : > { %v2790_v51 = vmul.f32 %v8622_v9, %v2744_v54 }
 0x871   : > { %v2746_v30 = vpop.permute.xlu1 %2745 }
 0x872   : > { %v2805_v55 = vpack.c.bf16 %v2790_v51, %v2789_v28  ;;  %v2791_v43 = vmul.f32 %v8618_v44, %v2746_v30 }
 0x873   : > { %v2748_v13 = vpop.permute.xlu0 %2747 }
 0x874   : > { %v2792_v24 = vmul.f32 %v8631_v36, %v2748_v13  ;;  %2824 = vrot.lane.b32.xlu1 %v2805_v55, %s7355_s10 }
 0x875   : > { %v2750_v62 = vpop.permute.xlu1 %2749 }
 0x876   : > { %v2806_v34 = vpack.c.bf16 %v2792_v24, %v2791_v43  ;;  %v2793_v59 = vmul.f32 %v8636_v60, %v2750_v62 }
 0x877   : > { %v2752_v22 = vpop.permute.xlu0 %2751 }
 0x878   : > { %v2794_v18 = vmul.f32 %v8626_v42, %v2752_v22  ;;  %2826 = vrot.lane.b32.xlu0 %v2806_v34, %s7355_s10 }
 0x879   : > { %v2754_v54 = vpop.permute.xlu1 %2753 }
 0x87a   : > { %v2807_v33 = vpack.c.bf16 %v2794_v18, %v2793_v59  ;;  %v2795_v24 = vmul.f32 %v8633_v37, %v2754_v54 }
 0x87c   : > { %2828 = vrot.lane.b32.xlu1 %v2807_v33, %s7355_s10 }
 0x87d   : > { %v2758_v51 = vpop.permute.xlu0 %2757 }
 0x87e   : > { %v2797_v30 = vmul.f32 %v8638_v2, %v2758_v51 }
 0x87f   : > { %v2760_v28 = vpop.permute.xlu1 %2759 }
 0x880   : > { %v2798_v13 = vmul.f32 %v8650_v17, %v2760_v28 }
 0x881   : > { %v2756_v55 = vpop.permute.xlu0 %2755 }
 0x882   : > { %v2809_v43 = vpack.c.bf16 %v2798_v13, %v2797_v30  ;;  %v2796_v62 = vmul.f32 %v8644_v20, %v2756_v55  ;;  %v8855_v30 = vld [vmem:[#allocation8] sm:$0xff]  }
 0x883   : > { %v2762_v47 = vpop.permute.xlu1 %2761  ;;  %6311 = vmatprep.subr.bf16.mxu0 %v8855_v30 }
 0x884   : > { %v2808_v22 = vpack.c.bf16 %v2796_v62, %v2795_v24  ;;  %2832 = vrot.lane.b32.xlu1 %v2809_v43, %s7355_s10  ;;  %v2799_v28 = vmul.f32 %v8646_v45, %v2762_v47 }
 0x885   : > { %v2766_v34 = vpop.permute.xlu0 %2765 }
 0x886   : > { %2830 = vrot.lane.b32.xlu0 %v2808_v22, %s7355_s10  ;;  %v2801_v18 = vmul.f32 %v8662_v38, %v2766_v34 }
 0x887   : > { %v2768_v59 = vpop.permute.xlu1 %2767 }
 0x888   : > { %v2802_v33 = vmul.f32 %v8667_v46, %v2768_v59 }
 0x889   : > { %v2764_v51 = vpop.permute.xlu0 %2763 }
 0x88a   : > { %v2811_v53 = vpack.c.bf16 %v2802_v33, %v2801_v18  ;;  %v2800_v54 = vmul.f32 %v8655_v1, %v2764_v51 }
 0x88b   : > { %v2770_v13 = vpop.permute.xlu1 %2769 }
 0x88c   : > { %v2810_v55 = vpack.c.bf16 %v2800_v54, %v2799_v28  ;;  %2836 = vrot.lane.b32.xlu1 %v2811_v53, %s7355_s10  ;;  %v2803_v43 = vmul.f32 %v8664_v6, %v2770_v13 }
 0x88d   : > { %v2772_v24 = vpop.permute.xlu0 %2771 }
 0x88e   : > { %v2804_v62 = vmul.f32 %v8669_v10, %v2772_v24  ;;  %2834 = vrot.lane.b32.xlu0 %v2810_v55, %s7355_s10 }
 0x890   : > { %v2812_v22 = vpack.c.bf16 %v2804_v62, %v2803_v43 }
 0x892   : > { %2838 = vrot.lane.b32.xlu0 %v2812_v22, %s7355_s10  ;;  %s5631_s10 = sshll.u32 %s9426_s13, 4  ;;  %s9457_s10 = int_to_ptr.vmem [resolvable:$true] %s5631_s10 }
 0x893   : > { %s7207_s14 = scalar_lea.vmem %s9457_s10, 2048  ;;  %p7214_p1 = scmp.lt.s32.totalorder %s9457_s10, %s7212_s16 }
 0x894   : > { %p7208_p5 = scmp.ne.s32.totalorder %s9457_s10, %s7207_s14 }
 0x896   : > { %p7209_p6 = pnand %p7208_p5, %p7565_p8 }
 0x898   : > { %p7210_p7 = pneg %p7209_p6 }
 0x8c7   : > { %v3534_v47 = vpop.xlane.xlu0 %3533 }
 0x8c8   : > { %v3578_v34 = vsub.f32 %v8746_v8, %v3534_v47 }
 0x8ca   : > { %v3595_v59 = vmul.f32 1.442695, %v3578_v34  ;;  %v3531_v18 = vpop.xlane.xlu1 %3530 }
 0x8cb   : > { %v3577_v33 = vsub.f32 %v8749_v21, %v3531_v18  ;;  %v3537_v53 = vpop.xlane.xlu0 %3536 }
 0x8cc   : > { %6963 = vpow2.f32 %v3595_v59  ;;  %v3579_v51 = vsub.f32 %v8752_v14, %v3537_v53 }
 0x8cd   : > { %v3593_v28 = vmul.f32 1.442695, %v3577_v33 }
 0x8ce   : > { %v3597_v54 = vmul.f32 1.442695, %v3579_v51  ;;  %v3540_v13 = vpop.xlane.xlu1 %3539 }
 0x8cf   : > { %6965 = vpow2.f32 %v3593_v28  ;;  %v3580_v55 = vsub.f32 %v8757_v19, %v3540_v13  ;;  %v3546_v24 = vpop.xlane.xlu0 %3545 }
 0x8d0   : > { %6967 = vpow2.f32 %v3597_v54  ;;  %v3582_v43 = vsub.f32 %v8762_v11, %v3546_v24 }
 0x8d1   : > { %v3599_v62 = vmul.f32 1.442695, %v3580_v55 }
 0x8d2   : > { %v3603_v8 = vmul.f32 1.442695, %v3582_v43  ;;  %v3543_v22 = vpop.xlane.xlu1 %3542 }
 0x8d3   : > { %6969 = vpow2.f32 %v3599_v62  ;;  %v3581_v21 = vsub.f32 %v8767_v12, %v3543_v22  ;;  %v3549_v47 = vpop.xlane.xlu0 %3548 }
 0x8d4   : > { %6971 = vpow2.f32 %v3603_v8  ;;  %v3583_v14 = vsub.f32 %v8772_v63, %v3549_v47 }
 0x8d5   : > { %v3601_v34 = vmul.f32 1.442695, %v3581_v21 }
 0x8d6   : > { %v8870_v59 = vpop.eup %6963  ;;  %v3605_v18 = vmul.f32 1.442695, %v3583_v14  ;;  %v3552_v33 = vpop.xlane.xlu1 %3551 }
 0x8d7   : > { %6973 = vpow2.f32 %v3601_v34  ;;  %v3584_v19 = vsub.f32 %v8777_v48, %v3552_v33  ;;  %v3558_v53 = vpop.xlane.xlu0 %3557  ;;  %v3628_v11 = vsel %vm722_vm2, %v8870_v59, 0.0 }
 0x8d8   : > { %6975 = vpow2.f32 %v3605_v18  ;;  %v3586_v51 = vsub.f32 %v8781_v31, %v3558_v53  ;;  %3629 = vadd.xlane.f32.xlu0 %v3628_v11 }
 0x8d9   : > { %v8876_v12 = vpop.eup %6965  ;;  %v3607_v28 = vmul.f32 1.442695, %v3584_v19 }
 0x8da   : > { %v8878_v63 = vpop.eup %6967  ;;  %v3611_v54 = vmul.f32 1.442695, %v3586_v51  ;;  %v3555_v13 = vpop.xlane.xlu1 %3554  ;;  %v3625_v55 = vsel %vm722_vm2, %v8876_v12, 0.0 }
 0x8db   : > { %6977 = vpow2.f32 %v3607_v28  ;;  %v3585_v48 = vsub.f32 %v8788_v57, %v3555_v13  ;;  %v3561_v24 = vpop.xlane.xlu0 %3560  ;;  %3626 = vadd.xlane.f32.xlu1 %v3625_v55  ;;  %v3631_v43 = vsel %vm722_vm2, %v8878_v63, 0.0 }
 0x8dc   : > { %6979 = vpow2.f32 %v3611_v54  ;;  %v3587_v31 = vsub.f32 %v8792_v29, %v3561_v24  ;;  %3632 = vadd.xlane.f32.xlu0 %v3631_v43 }
 0x8dd   : > { %v8886_v62 = vpop.eup %6969  ;;  %v3609_v8 = vmul.f32 1.442695, %v3585_v48 }
 0x8de   : > { %v8888_v22 = vpop.eup %6971  ;;  %v3613_v21 = vmul.f32 1.442695, %v3587_v31  ;;  %v3564_v47 = vpop.xlane.xlu1 %3563  ;;  %v3634_v14 = vsel %vm722_vm2, %v8886_v62, 0.0 }
 0x8df   : > { %6981 = vpow2.f32 %v3609_v8  ;;  %v3588_v57 = vsub.f32 %v8796_v7, %v3564_v47  ;;  %v3570_v34 = vpop.xlane.xlu0 %3569  ;;  %3635 = vadd.xlane.f32.xlu1 %v3634_v14  ;;  %v3640_v18 = vsel %vm722_vm2, %v8888_v22, 0.0 }
 0x8e0   : > { %6983 = vpow2.f32 %v3613_v21  ;;  %v3590_v29 = vsub.f32 %v8802_v58, %v3570_v34  ;;  %3641 = vadd.xlane.f32.xlu0 %v3640_v18 }
 0x8e1   : > { %v8896_v33 = vpop.eup %6973  ;;  %v3615_v19 = vmul.f32 1.442695, %v3588_v57 }
 0x8e2   : > { %v8898_v53 = vpop.eup %6975  ;;  %v3619_v11 = vmul.f32 1.442695, %v3590_v29  ;;  %v3567_v51 = vpop.xlane.xlu1 %3566  ;;  %v3637_v28 = vsel %vm722_vm2, %v8896_v33, 0.0 }
 0x8e3   : > { %6985 = vpow2.f32 %v3615_v19  ;;  %v3589_v7 = vsub.f32 %v8806_v23, %v3567_v51  ;;  %v3573_v54 = vpop.xlane.xlu0 %3572  ;;  %3638 = vadd.xlane.f32.xlu1 %v3637_v28  ;;  %v3643_v13 = vsel %vm722_vm2, %v8898_v53, 0.0 }
 0x8e4   : > { %6987 = vpow2.f32 %v3619_v11  ;;  %v3591_v58 = vsub.f32 %v8810_v40, %v3573_v54  ;;  %3644 = vadd.xlane.f32.xlu0 %v3643_v13 }
 0x8e5   : > { %v8906_v55 = vpop.eup %6977  ;;  %v3617_v48 = vmul.f32 1.442695, %v3589_v7 }
 0x8e6   : > { %v8908_v24 = vpop.eup %6979  ;;  %v3621_v43 = vmul.f32 1.442695, %v3591_v58  ;;  %v3576_v31 = vpop.xlane.xlu1 %3575  ;;  %v3646_v8 = vsel %vm722_vm2, %v8906_v55, 0.0 }
 0x8e7   : > { %6989 = vpow2.f32 %v3617_v48  ;;  %v3592_v23 = vsub.f32 %v8816_v4, %v3576_v31  ;;  %3647 = vadd.xlane.f32.xlu1 %v3646_v8  ;;  %v3652_v21 = vsel %vm722_vm2, %v8908_v24, 0.0 }
 0x8e8   : > { %6991 = vpow2.f32 %v3621_v43  ;;  %3653 = vadd.xlane.f32.xlu0 %v3652_v21 }
 0x8e9   : > { %v8915_v40 = vpop.eup %6981  ;;  %v3623_v47 = vmul.f32 1.442695, %v3592_v23 }
 0x8ea   : > { %v8917_v14 = vpop.eup %6983  ;;  %v2827_v57 = vpop.permute.xlu0 %2826  ;;  %v3649_v18 = vsel %vm722_vm2, %v8915_v40, 0.0 }
 0x8eb   : > { %v2825_v34 = vpop.permute.xlu1 %2824  ;;  %6993 = vpow2.f32 %v3623_v47  ;;  %3650 = vadd.xlane.f32.xlu1 %v3649_v18  ;;  %v3655_v4 = vsel %vm722_vm2, %v8917_v14, 0.0  ;;  %v9678_v47 = vld [vmem:[#allocation35_spill] sm:$0xff] }
 0x8ec   : > { %6295 = vmatprep.mubr.msk.bf16.mxu0 %vm722_vm2, %v2825_v34  ;;  %3656 = vadd.xlane.f32.xlu0 %v3655_v4 }
 0x8ed   : > { %6296 = vmatmul.mubr.msk.bf16.vlgmr.msra.gmra.mrb[72].mxu0 %vm722_vm2, %v2827_v57  ;;  %v8925_v29 = vpop.eup %6985 }
 0x8ee   : > { %6312 = vmatpush3.bf16.msra.mxu0 %v8855_v30  ;;  %v8928_v19 = vpop.eup %6987  ;;  %v3658_v51 = vsel %vm722_vm2, %v8925_v29, 0.0 }
 0x8ef   : > { %v2829_v11 = vpop.permute.xlu1 %2828  ;;  %6377 = vmatprep.subr.bf16.mxu0 %v9660_v35  ;;  %3659 = vadd.xlane.f32.xlu1 %v3658_v51  ;;  %v3664_v28 = vsel %vm722_vm2, %v8928_v19, 0.0 }
 0x8f0   : > { %6299 = vmatprep.mubr.msk.bf16.mxu0 %vm722_vm2, %v2829_v11  ;;  %3665 = vadd.xlane.f32.xlu0 %v3664_v28 }
 0x8f1   : > { %v8936_v7 = vpop.eup %6989 }
 0x8f2   : > { %v8938_v54 = vpop.eup %6991  ;;  %v3661_v30 = vsel %vm722_vm2, %v8936_v7, 0.0 }
 0x8f3   : > { %3662 = vadd.xlane.f32.xlu1 %v3661_v30  ;;  %v3667_v13 = vsel %vm722_vm2, %v8938_v54, 0.0 }
 0x8f4   : > { %3668 = vadd.xlane.f32.xlu0 %v3667_v13 }
 0x8f5   : > { %v8944_v58 = vpop.eup %6993 }
 0x8f6   : > { %v3670_v48 = vsel %vm722_vm2, %v8944_v58, 0.0  ;;  %v2833_v31 = vpop.permute.xlu1 %2832 }
 0x8f7   : > { %3671 = vadd.xlane.f32.xlu1 %v3670_v48 }
 0x8f8   : > { %v2831_v43 = vpop.permute.xlu0 %2830 }
 0x8f9   : > { %6300 = vmatmul.mubr.msk.bf16.gmra.mrb[76].mxu0 %vm722_vm2, %v2831_v43 }
 0x8fa   : > { %6303 = vmatprep.mubr.msk.bf16.mxu0 %vm722_vm2, %v2833_v31 }
 0x8fe   : > { %v2837_v23 = vpop.permute.xlu1 %2836 }
 0x900   : > { %v2835_v8 = vpop.permute.xlu0 %2834 }
 0x901   : > { %6304 = vmatmul.mubr.msk.bf16.gmra.mrb[80].mxu0 %vm722_vm2, %v2835_v8 }
 0x902   : > { %6307 = vmatprep.mubr.msk.bf16.mxu0 %vm722_vm2, %v2837_v23 }
 0x904   : > { %v2839_v21 = vpop.permute.xlu0 %2838 }
 0x908   : > { %3995 = vrot.lane.b32.xlu1 %v7756_v25, %s7358_s17 }
 0x909   : > { %6308 = vmatmul.mubr.msk.bf16.gmra.mrb[84].mxu0 %vm722_vm2, %v2839_v21 }
 0x90a   : > { %4042 = vrot.lane.b32.xlu0 %v9678_v47, %s7358_s17  ;;  %6313 = vmatprep.mubr.msk.bf16.mxu0 %vm722_vm2, %v8696_v50 }
 0x911   : > { %6314 = vmatmul.mubr.msk.bf16.vlgmr.msra.gmra.mrb[72].mxu0 %vm722_vm2, %v8785_v56 }
 0x912   : > { %6378 = vmatpush3.bf16.msra.mxu0 %v8826_v16  ;;  %6317 = vmatprep.mubr.msk.bf16.mxu0 %vm722_vm2, %v8800_v27 }
 0x913   : > { %6389 = vmatprep.subr.bf16.mxu0 %v9660_v35 }
 0x919   : > { %6318 = vmatmul.mubr.msk.bf16.gmra.mrb[76].mxu0 %vm722_vm2, %v8702_v39 }
 0x91a   : > { %6321 = vmatprep.mubr.msk.bf16.mxu0 %vm722_vm2, %v8814_v15 }
 0x921   : > { %6322 = vmatmul.mubr.msk.bf16.gmra.mrb[80].mxu0 %vm722_vm2, %v8708_v0 }
 0x922   : > { %6325 = vmatprep.mubr.msk.bf16.mxu0 %vm722_vm2, %v8824_v32 }
 0x929   : > { %6326 = vmatmul.mubr.msk.bf16.gmra.mrb[84].mxu0 %vm722_vm2, %v8712_v52 }
 0x92a   : > { %6379 = vmatprep.mubr.msk.bf16.mxu0 %vm7353_vm1, %v9660_v35 }
 0x965   : > { %v3630_v50 = vpop.xlane.xlu0 %3629 }
 0x966   : > { %6995 = vrcp.f32 %v3630_v50 }
 0x968   : > { %v3627_v56 = vpop.xlane.xlu1 %3626 }
 0x969   : > { %6997 = vrcp.f32 %v3627_v56  ;;  %v3633_v39 = vpop.xlane.xlu0 %3632 }
 0x96a   : > { %6999 = vrcp.f32 %v3633_v39 }
 0x96c   : > { %v3636_v27 = vpop.xlane.xlu1 %3635 }
 0x96d   : > { %7001 = vrcp.f32 %v3636_v27  ;;  %v3642_v15 = vpop.xlane.xlu0 %3641 }
 0x96e   : > { %7003 = vrcp.f32 %v3642_v15 }
 0x970   : > { %v3639_v0 = vpop.xlane.xlu1 %3638  ;;  %v6996_v16 = vpop.eup %6995 }
 0x971   : > { %7005 = vrcp.f32 %v3639_v0  ;;  %v3645_v32 = vpop.xlane.xlu0 %3644  ;;  %v3690_v52 = vmul.f32 %v6996_v16, %v8870_v59 }
 0x972   : > { %7007 = vrcp.f32 %v3645_v32 }
 0x973   : > { %v6998_v57 = vpop.eup %6997 }
 0x974   : > { %v3689_v34 = vmul.f32 %v6998_v57, %v8876_v12  ;;  %v3648_v18 = vpop.xlane.xlu1 %3647  ;;  %v7000_v4 = vpop.eup %6999 }
 0x975   : > { %7009 = vrcp.f32 %v3648_v18  ;;  %v3654_v11 = vpop.xlane.xlu0 %3653  ;;  %v3691_v30 = vmul.f32 %v7000_v4, %v8878_v63 }
 0x976   : > { %v3705_v51 = vpack.c.bf16 %v3690_v52, %v3689_v34  ;;  %7011 = vrcp.f32 %v3654_v11 }
 0x977   : > { %v7002_v28 = vpop.eup %7001 }
 0x978   : > { %v3692_v13 = vmul.f32 %v7002_v28, %v8886_v62  ;;  %6380 = vmatmul.mubr.msk.bf16.vlgmr.msra.gmra.mrb[88].mxu0 %vm722_vm2, %v3705_v51  ;;  %v3651_v48 = vpop.xlane.xlu1 %3650  ;;  %v7004_v43 = vpop.eup %7003 }
 0x979   : > { %6390 = vmatpush3.bf16.msra.mxu0 %v8828_v5  ;;  %7013 = vrcp.f32 %v3651_v48  ;;  %v3657_v59 = vpop.xlane.xlu0 %3656  ;;  %6391 = vmatprep.mubr.msk.bf16.mxu0 %vm7353_vm1, %v9660_v35  ;;  %v3694_v63 = vmul.f32 %v7004_v43, %v8888_v22 }
 0x97a   : > { %v3706_v12 = vpack.c.bf16 %v3692_v13, %v3691_v30  ;;  %6401 = vmatprep.subr.bf16.mxu0 %v9660_v35  ;;  %7015 = vrcp.f32 %v3657_v59 }
 0x97b   : > { %v7006_v31 = vpop.eup %7005 }
 0x97c   : > { %v3693_v62 = vmul.f32 %v7006_v31, %v8896_v33  ;;  %6386 = vmatmul.mubr.msk.bf16.vlgmr.msra.gmra.mrb[120].mxu1 %vm722_vm2, %v3706_v12  ;;  %v3660_v8 = vpop.xlane.xlu1 %3659  ;;  %v7008_v23 = vpop.eup %7007 }
 0x97d   : > { %6396 = vmatpush3.bf16.msra.mxu1 %v8830_v49  ;;  %7017 = vrcp.f32 %v3660_v8  ;;  %v3666_v5 = vpop.xlane.xlu0 %3665  ;;  %6397 = vmatprep.mubr.msk.bf16.mxu1 %vm7353_vm1, %v9660_v35  ;;  %v3695_v22 = vmul.f32 %v7008_v23, %v8898_v53 }
 0x97e   : > { %v3707_v21 = vpack.c.bf16 %v3694_v63, %v3693_v62  ;;  %6407 = vmatprep.subr.bf16.mxu1 %v9660_v35  ;;  %7019 = vrcp.f32 %v3666_v5 }
 0x97f   : > { %v7010_v50 = vpop.eup %7009 }
 0x980   : > { %v3696_v33 = vmul.f32 %v7010_v50, %v8906_v55  ;;  %6392 = vmatmul.mubr.msk.bf16.vlgmr.msra.gmra.mrb[92].mxu0 %vm722_vm2, %v3707_v21  ;;  %v3663_v56 = vpop.xlane.xlu1 %3662  ;;  %v7012_v39 = vpop.eup %7011 }
 0x981   : > { %6402 = vmatpush3.bf16.msra.mxu0 %v8832_v3  ;;  %7021 = vrcp.f32 %v3663_v56  ;;  %v3669_v49 = vpop.xlane.xlu0 %3668  ;;  %6403 = vmatprep.mubr.msk.bf16.mxu0 %vm7353_vm1, %v9660_v35  ;;  %v3698_v53 = vmul.f32 %v7012_v39, %v8908_v24 }
 0x982   : > { %v3708_v27 = vpack.c.bf16 %v3696_v33, %v3695_v22  ;;  %6413 = vmatprep.subr.bf16.mxu0 %v9660_v35  ;;  %7023 = vrcp.f32 %v3669_v49 }
 0x983   : > { %v7014_v15 = vpop.eup %7013 }
 0x984   : > { %v3697_v55 = vmul.f32 %v7014_v15, %v8915_v40  ;;  %6398 = vmatmul.mubr.msk.bf16.vlgmr.msra.gmra.mrb[124].mxu1 %vm722_vm2, %v3708_v27  ;;  %v3672_v0 = vpop.xlane.xlu1 %3671  ;;  %v7016_v16 = vpop.eup %7015 }
 0x985   : > { %6408 = vmatpush3.bf16.msra.mxu1 %v8834_v61  ;;  %7025 = vrcp.f32 %v3672_v0  ;;  %6409 = vmatprep.mubr.msk.bf16.mxu1 %vm7353_vm1, %v9660_v35  ;;  %v3699_v57 = vmul.f32 %v7016_v16, %v8917_v14  ;;  %v4043_v11 = vpop.permute.xlu0 %4042 }
 0x986   : > { %v3709_v3 = vpack.c.bf16 %v3698_v53, %v3697_v55  ;;  %6419 = vmatprep.subr.bf16.mxu1 %v9660_v35 }
 0x987   : > { %v7018_v32 = vpop.eup %7017 }
 0x988   : > { %v3700_v24 = vmul.f32 %v7018_v32, %v8925_v29  ;;  %6404 = vmatmul.mubr.msk.bf16.vlgmr.msra.gmra.mrb[96].mxu0 %vm722_vm2, %v3709_v3  ;;  %v3996_v40 = vpop.permute.xlu1 %3995  ;;  %v7020_v52 = vpop.eup %7019 }
 0x989   : > { %6414 = vmatpush3.bf16.msra.mxu0 %v3996_v40  ;;  %6415 = vmatprep.mubr.msk.bf16.mxu0 %vm7353_vm1, %v9660_v35  ;;  %v3702_v18 = vmul.f32 %v7020_v52, %v8928_v19  ;;  %v9679_v52 = vld [vmem:[#allocation24_spill] sm:$0xff] }
 0x98a   : > { %v3710_v61 = vpack.c.bf16 %v3700_v24, %v3699_v57 }
 0x98b   : > { %v7022_v34 = vpop.eup %7021 }
 0x98c   : > { %v3701_v4 = vmul.f32 %v7022_v34, %v8936_v7  ;;  %6410 = vmatmul.mubr.msk.bf16.vlgmr.msra.gmra.mrb[128].mxu1 %vm722_vm2, %v3710_v61  ;;  %v7024_v14 = vpop.eup %7023  ;;  %v6769_v61 = vld [vmem:[#allocation8 + $0x10] sm:$0xff]  }
 0x98d   : > { %6420 = vmatpush3.bf16.msra.mxu1 %v4043_v11  ;;  %6421 = vmatprep.mubr.msk.bf16.mxu1 %vm7353_vm1, %v9660_v35  ;;  %v3703_v28 = vmul.f32 %v7024_v14, %v8938_v54 }
 0x98e   : > { %v3711_v29 = vpack.c.bf16 %v3702_v18, %v3701_v4  ;;  %6443 = vmatprep.subr.bf16.mxu1 %v9660_v35  ;;  %6425 = vmatprep.subr.bf16.mxu0 %v6769_v61 }
 0x98f   : > { %v7026_v51 = vpop.eup %7025 }
 0x990   : > { %v3704_v30 = vmul.f32 %v7026_v51, %v8944_v58  ;;  %6416 = vmatmul.mubr.msk.bf16.vlgmr.msra.gmra.mrb[100].mxu0 %vm722_vm2, %v3711_v29 }
 0x991   : > { %6426 = vmatpush3.bf16.msra.mxu0 %v6769_v61 }
 0x992   : > { %v3712_v19 = vpack.c.bf16 %v3704_v30, %v3703_v28  ;;  %6467 = vmatprep.subr.bf16.mxu0 %v9660_v35 }
 0x994   : > { %6422 = vmatmul.mubr.msk.bf16.vlgmr.msra.gmra.mrb[132].mxu1 %vm722_vm2, %v3712_v19 }
 0x995   : > { %6445 = vmatprep.mubr.msk.bf16.mxu1 %vm7353_vm1, %v9660_v35 }
 0xa4b   : > { %v3753_v7 = vpop.f32.mrb[88].mxu0 }
 0xa4c   : > { %4105 = vrot.lane.b32.xlu1 %v3753_v7, %s7358_s17  ;;  %v6381_v13 = vpop.f32.mrb[89].mxu0 }
 0xa4d   : > { %v3756_v48 = vpop.f32.mrb[90].mxu0 }
 0xa4e   : > { %4107 = vrot.lane.b32.xlu0 %v3756_v48, %s7358_s17  ;;  %v6382_v43 = vpop.f32.mrb[91].mxu0 }
 0xa4f   : > { %v3800_v59 = vpop.f32.mrb[120].mxu1 }
 0xa50   : > { %4109 = vrot.lane.b32.xlu1 %v3800_v59, %s7358_s17  ;;  %v6387_v54 = vpop.f32.mrb[121].mxu1  ;;  %v9680_v59 = vld [vmem:[#allocation30_spill] sm:$0xff] }
 0xa51   : > { %v3803_v58 = vpop.f32.mrb[122].mxu1 }
 0xa52   : > { %4111 = vrot.lane.b32.xlu0 %v3803_v58, %s7358_s17  ;;  %v6388_v12 = vpop.f32.mrb[123].mxu1 }
 0xa53   : > { %v3847_v31 = vpop.f32.mrb[92].mxu0 }
 0xa54   : > { %v6393_v63 = vpop.f32.mrb[93].mxu0  ;;  %4113 = vrot.lane.b32.xlu1 %v3847_v31, %s7358_s17 }
 0xa55   : > { %v3850_v62 = vpop.f32.mrb[94].mxu0 }
 0xa56   : > { %v6394_v8 = vpop.f32.mrb[95].mxu0  ;;  %4115 = vrot.lane.b32.xlu0 %v3850_v62, %s7358_s17 }
 0xa57   : > { %v3894_v23 = vpop.f32.mrb[124].mxu1 }
 0xa58   : > { %4117 = vrot.lane.b32.xlu1 %v3894_v23, %s7358_s17  ;;  %v6399_v5 = vpop.f32.mrb[125].mxu1 }
 0xa59   : > { %v3897_v21 = vpop.f32.mrb[126].mxu1 }
 0xa5a   : > { %4119 = vrot.lane.b32.xlu0 %v3897_v21, %s7358_s17  ;;  %v6400_v50 = vpop.f32.mrb[127].mxu1 }
 0xa5b   : > { %v3941_v22 = vpop.f32.mrb[96].mxu0 }
 0xa5c   : > { %v6405_v33 = vpop.f32.mrb[97].mxu0  ;;  %4121 = vrot.lane.b32.xlu1 %v3941_v22, %s7358_s17 }
 0xa5d   : > { %v3944_v56 = vpop.f32.mrb[98].mxu0 }
 0xa5e   : > { %v6406_v39 = vpop.f32.mrb[99].mxu0  ;;  %4123 = vrot.lane.b32.xlu0 %v3944_v56, %s7358_s17 }
 0xa5f   : > { %v3988_v49 = vpop.f32.mrb[128].mxu1 }
 0xa60   : > { %4125 = vrot.lane.b32.xlu1 %v3988_v49, %s7358_s17  ;;  %v6411_v27 = vpop.f32.mrb[129].mxu1 }
 0xa61   : > { %v3991_v15 = vpop.f32.mrb[130].mxu1 }
 0xa62   : > { %4127 = vrot.lane.b32.xlu0 %v3991_v15, %s7358_s17  ;;  %v6412_v53 = vpop.f32.mrb[131].mxu1 }
 0xa63   : > { %v4035_v55 = vpop.f32.mrb[100].mxu0 }
 0xa64   : > { %v6417_v0 = vpop.f32.mrb[101].mxu0  ;;  %4129 = vrot.lane.b32.xlu1 %v4035_v55, %s7358_s17 }
 0xa65   : > { %v4038_v16 = vpop.f32.mrb[102].mxu0  ;;  %v9681_v0 = vld [vmem:[#allocation44_spill] sm:$0xff] }
 0xa66   : > { %v6418_v3 = vpop.f32.mrb[103].mxu0  ;;  %4131 = vrot.lane.b32.xlu0 %v4038_v16, %s7358_s17 }
 0xa67   : > { %v4082_v32 = vpop.f32.mrb[132].mxu1 }
 0xa68   : > { %4133 = vrot.lane.b32.xlu1 %v4082_v32, %s7358_s17  ;;  %v6423_v57 = vpop.f32.mrb[133].mxu1 }
 0xa69   : > { %v4085_v24 = vpop.f32.mrb[134].mxu1 }
 0xa6a   : > { %4135 = vrot.lane.b32.xlu0 %v4085_v24, %s7358_s17  ;;  %v6424_v40 = vpop.f32.mrb[135].mxu1  ;;  %v9682_v24 = vld [vmem:[#allocation40_spill] sm:$0xff] }
 0xa6c   : > { %4352 = vrot.lane.b32.xlu1 %v9679_v52, %s7360_s20 }
 0xa6e   : > { %4350 = vrot.lane.b32.xlu0 %v9679_v52, %s7359_s4 }
 0xabe   : > { %v4106_v34 = vpop.permute.xlu1 %4105 }
 0xabf   : > { %v4153_v4 = vmul.f32 %v8620_v26, %v4106_v34  ;;  %v9683_v34 = vld [vmem:[#allocation48_spill] sm:$0xff] }
 0xac0   : > { %v4108_v18 = vpop.permute.xlu0 %4107 }
 0xac1   : > { %v4154_v11 = vmul.f32 %v8622_v9, %v4108_v18  ;;  %v9684_v18 = vld [vmem:[#allocation26_spill] sm:$0xff] }
 0xac2   : > { %v4110_v14 = vpop.permute.xlu1 %4109 }
 0xac3   : > { %v4169_v29 = vpack.c.bf16 %v4154_v11, %v4153_v4  ;;  %v4155_v28 = vmul.f32 %v8618_v44, %v4110_v14  ;;  %v9685_v11 = vld [vmem:[#allocation32_spill] sm:$0xff] }
 0xac4   : > { %v4112_v51 = vpop.permute.xlu0 %4111 }
 0xac5   : > { %v4156_v30 = vmul.f32 %v8631_v36, %v4112_v51  ;;  %4188 = vrot.lane.b32.xlu0 %v4169_v29, %s7357_s9 }
 0xac6   : > { %v4114_v19 = vpop.permute.xlu1 %4113 }
 0xac7   : > { %v4170_v7 = vpack.c.bf16 %v4156_v30, %v4155_v28  ;;  %v4157_v48 = vmul.f32 %v8636_v60, %v4114_v19 }
 0xac8   : > { %v4116_v13 = vpop.permute.xlu0 %4115 }
 0xac9   : > { %v4158_v43 = vmul.f32 %v8626_v42, %v4116_v13  ;;  %4190 = vrot.lane.b32.xlu1 %v4170_v7, %s7357_s9  ;;  %4401 = vrot.lane.b32.xlu0 %v9680_v59, %s7359_s4 }
 0xaca   : > { %v4118_v54 = vpop.permute.xlu1 %4117 }
 0xacb   : > { %v4171_v58 = vpack.c.bf16 %v4158_v43, %v4157_v48  ;;  %v4159_v31 = vmul.f32 %v8633_v37, %v4118_v54 }
 0xacc   : > { %v4120_v12 = vpop.permute.xlu0 %4119 }
 0xacd   : > { %v4160_v63 = vmul.f32 %v8644_v20, %v4120_v12  ;;  %4403 = vrot.lane.b32.xlu1 %v9680_v59, %s7360_s20  ;;  %4192 = vrot.lane.b32.xlu0 %v4171_v58, %s7357_s9 }
 0xace   : > { %v4122_v62 = vpop.permute.xlu1 %4121 }
 0xacf   : > { %v4172_v8 = vpack.c.bf16 %v4160_v63, %v4159_v31  ;;  %v4161_v5 = vmul.f32 %v8638_v2, %v4122_v62 }
 0xad0   : > { %v4124_v23 = vpop.permute.xlu0 %4123 }
 0xad1   : > { %v4162_v21 = vmul.f32 %v8650_v17, %v4124_v23  ;;  %4194 = vrot.lane.b32.xlu1 %v4172_v8, %s7357_s9  ;;  %4452 = vrot.lane.b32.xlu0 %v7786_v41, %s7359_s4 }
 0xad2   : > { %v4126_v50 = vpop.permute.xlu1 %4125 }
 0xad3   : > { %v4173_v22 = vpack.c.bf16 %v4162_v21, %v4161_v5  ;;  %v4163_v56 = vmul.f32 %v8646_v45, %v4126_v50 }
 0xad4   : > { %v4128_v33 = vpop.permute.xlu0 %4127 }
 0xad5   : > { %v4164_v39 = vmul.f32 %v8655_v1, %v4128_v33  ;;  %4454 = vrot.lane.b32.xlu1 %v7786_v41, %s7360_s20  ;;  %4196 = vrot.lane.b32.xlu0 %v4173_v22, %s7357_s9 }
 0xad6   : > { %v4130_v49 = vpop.permute.xlu1 %4129 }
 0xad7   : > { %v4174_v27 = vpack.c.bf16 %v4164_v39, %v4163_v56  ;;  %v4165_v53 = vmul.f32 %v8662_v38, %v4130_v49 }
 0xad8   : > { %v4132_v15 = vpop.permute.xlu0 %4131 }
 0xad9   : > { %v4166_v55 = vmul.f32 %v8667_v46, %v4132_v15  ;;  %4198 = vrot.lane.b32.xlu1 %v4174_v27, %s7357_s9  ;;  %4556 = vrot.lane.b32.xlu0 %v9681_v0, %s7360_s20 }
 0xada   : > { %v4134_v16 = vpop.permute.xlu1 %4133 }
 0xadb   : > { %v4175_v3 = vpack.c.bf16 %v4166_v55, %v4165_v53  ;;  %v4167_v57 = vmul.f32 %v8664_v6, %v4134_v16  ;;  %v9148_v53 = vld [vmem:[%s7702_s19 + $0x30] sm:$0xff] }
 0xadc   : > { %v4136_v32 = vpop.permute.xlu0 %4135 }
 0xadd   : > { %v4168_v41 = vmul.f32 %v8669_v10, %v4136_v32  ;;  %4505 = vrot.lane.b32.xlu1 %v9682_v24, %s7360_s20  ;;  %4200 = vrot.lane.b32.xlu0 %v4175_v3, %s7357_s9 }
 0xade   : > { %v4353_v40 = vpop.permute.xlu1 %4352 }
 0xadf   : > { %v4176_v52 = vpack.c.bf16 %v4168_v41, %v4167_v57  ;;  %v4358_v61 = vsel %vm722_vm2, %v4353_v40, 0 }
 0xae0   : > { %6444 = vmatpush3.bf16.xpose.msra.mxu1 %v4358_v61  ;;  %v4351_v4 = vpop.permute.xlu0 %4350 }
 0xae1   : > { %4607 = vrot.lane.b32.xlu0 %v9683_v34, %s7360_s20  ;;  %4202 = vrot.lane.b32.xlu1 %v4176_v52, %s7357_s9 }
 0xae2   : > { %6449 = vmatprep.subr.bf16.mxu1 %v9660_v35 }
 0xae5   : > { %4658 = vrot.lane.b32.xlu0 %v9684_v18, %s7360_s20  ;;  %4503 = vrot.lane.b32.xlu1 %v9682_v24, %s7359_s4 }
 0xae7   : > { %6446 = vmatmul.mubr.msk.bf16.vlgmr.msra.gmra.mrb[136].mxu1 %vm722_vm2, %v4351_v4 }
 0xae8   : > { %6451 = vmatprep.mubr.msk.bf16.mxu1 %vm7353_vm1, %v9660_v35 }
 0xae9   : > { %4709 = vrot.lane.b32.xlu0 %v9685_v11, %s7360_s20  ;;  %4554 = vrot.lane.b32.xlu1 %v9681_v0, %s7359_s4  ;;  %v9151_v0 = vld [vmem:[%s7702_s19 + $0x38] sm:$0xff]  ;;  %s5930_s19 = sshll.u32 %s9693_s24, 5  ;;  %s7213_s24 = scalar_lea.vmem %s7212_s16, 4096 }
 0xaea   : > { %s5628_s8 = sadd.s32 %s5936_s28, %s5930_s19  ;;  %p7215_p4 = scmp.lt.s32.totalorder %s7213_s24, %s7207_s14 }
 0xaeb   : > { %s5931_s9 = sshll.u32 %s5628_s8, 7 }
 0xaec   : > { %p7216_p12 = por %p7215_p4, %p7214_p1 }
 0xaed   : > { %4707 = vrot.lane.b32.xlu0 %v9685_v11, %s7359_s4  ;;  %4605 = vrot.lane.b32.xlu1 %v9683_v34, %s7359_s4 }
 0xaee   : > { %p7217_p2 = pnand %p7216_p12, %p7210_p7 }
 0xaf1   : > { %4656 = vrot.lane.b32.xlu1 %v9684_v18, %s7359_s4 }
 0xb37   : > { %v4189_v14 = vpop.permute.xlu0 %4188 }
 0xb38   : > { %6427 = vmatprep.mubr.msk.bf16.mxu0 %vm722_vm2, %v4189_v14 }
 0xb3b   : > { %v4191_v29 = vpop.permute.xlu1 %4190  ;;  %v4402_v51 = vpop.permute.xlu0 %4401 }
 0xb3c   : > { %6428 = vmatmul.mubr.msk.bf16.vlgmr.msra.gmra.mrb[72].mxu0 %vm722_vm2, %v4191_v29 }
 0xb3f   : > { %v4404_v28 = vpop.permute.xlu1 %4403  ;;  %v4193_v30 = vpop.permute.xlu0 %4192 }
 0xb40   : > { %v4409_v19 = vsel %vm722_vm2, %v4404_v28, 0  ;;  %6431 = vmatprep.mubr.msk.bf16.mxu0 %vm722_vm2, %v4193_v30 }
 0xb41   : > { %6450 = vmatpush3.bf16.xpose.msra.mxu1 %v4409_v19 }
 0xb42   : > { %6455 = vmatprep.subr.bf16.mxu1 %v9660_v35 }
 0xb43   : > { %v4195_v7 = vpop.permute.xlu1 %4194  ;;  %v4453_v13 = vpop.permute.xlu0 %4452 }
 0xb44   : > { %6432 = vmatmul.mubr.msk.bf16.gmra.mrb[76].mxu0 %vm722_vm2, %v4195_v7 }
 0xb47   : > { %v4455_v48 = vpop.permute.xlu1 %4454  ;;  %v4197_v43 = vpop.permute.xlu0 %4196 }
 0xb48   : > { %v4460_v59 = vsel %vm722_vm2, %v4455_v48, 0  ;;  %6435 = vmatprep.mubr.msk.bf16.mxu0 %vm722_vm2, %v4197_v43  ;;  %6452 = vmatmul.mubr.msk.bf16.vlgmr.msra.gmra.mrb[140].mxu1 %vm722_vm2, %v4402_v51 }
 0xb49   : > { %6456 = vmatpush3.bf16.xpose.msra.mxu1 %v4460_v59  ;;  %6457 = vmatprep.mubr.msk.bf16.mxu1 %vm7353_vm1, %v9660_v35 }
 0xb4a   : > { %6461 = vmatprep.subr.bf16.mxu1 %v9660_v35 }
 0xb4b   : > { %v4199_v54 = vpop.permute.xlu1 %4198  ;;  %v4557_v58 = vpop.permute.xlu0 %4556 }
 0xb4c   : > { %v4562_v12 = vsel %vm722_vm2, %v4557_v58, 0  ;;  %6436 = vmatmul.mubr.msk.bf16.gmra.mrb[80].mxu0 %vm722_vm2, %v4199_v54 }
 0xb4d   : > { %6468 = vmatpush3.bf16.xpose.msra.mxu0 %v4562_v12 }
 0xb4e   : > { %6479 = vmatprep.subr.bf16.mxu0 %v9660_v35 }
 0xb4f   : > { %v4506_v31 = vpop.permute.xlu1 %4505  ;;  %v4201_v63 = vpop.permute.xlu0 %4200 }
 0xb50   : > { %v4511_v62 = vsel %vm722_vm2, %v4506_v31, 0  ;;  %6439 = vmatprep.mubr.msk.bf16.mxu0 %vm722_vm2, %v4201_v63  ;;  %6458 = vmatmul.mubr.msk.bf16.vlgmr.msra.gmra.mrb[144].mxu1 %vm722_vm2, %v4453_v13 }
 0xb51   : > { %6462 = vmatpush3.bf16.xpose.msra.mxu1 %v4511_v62  ;;  %6463 = vmatprep.mubr.msk.bf16.mxu1 %vm7353_vm1, %v9660_v35 }
 0xb52   : > { %6473 = vmatprep.subr.bf16.mxu1 %v9660_v35 }
 0xb53   : > { %v4203_v8 = vpop.permute.xlu1 %4202  ;;  %v4608_v23 = vpop.permute.xlu0 %4607 }
 0xb54   : > { %6440 = vmatmul.mubr.msk.bf16.gmra.mrb[84].mxu0 %vm722_vm2, %v4203_v8  ;;  %v4613_v50 = vsel %vm722_vm2, %v4608_v23, 0 }
 0xb55   : > { %6469 = vmatprep.mubr.msk.bf16.mxu0 %vm7353_vm1, %v9660_v35 }
 0xb57   : > { %v4504_v5 = vpop.permute.xlu1 %4503  ;;  %v4659_v21 = vpop.permute.xlu0 %4658 }
 0xb58   : > { %6464 = vmatmul.mubr.msk.bf16.vlgmr.msra.gmra.mrb[148].mxu1 %vm722_vm2, %v4504_v5  ;;  %v4664_v33 = vsel %vm722_vm2, %v4659_v21, 0 }
 0xb59   : > { %6474 = vmatpush3.bf16.xpose.msra.mxu1 %v4613_v50  ;;  %6475 = vmatprep.mubr.msk.bf16.mxu1 %vm7353_vm1, %v9660_v35 }
 0xb5a   : > { %6485 = vmatprep.subr.bf16.mxu1 %v9660_v35 }
 0xb5b   : > { %v4555_v22 = vpop.permute.xlu1 %4554  ;;  %v4710_v56 = vpop.permute.xlu0 %4709 }
 0xb5c   : > { %6470 = vmatmul.mubr.msk.bf16.vlgmr.msra.gmra.mrb[104].mxu0 %vm722_vm2, %v4555_v22  ;;  %v4715_v49 = vsel %vm722_vm2, %v4710_v56, 0 }
 0xb5d   : > { %6480 = vmatpush3.bf16.xpose.msra.mxu0 %v4664_v33  ;;  %6481 = vmatprep.mubr.msk.bf16.mxu0 %vm7353_vm1, %v9660_v35 }
 0xb5e   : > { %6491 = vmatprep.subr.bf16.mxu0 %v9660_v35 }
 0xb5f   : > { %v4606_v39 = vpop.permute.xlu1 %4605  ;;  %v4708_v15 = vpop.permute.xlu0 %4707 }
 0xb60   : > { %6476 = vmatmul.mubr.msk.bf16.vlgmr.msra.gmra.mrb[152].mxu1 %vm722_vm2, %v4606_v39 }
 0xb61   : > { %6486 = vmatpush3.bf16.xpose.msra.mxu1 %v4715_v49  ;;  %6487 = vmatprep.mubr.msk.bf16.mxu1 %vm7353_vm1, %v9660_v35 }
 0xb62   : > { %6497 = vmatprep.subr.bf16.mxu1 %v9660_v35 }
 0xb63   : > { %v4657_v27 = vpop.permute.xlu1 %4656 }
 0xb64   : > { %6482 = vmatmul.mubr.msk.bf16.vlgmr.msra.gmra.mrb[108].mxu0 %vm722_vm2, %v4657_v27 }
 0xb65   : > { %6493 = vmatprep.mubr.msk.bf16.mxu0 %vm7353_vm1, %v9660_v35 }
 0xb68   : > { %6488 = vmatmul.mubr.msk.bf16.vlgmr.msra.gmra.mrb[156].mxu1 %vm722_vm2, %v4708_v15 }
 0xb69   : > { %6499 = vmatprep.mubr.msk.bf16.mxu1 %vm7353_vm1, %v9660_v35 }
 0xbba   : > { %v4394_v55 = vpop.f32.mrb[136].mxu1 }
 0xbbb   : > { %v9154_v16 = vadd.f32 %v9148_v53, %v4394_v55  ;;  %v6447_v3 = vpop.f32.mrb[137].mxu1 }
 0xbbc   : > { %v4397_v32 = vpop.f32.mrb[138].mxu1 }
 0xbbd   : > { %v9157_v57 = vadd.f32 %v9151_v0, %v4397_v32  ;;  %v6448_v41 = vpop.f32.mrb[139].mxu1  ;;  %v4758_v24 = vsel %vm722_vm2, %v9154_v16, -inf }
 0xbbe   : > { %4759 = vmax.xlane.f32.xlu1 %v4758_v24 }
 0xbbf   : > { %v4761_v40 = vsel %vm722_vm2, %v9157_v57, -inf }
 0xbc0   : > { %4762 = vmax.xlane.f32.xlu0 %v4761_v40 }
 0xc1b   : > { %v4445_v52 = vpop.f32.mrb[140].mxu1 }
 0xc1c   : > { %v9164_v61 = vadd.f32 %v9148_v53, %v4445_v52  ;;  %v6453_v34 = vpop.f32.mrb[141].mxu1 }
 0xc1d   : > { %v4448_v18 = vpop.f32.mrb[142].mxu1 }
 0xc1e   : > { %v9167_v4 = vadd.f32 %v9151_v0, %v4448_v18  ;;  %v6454_v11 = vpop.f32.mrb[143].mxu1  ;;  %v4764_v14 = vsel %vm722_vm2, %v9164_v61, -inf }
 0xc1f   : > { %4765 = vmax.xlane.f32.xlu0 %v4764_v14 }
 0xc20   : > { %v4767_v29 = vsel %vm722_vm2, %v9167_v4, -inf }
 0xc21   : > { %4768 = vmax.xlane.f32.xlu1 %v4767_v29 }
 0xc23   : > { %v4496_v51 = vpop.f32.mrb[144].mxu1 }
 0xc24   : > { %v9174_v28 = vadd.f32 %v9148_v53, %v4496_v51  ;;  %v6459_v30 = vpop.f32.mrb[145].mxu1 }
 0xc25   : > { %v4499_v19 = vpop.f32.mrb[146].mxu1 }
 0xc26   : > { %v9177_v7 = vadd.f32 %v9151_v0, %v4499_v19  ;;  %v6460_v13 = vpop.f32.mrb[147].mxu1  ;;  %v4770_v48 = vsel %vm722_vm2, %v9174_v28, -inf }
 0xc27   : > { %4771 = vmax.xlane.f32.xlu0 %v4770_v48 }
 0xc28   : > { %v4773_v43 = vsel %vm722_vm2, %v9177_v7, -inf }
 0xc29   : > { %4774 = vmax.xlane.f32.xlu1 %v4773_v43 }
 0xc2b   : > { %v4547_v59 = vpop.f32.mrb[148].mxu1 }
 0xc2c   : > { %v9184_v54 = vadd.f32 %v9148_v53, %v4547_v59  ;;  %v6465_v58 = vpop.f32.mrb[149].mxu1 }
 0xc2d   : > { %v4550_v12 = vpop.f32.mrb[150].mxu1 }
 0xc2e   : > { %v9187_v31 = vadd.f32 %v9151_v0, %v4550_v12  ;;  %v6466_v63 = vpop.f32.mrb[151].mxu1  ;;  %v4776_v62 = vsel %vm722_vm2, %v9184_v54, -inf }
 0xc2f   : > { %v4598_v8 = vpop.f32.mrb[104].mxu0  ;;  %4777 = vmax.xlane.f32.xlu0 %v4776_v62 }
 0xc30   : > { %v6471_v23 = vpop.f32.mrb[105].mxu0  ;;  %v4779_v5 = vsel %vm722_vm2, %v9187_v31, -inf  ;;  %v9207_v11 = vadd.f32 %v9148_v53, %v4598_v8 }
 0xc31   : > { %v4601_v21 = vpop.f32.mrb[106].mxu0  ;;  %4780 = vmax.xlane.f32.xlu1 %v4779_v5 }
 0xc32   : > { %v6472_v50 = vpop.f32.mrb[107].mxu0  ;;  %v4782_v19 = vsel %vm722_vm2, %v9207_v11, -inf }
 0xc33   : > { %v4649_v22 = vpop.f32.mrb[152].mxu1 }
 0xc34   : > { %v9194_v33 = vadd.f32 %v9148_v53, %v4649_v22  ;;  %v6477_v56 = vpop.f32.mrb[153].mxu1 }
 0xc35   : > { %v4652_v39 = vpop.f32.mrb[154].mxu1 }
 0xc36   : > { %v9197_v49 = vadd.f32 %v9151_v0, %v4652_v39  ;;  %v6478_v27 = vpop.f32.mrb[155].mxu1  ;;  %v4788_v15 = vsel %vm722_vm2, %v9194_v33, -inf }
 0xc37   : > { %v4700_v55 = vpop.f32.mrb[108].mxu0  ;;  %4789 = vmax.xlane.f32.xlu0 %v4788_v15 }
 0xc38   : > { %v6483_v3 = vpop.f32.mrb[109].mxu0  ;;  %v4791_v32 = vsel %vm722_vm2, %v9197_v49, -inf  ;;  %v9223_v62 = vadd.f32 %v9148_v53, %v4700_v55 }
 0xc39   : > { %v4703_v41 = vpop.f32.mrb[110].mxu0  ;;  %4792 = vmax.xlane.f32.xlu1 %v4791_v32 }
 0xc3a   : > { %v6484_v24 = vpop.f32.mrb[111].mxu0  ;;  %v4794_v5 = vsel %vm722_vm2, %v9223_v62, -inf }
 0xc3b   : > { %v4751_v40 = vpop.f32.mrb[156].mxu1 }
 0xc3c   : > { %v9204_v52 = vadd.f32 %v9148_v53, %v4751_v40  ;;  %v6489_v34 = vpop.f32.mrb[157].mxu1 }
 0xc3d   : > { %v4754_v18 = vpop.f32.mrb[158].mxu1 }
 0xc3e   : > { %v9210_v14 = vadd.f32 %v9151_v0, %v4754_v18  ;;  %v6490_v29 = vpop.f32.mrb[159].mxu1  ;;  %v4800_v51 = vsel %vm722_vm2, %v9204_v52, -inf }
 0xc3f   : > { %4801 = vmax.xlane.f32.xlu0 %v4800_v51 }
 0xc40   : > { %v4803_v30 = vsel %vm722_vm2, %v9210_v14, -inf }
 0xc41   : > { %4804 = vmax.xlane.f32.xlu1 %v4803_v30 }
 0xc43   : > { %4783 = vmax.xlane.f32.xlu0 %v4782_v19 }
 0xc4b   : > { %v4760_v13 = vpop.xlane.xlu1 %4759 }
 0xc4c   : > { %v4806_v48 = vsub.f32 %v9154_v16, %v4760_v13  ;;  %v9230_v16 = vadd.f32 %v9151_v0, %v4601_v21 }
 0xc4d   : > { %v4763_v43 = vpop.xlane.xlu0 %4762 }
 0xc4e   : > { %v4822_v59 = vmul.f32 1.442695, %v4806_v48  ;;  %v4807_v58 = vsub.f32 %v9157_v57, %v4763_v43  ;;  %v4785_v53 = vsel %vm722_vm2, %v9230_v16, -inf }
 0xc50   : > { %7027 = vpow2.f32 %v4822_v59  ;;  %v4824_v12 = vmul.f32 1.442695, %v4807_v58 }
 0xc52   : > { %7029 = vpow2.f32 %v4824_v12 }
 0xc5a   : > { %v9220_v63 = vpop.eup %7027 }
 0xc5b   : > { %v4854_v8 = vsel %vm722_vm2, %v9220_v63, 0.0 }
 0xc5c   : > { %v9227_v23 = vpop.eup %7029  ;;  %4855 = vadd.xlane.f32.xlu0 %v4854_v8 }
 0xc5d   : > { %v4857_v57 = vsel %vm722_vm2, %v9227_v23, 0.0 }
 0xc5e   : > { %4858 = vadd.xlane.f32.xlu1 %v4857_v57 }
 0xc60   : > { %4795 = vmax.xlane.f32.xlu0 %v4794_v5 }
 0xc62   : > { %4786 = vmax.xlane.f32.xlu1 %v4785_v53 }
 0xcac   : > { %v4766_v50 = vpop.xlane.xlu0 %4765 }
 0xcad   : > { %v4808_v22 = vsub.f32 %v9164_v61, %v4766_v50 }
 0xcae   : > { %v4769_v56 = vpop.xlane.xlu1 %4768 }
 0xcaf   : > { %v4826_v39 = vmul.f32 1.442695, %v4808_v22  ;;  %v4809_v21 = vsub.f32 %v9167_v4, %v4769_v56 }
 0xcb1   : > { %7031 = vpow2.f32 %v4826_v39  ;;  %v4828_v27 = vmul.f32 1.442695, %v4809_v21 }
 0xcb3   : > { %7033 = vpow2.f32 %v4828_v27 }
 0xcb4   : > { %v4772_v15 = vpop.xlane.xlu0 %4771 }
 0xcb5   : > { %v4810_v55 = vsub.f32 %v9174_v28, %v4772_v15  ;;  %v9250_v28 = vadd.f32 %v9151_v0, %v4703_v41 }
 0xcb6   : > { %v4775_v3 = vpop.xlane.xlu1 %4774 }
 0xcb7   : > { %v4830_v32 = vmul.f32 1.442695, %v4810_v55  ;;  %v4811_v24 = vsub.f32 %v9177_v7, %v4775_v3  ;;  %v4797_v48 = vsel %vm722_vm2, %v9250_v28, -inf }
 0xcb9   : > { %7035 = vpow2.f32 %v4830_v32  ;;  %v4832_v40 = vmul.f32 1.442695, %v4811_v24 }
 0xcbb   : > { %v9242_v34 = vpop.eup %7031  ;;  %7037 = vpow2.f32 %v4832_v40 }
 0xcbc   : > { %v4778_v61 = vpop.xlane.xlu0 %4777  ;;  %v4860_v18 = vsel %vm722_vm2, %v9242_v34, 0.0 }
 0xcbd   : > { %v9246_v4 = vpop.eup %7033  ;;  %v4812_v29 = vsub.f32 %v9184_v54, %v4778_v61  ;;  %4861 = vadd.xlane.f32.xlu0 %v4860_v18 }
 0xcbe   : > { %v4781_v51 = vpop.xlane.xlu1 %4780  ;;  %v4863_v7 = vsel %vm722_vm2, %v9246_v4, 0.0 }
 0xcbf   : > { %v4834_v30 = vmul.f32 1.442695, %v4812_v29  ;;  %v4813_v19 = vsub.f32 %v9187_v31, %v4781_v51  ;;  %4864 = vadd.xlane.f32.xlu1 %v4863_v7  ;;  %v9686_v51 = vld [vmem:[#allocation34_spill] sm:$0xff]  ;;  %v9687_v7 = vld [vmem:[#allocation28_spill] sm:$0xff] }
 0xcc1   : > { %7039 = vpow2.f32 %v4834_v30  ;;  %v4836_v13 = vmul.f32 1.442695, %v4813_v19  ;;  %v9688_v19 = vld [vmem:[#allocation38_spill] sm:$0xff] }
 0xcc3   : > { %v9257_v43 = vpop.eup %7035  ;;  %7041 = vpow2.f32 %v4836_v13  ;;  %4798 = vmax.xlane.f32.xlu1 %v4797_v48 }
 0xcc4   : > { %v4790_v54 = vpop.xlane.xlu0 %4789  ;;  %v4866_v0 = vsel %vm722_vm2, %v9257_v43, 0.0 }
 0xcc5   : > { %v9261_v41 = vpop.eup %7037  ;;  %v4816_v59 = vsub.f32 %v9194_v33, %v4790_v54  ;;  %4867 = vadd.xlane.f32.xlu0 %v4866_v0  ;;  %v9689_v0 = vld [vmem:[#allocation42_spill] sm:$0xff] }
 0xcc6   : > { %v4793_v31 = vpop.xlane.xlu1 %4792  ;;  %v4869_v58 = vsel %vm722_vm2, %v9261_v41, 0.0 }
 0xcc7   : > { %v4842_v12 = vmul.f32 1.442695, %v4816_v59  ;;  %v4817_v8 = vsub.f32 %v9197_v49, %v4793_v31  ;;  %4870 = vadd.xlane.f32.xlu1 %v4869_v58  ;;  %v9690_v59 = vld [vmem:[#allocation46_spill] sm:$0xff] }
 0xcc8   : > { %v9691_v58 = vld [vmem:[#allocation50_spill] sm:$0xff] }
 0xcc9   : > { %7043 = vpow2.f32 %v4842_v12  ;;  %v4844_v57 = vmul.f32 1.442695, %v4817_v8 }
 0xccb   : > { %v9267_v5 = vpop.eup %7039  ;;  %7045 = vpow2.f32 %v4844_v57 }
 0xccc   : > { %v4802_v53 = vpop.xlane.xlu0 %4801  ;;  %v4872_v50 = vsel %vm722_vm2, %v9267_v5, 0.0 }
 0xccd   : > { %v9271_v22 = vpop.eup %7041  ;;  %v4820_v33 = vsub.f32 %v9204_v52, %v4802_v53  ;;  %4873 = vadd.xlane.f32.xlu0 %v4872_v50 }
 0xcce   : > { %v4805_v56 = vpop.xlane.xlu1 %4804  ;;  %v4875_v39 = vsel %vm722_vm2, %v9271_v22, 0.0 }
 0xccf   : > { %v4850_v49 = vmul.f32 1.442695, %v4820_v33  ;;  %v4821_v21 = vsub.f32 %v9210_v14, %v4805_v56  ;;  %4876 = vadd.xlane.f32.xlu1 %v4875_v39 }
 0xcd0   : > { %v4784_v61 = vpop.xlane.xlu0 %4783 }
 0xcd1   : > { %7047 = vpow2.f32 %v4850_v49  ;;  %v4852_v27 = vmul.f32 1.442695, %v4821_v21  ;;  %v4814_v8 = vsub.f32 %v9207_v11, %v4784_v61 }
 0xcd3   : > { %v9277_v15 = vpop.eup %7043  ;;  %7049 = vpow2.f32 %v4852_v27  ;;  %v4838_v53 = vmul.f32 1.442695, %v4814_v8 }
 0xcd4   : > { %v4884_v55 = vsel %vm722_vm2, %v9277_v15, 0.0 }
 0xcd5   : > { %v9281_v3 = vpop.eup %7045  ;;  %4885 = vadd.xlane.f32.xlu0 %v4884_v55 }
 0xcd6   : > { %v4887_v52 = vsel %vm722_vm2, %v9281_v3, 0.0 }
 0xcd7   : > { %4888 = vadd.xlane.f32.xlu1 %v4887_v52 }
 0xcdb   : > { %v9285_v32 = vpop.eup %7047 }
 0xcdc   : > { %v4896_v14 = vsel %vm722_vm2, %v9285_v32, 0.0 }
 0xcdd   : > { %v9289_v24 = vpop.eup %7049  ;;  %4897 = vadd.xlane.f32.xlu0 %v4896_v14 }
 0xcde   : > { %v4899_v40 = vsel %vm722_vm2, %v9289_v24, 0.0 }
 0xcdf   : > { %4900 = vadd.xlane.f32.xlu1 %v4899_v40 }
 0xce9   : > { %v4856_v18 = vpop.xlane.xlu0 %4855 }
 0xcea   : > { %7051 = vrcp.f32 %v4856_v18 }
 0xceb   : > { %v4859_v29 = vpop.xlane.xlu1 %4858 }
 0xcec   : > { %7053 = vrcp.f32 %v4859_v29 }
 0xced   : > { %v4796_v57 = vpop.xlane.xlu0 %4795  ;;  %7055 = vpow2.f32 %v4838_v53 }
 0xcef   : > { %v4787_v12 = vpop.xlane.xlu1 %4786 }
 0xcf0   : > { %4989 = vrot.lane.b32.xlu1 %v9686_v51, %s7359_s4 }
 0xcf3   : > { %4942 = vrot.lane.b32.xlu0 %v9687_v7, %s7359_s4 }
 0xcf4   : > { %v7052_v30 = vpop.eup %7051  ;;  %5036 = vrot.lane.b32.xlu1 %v9688_v19, %s7359_s4 }
 0xcf5   : > { %v9300_v48 = vmul.f32 %v7052_v30, %v9220_v63  ;;  %v4815_v63 = vsub.f32 %v9230_v16, %v4787_v12 }
 0xcf6   : > { %v7054_v13 = vpop.eup %7053 }
 0xcf7   : > { %v4919_v54 = vmul.f32 %v7054_v13, %v9227_v23  ;;  %5083 = vrot.lane.b32.xlu0 %v9689_v0, %s7359_s4  ;;  %v4818_v23 = vsub.f32 %v9223_v62, %v4796_v57  ;;  %v4840_v50 = vmul.f32 1.442695, %v4815_v63  ;;  %v9313_v56 = vpop.eup %7055 }
 0xcf8   : > { %5130 = vrot.lane.b32.xlu1 %v9690_v59, %s7359_s4  ;;  %v4878_v49 = vsel %vm722_vm2, %v9313_v56, 0.0 }
 0xcf9   : > { %v4934_v31 = vpack.c.bf16 %v4919_v54, %v9300_v48  ;;  %v4846_v33 = vmul.f32 1.442695, %v4818_v23  ;;  %7057 = vpow2.f32 %v4840_v50 }
 0xcfb   : > { %5177 = vrot.lane.b32.xlu0 %v9691_v58, %s7359_s4  ;;  %7059 = vpow2.f32 %v4846_v33 }
 0xd03   : > { %v9315_v39 = vpop.eup %7057 }
 0xd04   : > { %v4881_v11 = vsel %vm722_vm2, %v9315_v39, 0.0 }
 0xd05   : > { %v9319_v21 = vpop.eup %7059 }
 0xd06   : > { %v4890_v62 = vsel %vm722_vm2, %v9319_v21, 0.0 }
 0xd1a   : > { %4879 = vadd.xlane.f32.xlu0 %v4878_v49 }
 0xd1c   : > { %4882 = vadd.xlane.f32.xlu1 %v4881_v11 }
 0xd1e   : > { %4891 = vadd.xlane.f32.xlu0 %v4890_v62 }
 0xd34   : > { %5271 = vrot.lane.b32.xlu0 %v9678_v47, %s7359_s4 }
 0xd4a   : > { %v4862_v14 = vpop.xlane.xlu0 %4861 }
 0xd4c   : > { %v4865_v16 = vpop.xlane.xlu1 %4864 }
 0xd50   : > { %v4799_v27 = vpop.xlane.xlu1 %4798 }
 0xd51   : > { %v4819_v55 = vsub.f32 %v9250_v28, %v4799_v27 }
 0xd52   : > { %v4868_v40 = vpop.xlane.xlu0 %4867 }
 0xd53   : > { %v4848_v52 = vmul.f32 1.442695, %v4819_v55 }
 0xd54   : > { %v4871_v18 = vpop.xlane.xlu1 %4870 }
 0xd55   : > { %7061 = vpow2.f32 %v4848_v52 }
 0xd56   : > { %7063 = vrcp.f32 %v4865_v16 }
 0xd57   : > { %7065 = vrcp.f32 %v4862_v14 }
 0xd58   : > { %7067 = vrcp.f32 %v4871_v18 }
 0xd59   : > { %7069 = vrcp.f32 %v4868_v40 }
 0xd5a   : > { %v4874_v51 = vpop.xlane.xlu0 %4873 }
 0xd5c   : > { %v4877_v7 = vpop.xlane.xlu1 %4876 }
 0xd5d   : > { %7071 = vrcp.f32 %v4877_v7 }
 0xd5e   : > { %7073 = vrcp.f32 %v4874_v51 }
 0xd5f   : > { %v9328_v61 = vpop.eup %7061 }
 0xd60   : > { %v4893_v29 = vsel %vm722_vm2, %v9328_v61, 0.0  ;;  %v7064_v19 = vpop.eup %7063 }
 0xd61   : > { %4894 = vadd.xlane.f32.xlu1 %v4893_v29  ;;  %v7066_v48 = vpop.eup %7065  ;;  %v4921_v54 = vmul.f32 %v7064_v19, %v9246_v4 }
 0xd62   : > { %v4886_v47 = vpop.xlane.xlu0 %4885  ;;  %v4920_v59 = vmul.f32 %v7066_v48, %v9242_v34  ;;  %v7068_v12 = vpop.eup %7067 }
 0xd63   : > { %v7070_v8 = vpop.eup %7069  ;;  %v4923_v34 = vmul.f32 %v7068_v12, %v9261_v41 }
 0xd64   : > { %v4889_v30 = vpop.xlane.xlu1 %4888  ;;  %v4935_v57 = vpack.c.bf16 %v4921_v54, %v4920_v59 }
 0xd65   : > { %7075 = vrcp.f32 %v4889_v30 }
 0xd66   : > { %7077 = vrcp.f32 %v4886_v47 }
 0xd67   : > { %v7072_v63 = vpop.eup %7071 }
 0xd68   : > { %v7074_v23 = vpop.eup %7073 }
 0xd69   : > { %v4924_v41 = vmul.f32 %v7074_v23, %v9267_v5 }
 0xd6a   : > { %v4898_v28 = vpop.xlane.xlu0 %4897 }
 0xd6c   : > { %v4901_v13 = vpop.xlane.xlu1 %4900 }
 0xd6d   : > { %7079 = vrcp.f32 %v4901_v13 }
 0xd6e   : > { %v4943_v0 = vpop.permute.xlu0 %4942  ;;  %7081 = vrcp.f32 %v4898_v28 }
 0xd6f   : > { %6492 = vmatpush3.bf16.msra.mxu0 %v4943_v0  ;;  %v7076_v11 = vpop.eup %7075 }
 0xd70   : > { %v4990_v58 = vpop.permute.xlu1 %4989  ;;  %6503 = vmatprep.subr.bf16.mxu0 %v9660_v35  ;;  %v4929_v5 = vmul.f32 %v7076_v11, %v9281_v3 }
 0xd71   : > { %6498 = vmatpush3.bf16.msra.mxu1 %v4990_v58 }
 0xd72   : > { %6494 = vmatmul.mubr.msk.bf16.vlgmr.msra.gmra.mrb[112].mxu0 %vm722_vm2, %v4934_v31  ;;  %5224 = vrot.lane.b32.xlu1 %v7756_v25, %s7359_s4  ;;  %v5084_v4 = vpop.permute.xlu0 %5083  ;;  %v4922_v31 = vmul.f32 %v7070_v8, %v9257_v43  ;;  %v4925_v25 = vmul.f32 %v7072_v63, %v9271_v22  ;;  %v7078_v22 = vpop.eup %7077  ;;  %s9696_s4 = smov %s9695_s27 }
 0xd73   : > { %6509 = vmatprep.subr.bf16.mxu1 %v9660_v35  ;;  %6505 = vmatprep.mubr.msk.bf16.mxu0 %vm7353_vm1, %v9660_v35  ;;  %v4928_v62 = vmul.f32 %v7078_v22, %v9277_v15 }
 0xd74   : > { %6500 = vmatmul.mubr.msk.bf16.vlgmr.msra.gmra.mrb[160].mxu1 %vm722_vm2, %v4935_v57  ;;  %v5037_v53 = vpop.permute.xlu1 %5036  ;;  %v4936_v33 = vpack.c.bf16 %v4923_v34, %v4922_v31  ;;  %v4937_v49 = vpack.c.bf16 %v4925_v25, %v4924_v41 }
 0xd75   : > { %6504 = vmatpush3.bf16.msra.mxu0 %v5037_v53  ;;  %6510 = vmatpush3.bf16.msra.mxu1 %v5084_v4  ;;  %v4939_v16 = vpack.c.bf16 %v4929_v5, %v4928_v62 }
 0xd76   : > { %6515 = vmatprep.subr.bf16.mxu0 %v9660_v35  ;;  %6511 = vmatprep.mubr.msk.bf16.mxu1 %vm7353_vm1, %v9660_v35  ;;  %v5178_v43 = vpop.permute.xlu0 %5177 }
 0xd77   : > { %6521 = vmatprep.subr.bf16.mxu1 %v9660_v35  ;;  %v7080_v52 = vpop.eup %7079 }
 0xd78   : > { %v5131_v50 = vpop.permute.xlu1 %5130  ;;  %v7082_v40 = vpop.eup %7081  ;;  %v4933_v3 = vmul.f32 %v7080_v52, %v9289_v24 }
 0xd79   : > { %v4932_v18 = vmul.f32 %v7082_v40, %v9285_v32 }
 0xd7a   : > { %6506 = vmatmul.mubr.msk.bf16.vlgmr.msra.gmra.mrb[116].mxu0 %vm722_vm2, %v4936_v33 }
 0xd7b   : > { %6516 = vmatpush3.bf16.msra.mxu0 %v5131_v50  ;;  %6517 = vmatprep.mubr.msk.bf16.mxu0 %vm7353_vm1, %v9660_v35  ;;  %v4941_v29 = vpack.c.bf16 %v4933_v3, %v4932_v18  ;;  %v6770_v3 = vld [vmem:[#allocation8 + $0x18] sm:$0xff]  }
 0xd7c   : > { %6512 = vmatmul.mubr.msk.bf16.vlgmr.msra.gmra.mrb[164].mxu1 %vm722_vm2, %v4937_v49  ;;  %6527 = vmatprep.subr.bf16.mxu0 %v9660_v35 }
 0xd7d   : > { %6522 = vmatpush3.bf16.msra.mxu1 %v5178_v43  ;;  %6523 = vmatprep.mubr.msk.bf16.mxu1 %vm7353_vm1, %v9660_v35 }
 0xd7e   : > { %6533 = vmatprep.subr.bf16.mxu1 %v9660_v35 }
 0xd84   : > { %6524 = vmatmul.mubr.msk.bf16.vlgmr.msra.gmra.mrb[168].mxu1 %vm722_vm2, %v4939_v16 }
 0xd85   : > { %6535 = vmatprep.mubr.msk.bf16.mxu1 %vm7353_vm1, %v9660_v35 }
 0xda7   : > { %v4880_v27 = vpop.xlane.xlu0 %4879 }
 0xda8   : > { %7083 = vrcp.f32 %v4880_v27 }
 0xda9   : > { %v4883_v55 = vpop.xlane.xlu1 %4882 }
 0xdaa   : > { %7085 = vrcp.f32 %v4883_v55 }
 0xdab   : > { %v4892_v14 = vpop.xlane.xlu0 %4891 }
 0xdac   : > { %7087 = vrcp.f32 %v4892_v14 }
 0xdaf   : > { %v5272_v15 = vpop.permute.xlu0 %5271 }
 0xdb0   : > { %6534 = vmatpush3.bf16.msra.mxu1 %v5272_v15 }
 0xdb2   : > { %v7084_v51 = vpop.eup %7083 }
 0xdb3   : > { %6536 = vmatmul.mubr.msk.bf16.vlgmr.msra.gmra.mrb[172].mxu1 %vm722_vm2, %v4941_v29  ;;  %v4926_v47 = vmul.f32 %v7084_v51, %v9313_v56 }
 0xdb4   : > { %v7086_v7 = vpop.eup %7085 }
 0xdb5   : > { %v4927_v30 = vmul.f32 %v7086_v7, %v9315_v39 }
 0xdb6   : > { %v7088_v19 = vpop.eup %7087 }
 0xdb7   : > { %v4938_v28 = vpack.c.bf16 %v4927_v30, %v4926_v47  ;;  %v4930_v48 = vmul.f32 %v7088_v19, %v9319_v21 }
 0xdb9   : > { %6518 = vmatmul.mubr.msk.bf16.vlgmr.msra.gmra.mrb[120].mxu0 %vm722_vm2, %v4938_v28 }
 0xdba   : > { %6529 = vmatprep.mubr.msk.bf16.mxu0 %vm7353_vm1, %v9660_v35 }
 0xdee   : > { %v4895_v24 = vpop.xlane.xlu1 %4894 }
 0xdef   : > { %7089 = vrcp.f32 %v4895_v24 }
 0xdf2   : > { %v5225_v32 = vpop.permute.xlu1 %5224 }
 0xdf3   : > { %6528 = vmatpush3.bf16.msra.mxu0 %v5225_v32 }
 0xdf4   : > { %6539 = vmatprep.subr.bf16.mxu0 %v6770_v3 }
 0xdf9   : > { %v7090_v13 = vpop.eup %7089 }
 0xdfa   : > { %v4931_v54 = vmul.f32 %v7090_v13, %v9328_v61 }
 0xdfc   : > { %v4940_v56 = vpack.c.bf16 %v4931_v54, %v4930_v48 }
 0xdfe   : > { %6530 = vmatmul.mubr.msk.bf16.vlgmr.msra.gmra.mrb[124].mxu0 %vm722_vm2, %v4940_v56 }
 0xdff   : > { %6540 = vmatpush3.bf16.msra.mxu0 %v6770_v3 }
 0xe45   : > { %v4982_v39 = vpop.f32.mrb[112].mxu0 }
 0xe46   : > { %v6495_v0 = vpop.f32.mrb[113].mxu0  ;;  %5334 = vrot.lane.b32.xlu1 %v4982_v39, %s7356_s11 }
 0xe47   : > { %v4985_v59 = vpop.f32.mrb[114].mxu0  ;;  %v5029_v35 = vpop.f32.mrb[160].mxu1 }
 0xe48   : > { %5336 = vrot.lane.b32.xlu0 %v4985_v59, %s7356_s11  ;;  %v6496_v58 = vpop.f32.mrb[115].mxu0  ;;  %v6501_v12 = vpop.f32.mrb[161].mxu1 }
 0xe49   : > { %v5032_v8 = vpop.f32.mrb[162].mxu1 }
 0xe4a   : > { %5338 = vrot.lane.b32.xlu1 %v5029_v35, %s7356_s11  ;;  %v6502_v57 = vpop.f32.mrb[163].mxu1 }
 0xe4c   : > { %5340 = vrot.lane.b32.xlu0 %v5032_v8, %s7356_s11 }
 0xe4d   : > { %v5076_v21 = vpop.f32.mrb[116].mxu0 }
 0xe4e   : > { %v6507_v61 = vpop.f32.mrb[117].mxu0  ;;  %5342 = vrot.lane.b32.xlu1 %v5076_v21, %s7356_s11 }
 0xe4f   : > { %v5079_v63 = vpop.f32.mrb[118].mxu0  ;;  %v5123_v34 = vpop.f32.mrb[164].mxu1 }
 0xe50   : > { %v6508_v4 = vpop.f32.mrb[119].mxu0  ;;  %5344 = vrot.lane.b32.xlu0 %v5079_v63, %s7356_s11  ;;  %v6513_v53 = vpop.f32.mrb[165].mxu1 }
 0xe51   : > { %v5126_v23 = vpop.f32.mrb[166].mxu1 }
 0xe52   : > { %5346 = vrot.lane.b32.xlu1 %v5123_v34, %s7356_s11  ;;  %v6514_v31 = vpop.f32.mrb[167].mxu1 }
 0xe54   : > { %5348 = vrot.lane.b32.xlu0 %v5126_v23, %s7356_s11 }
 0xe57   : > { %v5217_v25 = vpop.f32.mrb[168].mxu1 }
 0xe58   : > { %v6525_v41 = vpop.f32.mrb[169].mxu1 }
 0xe59   : > { %v5220_v50 = vpop.f32.mrb[170].mxu1  ;;  %v5926_v41 = vld [vmem:[%s9536_s5] ss:$0 sm:$0xff] }
 0xe5a   : > { %v6526_v33 = vpop.f32.mrb[171].mxu1 }
 0xe86   : > { %v5311_v49 = vpop.f32.mrb[172].mxu1 }
 0xe87   : > { %v6537_v11 = vpop.f32.mrb[173].mxu1 }
 0xe88   : > { %v5314_v43 = vpop.f32.mrb[174].mxu1 }
 0xe89   : > { %v6538_v22 = vpop.f32.mrb[175].mxu1 }
 0xe8c   : > { %v5170_v5 = vpop.f32.mrb[120].mxu0 }
 0xe8d   : > { %v6519_v62 = vpop.f32.mrb[121].mxu0  ;;  %5350 = vrot.lane.b32.xlu1 %v5170_v5, %s7356_s11 }
 0xe8e   : > { %v5173_v16 = vpop.f32.mrb[122].mxu0 }
 0xe8f   : > { %v6520_v27 = vpop.f32.mrb[123].mxu0  ;;  %5352 = vrot.lane.b32.xlu0 %v5173_v16, %s7356_s11 }
 0xe91   : > { %5354 = vrot.lane.b32.xlu1 %v5217_v25, %s7356_s11 }
 0xe93   : > { %5356 = vrot.lane.b32.xlu0 %v5220_v50, %s7356_s11 }
 0xeb8   : > { %v5335_v52 = vpop.permute.xlu1 %5334 }
 0xeb9   : > { %v5382_v28 = vmul.f32 %v8620_v26, %v5335_v52 }
 0xeba   : > { %v5337_v55 = vpop.permute.xlu0 %5336 }
 0xebb   : > { %v5383_v47 = vmul.f32 %v8622_v9, %v5337_v55 }
 0xebc   : > { %v5339_v40 = vpop.permute.xlu1 %5338 }
 0xebd   : > { %v5398_v19 = vpack.c.bf16 %v5383_v47, %v5382_v28  ;;  %v5384_v13 = vmul.f32 %v8618_v44, %v5339_v40 }
 0xebe   : > { %v5341_v14 = vpop.permute.xlu0 %5340 }
 0xebf   : > { %v5385_v24 = vmul.f32 %v8631_v36, %v5341_v14 }
 0xec0   : > { %v5343_v51 = vpop.permute.xlu1 %5342 }
 0xec1   : > { %v5399_v56 = vpack.c.bf16 %v5385_v24, %v5384_v13  ;;  %v5386_v9 = vmul.f32 %v8636_v60, %v5343_v51 }
 0xec2   : > { %v5345_v18 = vpop.permute.xlu0 %5344 }
 0xec3   : > { %v5387_v48 = vmul.f32 %v8626_v42, %v5345_v18 }
 0xec4   : > { %v5347_v54 = vpop.permute.xlu1 %5346 }
 0xec5   : > { %v5400_v26 = vpack.c.bf16 %v5387_v48, %v5386_v9  ;;  %v5388_v36 = vmul.f32 %v8633_v37, %v5347_v54 }
 0xec6   : > { %v5349_v32 = vpop.permute.xlu0 %5348 }
 0xec7   : > { %v5389_v39 = vmul.f32 %v8644_v20, %v5349_v32 }
 0xec9   : > { %v5401_v0 = vpack.c.bf16 %v5389_v39, %v5388_v36 }
 0xed1   : > { %v5264_v15 = vpop.f32.mrb[124].mxu0 }
 0xed2   : > { %v6531_v29 = vpop.f32.mrb[125].mxu0  ;;  %5358 = vrot.lane.b32.xlu1 %v5264_v15, %s7356_s11 }
 0xed3   : > { %v5267_v7 = vpop.f32.mrb[126].mxu0 }
 0xed4   : > { %v6532_v30 = vpop.f32.mrb[127].mxu0  ;;  %5360 = vrot.lane.b32.xlu0 %v5267_v7, %s7356_s11 }
 0xed6   : > { %5362 = vrot.lane.b32.xlu1 %v5311_v49, %s7356_s11 }
 0xed8   : > { %5364 = vrot.lane.b32.xlu0 %v5314_v43, %s7356_s11 }
 0xeda   : > { %5417 = vrot.lane.b32.xlu1 %v5398_v19, %s7360_s20 }
 0xedc   : > { %5419 = vrot.lane.b32.xlu0 %v5399_v56, %s7360_s20 }
 0xede   : > { %5421 = vrot.lane.b32.xlu1 %v5400_v26, %s7360_s20 }
 0xee0   : > { %5423 = vrot.lane.b32.xlu0 %v5401_v0, %s7360_s20 }
 0xeff   : > { %v5351_v44 = vpop.permute.xlu1 %5350 }
 0xf00   : > { %v5390_v59 = vmul.f32 %v8638_v2, %v5351_v44 }
 0xf01   : > { %v5353_v42 = vpop.permute.xlu0 %5352 }
 0xf02   : > { %v5391_v60 = vmul.f32 %v8650_v17, %v5353_v42 }
 0xf03   : > { %v5355_v35 = vpop.permute.xlu1 %5354 }
 0xf04   : > { %v5402_v20 = vpack.c.bf16 %v5391_v60, %v5390_v59  ;;  %v5392_v12 = vmul.f32 %v8646_v45, %v5355_v35 }
 0xf05   : > { %v5357_v58 = vpop.permute.xlu0 %5356 }
 0xf06   : > { %v5393_v37 = vmul.f32 %v8655_v1, %v5357_v58  ;;  %5425 = vrot.lane.b32.xlu1 %v5402_v20, %s7360_s20 }
 0xf08   : > { %v5403_v8 = vpack.c.bf16 %v5393_v37, %v5392_v12 }
 0xf0a   : > { %5427 = vrot.lane.b32.xlu0 %v5403_v8, %s7360_s20 }
 0xf44   : > { %v5359_v57 = vpop.permute.xlu1 %5358 }
 0xf45   : > { %v5394_v61 = vmul.f32 %v8662_v38, %v5359_v57 }
 0xf46   : > { %v5361_v21 = vpop.permute.xlu0 %5360 }
 0xf47   : > { %v5395_v2 = vmul.f32 %v8667_v46, %v5361_v21 }
 0xf48   : > { %v5363_v63 = vpop.permute.xlu1 %5362 }
 0xf49   : > { %v5404_v17 = vpack.c.bf16 %v5395_v2, %v5394_v61  ;;  %v5396_v4 = vmul.f32 %v8664_v6, %v5363_v63 }
 0xf4a   : > { %v5365_v34 = vpop.permute.xlu0 %5364 }
 0xf4b   : > { %v5397_v45 = vmul.f32 %v8669_v10, %v5365_v34  ;;  %5429 = vrot.lane.b32.xlu1 %v5404_v17, %s7360_s20 }
 0xf4c   : > { %v5418_v1 = vpop.permute.xlu1 %5417 }
 0xf4d   : > { %v5405_v53 = vpack.c.bf16 %v5397_v45, %v5396_v4  ;;  %6541 = vmatprep.mubr.msk.bf16.mxu0 %vm722_vm2, %v5418_v1 }
 0xf4e   : > { %v5420_v23 = vpop.permute.xlu0 %5419 }
 0xf4f   : > { %5431 = vrot.lane.b32.xlu0 %v5405_v53, %s7360_s20  ;;  %6542 = vmatmul.mubr.msk.bf16.vlgmr.msra.gmra.mrb[72].mxu0 %vm722_vm2, %v5420_v23  ;;  %s9464_s20 = scalar_lea.hbm %s9695_s27, %s5931_s9 }
 0xf50   : > { %v5422_v38 = vpop.permute.xlu1 %5421 }
 0xf51   : > { %6545 = vmatprep.mubr.msk.bf16.mxu0 %vm722_vm2, %v5422_v38 }
 0xf52   : > { %v5424_v46 = vpop.permute.xlu0 %5423 }
 0xf57   : > { %6546 = vmatmul.mubr.msk.bf16.gmra.mrb[76].mxu0 %vm722_vm2, %v5424_v46 }
 0xf78   : > { %v5426_v6 = vpop.permute.xlu1 %5425 }
 0xf79   : > { %6549 = vmatprep.mubr.msk.bf16.mxu0 %vm722_vm2, %v5426_v6 }
 0xf7c   : > { %v5428_v10 = vpop.permute.xlu0 %5427 }
 0xf7d   : > { %6550 = vmatmul.mubr.msk.bf16.gmra.mrb[80].mxu0 %vm722_vm2, %v5428_v10 }
 0xfbd   : > { %v5430_v31 = vpop.permute.xlu1 %5429 }
 0xfbe   : > { %6553 = vmatprep.mubr.msk.bf16.mxu0 %vm722_vm2, %v5430_v31 }
 0xfc1   : > { %v5432_v25 = vpop.permute.xlu0 %5431 }
 0xfc2   : > { %6554 = vmatmul.mubr.msk.bf16.gmra.mrb[84].mxu0 %vm722_vm2, %v5432_v25 }
0x1022   : > { %v6543_v50 = vpop.f32.mrb[72].mxu0 }
0x1023   : > { %v5584_v33 = vadd.f32 %v6543_v50, %v5926_v41  ;;  %v5497_v49 = vpop.f32.mrb[73].mxu0 }
0x1024   : > { %v5582_v11 = vadd.f32 %v5926_v41, %v5497_v49  ;;  %v6544_v43 = vpop.f32.mrb[74].mxu0 }
0x1025   : > { %5600 = vst.msk [vmem:[%s9426_s13 + $0x10] sm:$0xff] %vm441_vm0, %v5584_v33  ;;  %v5585_v22 = vadd.f32 %v6544_v43, %v5926_v41  ;;  %v5500_v5 = vpop.f32.mrb[75].mxu0 }
0x1026   : > { %5598 = vst.msk [vmem:[%s9426_s13] sm:$0xff] %vm441_vm0, %v5582_v11  ;;  %v5583_v62 = vadd.f32 %v5926_v41, %v5500_v5 }
0x1027   : > { %5601 = vst.msk [vmem:[%s9426_s13 + $0x18] sm:$0xff] %vm441_vm0, %v5585_v22 }
0x1028   : > { %5599 = vst.msk [vmem:[%s9426_s13 + $0x8] sm:$0xff] %vm441_vm0, %v5583_v62 }
0x102a   : > { %v6547_v16 = vpop.f32.mrb[76].mxu0 }
0x102b   : > { %v5588_v27 = vadd.f32 %v6547_v16, %v5926_v41  ;;  %v5513_v55 = vpop.f32.mrb[77].mxu0 }
0x102c   : > { %v5586_v52 = vadd.f32 %v5926_v41, %v5513_v55  ;;  %v6548_v14 = vpop.f32.mrb[78].mxu0 }
0x102d   : > { %5604 = vst.msk [vmem:[%s9426_s13 + $0x30] sm:$0xff] %vm441_vm0, %v5588_v27  ;;  %v5589_v40 = vadd.f32 %v6548_v14, %v5926_v41  ;;  %v5516_v3 = vpop.f32.mrb[79].mxu0 }
0x102e   : > { %5602 = vst.msk [vmem:[%s9426_s13 + $0x20] sm:$0xff] %vm441_vm0, %v5586_v52  ;;  %v5587_v18 = vadd.f32 %v5926_v41, %v5516_v3 }
0x102f   : > { %5605 = vst.msk [vmem:[%s9426_s13 + $0x38] sm:$0xff] %vm441_vm0, %v5589_v40 }
0x1030   : > { %5603 = vst.msk [vmem:[%s9426_s13 + $0x28] sm:$0xff] %vm441_vm0, %v5587_v18 }
0x1050   : > { %v6551_v15 = vpop.f32.mrb[80].mxu0 }
0x1051   : > { %v5592_v29 = vadd.f32 %v6551_v15, %v5926_v41  ;;  %v5529_v51 = vpop.f32.mrb[81].mxu0 }
0x1052   : > { %v5590_v7 = vadd.f32 %v5926_v41, %v5529_v51  ;;  %v6552_v47 = vpop.f32.mrb[82].mxu0 }
0x1053   : > { %5608 = vst.msk [vmem:[%s9426_s13 + $0x50] sm:$0xff] %vm441_vm0, %v5592_v29  ;;  %v5593_v30 = vadd.f32 %v6552_v47, %v5926_v41  ;;  %v5532_v28 = vpop.f32.mrb[83].mxu0 }
0x1054   : > { %5606 = vst.msk [vmem:[%s9426_s13 + $0x40] sm:$0xff] %vm441_vm0, %v5590_v7  ;;  %v5591_v24 = vadd.f32 %v5926_v41, %v5532_v28 }
0x1055   : > { %5609 = vst.msk [vmem:[%s9426_s13 + $0x58] sm:$0xff] %vm441_vm0, %v5593_v30 }
0x1056   : > { %5607 = vst.msk [vmem:[%s9426_s13 + $0x48] sm:$0xff] %vm441_vm0, %v5591_v24 }
0x1095   : > { %v6555_v32 = vpop.f32.mrb[84].mxu0 }
0x1096   : > { %v5596_v19 = vadd.f32 %v6555_v32, %v5926_v41  ;;  %v5545_v13 = vpop.f32.mrb[85].mxu0 }
0x1097   : > { %v5594_v48 = vadd.f32 %v5926_v41, %v5545_v13  ;;  %v6556_v54 = vpop.f32.mrb[86].mxu0 }
0x1098   : > { %5612 = vst.msk [vmem:[%s9426_s13 + $0x70] sm:$0xff] %vm441_vm0, %v5596_v19  ;;  %v5597_v56 = vadd.f32 %v6556_v54, %v5926_v41  ;;  %v5548_v9 = vpop.f32.mrb[87].mxu0 }
0x1099   : > { %5610 = vst.msk [vmem:[%s9426_s13 + $0x60] sm:$0xff] %vm441_vm0, %v5594_v48  ;;  %v5595_v39 = vadd.f32 %v5926_v41, %v5548_v9 }
0x109a   : > { %5613 = vst.msk [vmem:[%s9426_s13 + $0x78] sm:$0xff] %vm441_vm0, %v5597_v56 }
0x109b   : > { %5611 = vst.msk [vmem:[%s9426_s13 + $0x68] sm:$0xff] %vm441_vm0, %v5595_v39 }
0x109c   : > { %7220 = shalt.err (!%p7217_p2)
}
0x109d   : > { %s7221_s13 = scalar_lea.hbm %s9464_s20, 2048  ;;  %s7225_s8 = scalar_lea.hbm %s9696_s4, 8192 }
0x109e   : > { %p7222_p11 = scmp.ne.s32.totalorder %s9464_s20, %s7221_s13  ;;  %p7226_p10 = scmp.lt.u32.totalorder %s9464_s20, %s9696_s4 }
0x109f   : > { %p7227_p13 = scmp.lt.u32.totalorder %s7225_s8, %s7221_s13  ;;  %p7229_p5 = scmp.lt.u32.totalorder %s7221_s13, %s9464_s20 }
0x10a0   : > { %p7223_p0 = pnand %p7222_p11, %p7565_p8 }
0x10a1   : > { %p7228_p9 = por %p7227_p13, %p7226_p10 }
0x10a2   : > { %p7224_p3 = pneg %p7223_p0 }
0x10a3   : > { %p7230_p6 = por %p7229_p5, %p7228_p9 }
0x10a5   : > { %p7231_p7 = pnand %p7230_p6, %p7224_p3 }
0x10a7   : > { %7234 = shalt.err (!%p7231_p7)
}
0x10a8   : > { %s7362_s15 = smov 128   ;;  %s7363_s27 = smov 8  }
0x10a9   : > { %6621 = dma.vmem_to_hbm [thread:$0]  (%p7565_p8), %s9457_s10, 2048, %s9464_s20, %s5615_s12, %s7362_s15, %s7362_s15, %s7363_s27  }
0x10aa PF: > { %s9697_s14 = sld [smem:[#allocation16_spill]]  ;;  %s9698_s18 = sld [smem:[#allocation19_spill]] }
0x10ab   : > { %p6646_p1 = scmp.ge.s32.totalorder %s7341_s7, 2 }
0x10b0   : > { %s5646_s16 = sand.u32 1, %s9697_s14   ;;  %p9699_p4 = scmp.ne.s32.totalorder %s9698_s18, 0 }
0x10b1   : > { %s5647_s24 = scalar_lea.sflag [#allocation4], %s5646_s16 }
0x10b2   : > { %p6638_p12 = pnand %p6646_p1, %p9699_p4 }
0x10b4   : > { %7296 = dma.done.wait (!%p6638_p12), %s5647_s24, 2048  }
0x10b5   : > { %7298 = vsyncadd (!%p6638_p12), %s5647_s24, 4294965248  ;;  %s26_s7 = sadd.s32 1, %s7341_s7   ;;  %s9700_s13 = smov %s7636_s21 }
0x10b6   : > { %p23_p2 = scmp.ge.s32.totalorder %s26_s7, 6   ;;  %s9701_s6 = sld [smem:[#allocation20_spill]] }
0x10b7   : > { %s9702_s10 = sld [smem:[#allocation22_spill]]  ;;  %s9703_s21 = smov %s7305_s22 }
0x10b8   : > { %s9704_s22 = smov %s7309_s23  ;;  %s9705_s23 = smov %s9700_s13 }
0x10b9   : > { %s9706_s24 = smov %s7317_s25  ;;  %s9707_s25 = smov %s7321_s26 }
0x10ba   : > { %s9708_s26 = smov %s7582_s2  ;;  %s9709_s27 = smov %s7333_s29 }
0x10bb   : > { %s9710_s28 = smov %s7337_s30  ;;  %25 = sbr.rel (!%p23_p2) target bundleno = 16 (0x10), region = 116 }
0x10bc   : > { %s9711_s29 = smov %s9701_s6 }
0x10bd   : > { %s9712_s30 = smov %s9702_s10 }
0x10c2   :  { %5652 = vsyncpa [#allocation3], 1 }
0x10c3   :  { %5654 = vsyncpa [#allocation3 + $0x1], 1 }
0x10c4   :  { %5655 = vsyncpa [#allocation6], 1 }
0x10c5   :  { %5657 = vsyncpa [#allocation6 + $0x1], 1 }
0x10c6   :  { %5658 = vsyncpa [#allocation9], 1 }
0x10c7   :  { %5659 = vsyncpa [#allocation4], 1 }
0x10c8   :  { %5661 = vsyncpa [#allocation4 + $0x1], 1 }

</bundles_post_ra>
